<compile_context>
chip_gen: v6e
topology: v6e:2x2x1
jax: 0.10.0
libtpu: 0.0.40
codegen_flags: <defaults>
</compile_context>

<pallas_src>
import functools

import jax
import jax.numpy as jnp
from jax.experimental import pallas as pl
from jax.experimental.pallas import tpu as pltpu

BN_EPS = 1e-5
LANE = 128


def _round_up(x, m):
    return (x + m - 1) // m * m


@functools.lru_cache(maxsize=1)
def _vmem_limit_bytes():
    """Per-generation scoped-VMEM budget: ~half of physical capacity, safe fallback."""
    try:
        cap = int(pltpu.get_tpu_info().vmem_capacity_bytes)
    except Exception:  # pragma: no cover - older runtimes / missing attribute
        return 32 * 1024 * 1024
    return max(32 * 1024 * 1024, min(cap // 2, 96 * 1024 * 1024))


def _conv_mxu(xc, wk_ref, H, W):
    """3x3 conv of one image as MXU matmul(s), f32 accumulation.

    wk_ref: (KY, K, Npad) bf16 folded weights (Cout zero-padded, lane-dense).
      KY == 1: xc is (H*W, 9*Cin)     full im2col, single matmul.
      KY == 3: xc is (H+2, W, 3*Cin)  kx-preconcat; ky taps are leading-axis slices.
    Returns (H*W, Npad) f32.  No bias: it cancels in training-mode BatchNorm.
    """
    ky_taps = wk_ref.shape[0]
    if ky_taps == 1:
        return jnp.dot(xc, wk_ref[0], preferred_element_type=jnp.float32)
    k = xc.shape[-1]
    acc = jnp.dot(xc[0:H].reshape(H * W, k), wk_ref[0],
                  preferred_element_type=jnp.float32)
    for ky in range(1, ky_taps):   # static unroll; ky slice is on the free major axis
        acc = acc + jnp.dot(xc[ky:ky + H].reshape(H * W, k), wk_ref[ky],
                            preferred_element_type=jnp.float32)
    return acc


def conv_stats_kernel(xc_ref, wk_ref, y_ref, sum_ref, css_ref, *, H, W):
    """Pass 1: conv -> cache bf16 activation + per-image BN partial statistics."""
    y = _conv_mxu(xc_ref[0], wk_ref, H, W)          # (H*W, Npad) f32
    y16 = y.astype(jnp.bfloat16)
    y_ref[...] = y16[None]                          # cached; pass 2 never redoes the conv
    # Stats of the bf16-rounded tensor so pass 2 normalizes exactly what the stats
    # describe (deliberate choice).
    yq = y16.astype(jnp.float32)
    s = jnp.sum(yq, axis=0, keepdims=True)          # (1, Npad)
    mu = s * (1.0 / (H * W))
    d = yq - mu
    sum_ref[...] = s[None]                                        # (1, 1, Npad)
    css_ref[...] = jnp.sum(d * d, axis=0, keepdims=True)[None]    # centered sum-of-squares


def affine_relu_kernel(y_ref, s_ref, t_ref, o_ref):
    """Pass 2: pure elementwise fused BN scale/shift + ReLU over the cached conv."""
    y = y_ref[...].astype(jnp.float32)                       # (1, H*W, Npad)
    z = y * s_ref[...][None] + t_ref[...][None]              # single per-element FMA
    o_ref[...] = jnp.maximum(z, 0.0).astype(o_ref.dtype)     # lane-dense store


def _conv_bn_relu_layer(x_nhwc, wconv, gamma, beta, out_dtype):
    """One Conv2d(3x3, pad=1) + BatchNorm2d(train) + ReLU layer.

    x_nhwc may carry zero-valued padded channels from the previous layer; the
    weight's Cin axis is zero-padded to match (exactly a no-op in the math).
    Returns ((B, H, W, Npad) out_dtype, Cout) with channels [Cout:Npad] exactly zero.
    """
    B, H, W, Cin = x_nhwc.shape
    _, _, cw, Cout = wconv.shape
    if Cin != cw:
        wconv = jnp.pad(wconv, ((0, 0), (0, 0), (0, Cin - cw), (0, 0)))
    Npad = _round_up(Cout, 2 * LANE) if Cout > LANE else LANE
    n = H * W
    vmem_limit = _vmem_limit_bytes()

    # im2col glue (plain JAX); bf16 operands for the MXU.
    xp = jnp.pad(x_nhwc.astype(jnp.bfloat16), ((0, 0), (1, 1), (1, 1), (0, 0)))
    if 9 * Cin <= LANE:
        # Full 9-tap im2col: lane padding to 128 dominates anyway -> free bytes,
        # one matmul per image, 3x better MXU K utilization.
        K = 9 * Cin
        xc = jnp.concatenate(
            [xp[:, ky:ky + H, kx:kx + W, :] for ky in range(3) for kx in range(3)],
            axis=-1).reshape(B, n, K)
        wk = wconv.reshape(1, K, Cout)
        x_spec = pl.BlockSpec((1, n, K), lambda b: (b, 0, 0))
    else:
        # kx-preconcat layout: K = 3*Cin; ky taps sliced inside the kernel.
        K = 3 * Cin
        xc = jnp.concatenate([xp[:, :, kx:kx + W, :] for kx in range(3)], axis=-1)
        wk = wconv.reshape(3, K, Cout)
        x_spec = pl.BlockSpec((1, H + 2, W, K), lambda b: (b, 0, 0, 0))
    wk = jnp.pad(wk, ((0, 0), (0, 0), (0, Npad - Cout))).astype(jnp.bfloat16)

    w_spec = pl.BlockSpec(wk.shape, lambda b: (0, 0, 0))          # VMEM-resident
    y_spec = pl.BlockSpec((1, n, Npad), lambda b: (b, 0, 0))
    stat_spec = pl.BlockSpec((1, 1, Npad), lambda b: (b, 0, 0))

    # ---- Pass 1: conv + cached bf16 activation + per-image partial stats -----
    # Every output block is per-image -> fully parallel, megacore-shardable.
    y, sums, css = pl.pallas_call(
        functools.partial(conv_stats_kernel, H=H, W=W),
        out_shape=(jax.ShapeDtypeStruct((B, n, Npad), jnp.bfloat16),
                   jax.ShapeDtypeStruct((B, 1, Npad), jnp.float32),
                   jax.ShapeDtypeStruct((B, 1, Npad), jnp.float32)),
        grid=(B,),
        in_specs=[x_spec, w_spec],
        out_specs=(y_spec, stat_spec, stat_spec),
        compiler_params=pltpu.CompilerParams(
            dimension_semantics=("parallel",), vmem_limit_bytes=vmem_limit),
    )(xc, wk)

    # Tiny XLA glue: Chan parallel-variance combination of the per-image partials
    # (no E[x^2]-E[x]^2 cancellation), then fold gamma/beta (+ the cancelled conv
    # bias) into a single per-channel scale/shift.
    M = B * n
    sum_i = sums[:, 0, :]                         # (B, Npad)
    css_i = css[:, 0, :]
    mean_i = sum_i / n
    mean = jnp.sum(sum_i, axis=0) / M
    var = (jnp.sum(css_i, axis=0)
           + n * jnp.sum(jnp.square(mean_i - mean[None, :]), axis=0)) / M
    var = jnp.maximum(var, 0.0)
    g = jnp.pad(gamma, (0, Npad - Cout))          # padded channels -> scale/shift = 0
    bt = jnp.pad(beta, (0, Npad - Cout))
    scale = g * jax.lax.rsqrt(var + BN_EPS)
    shift = bt - mean * scale
    s2 = scale.reshape(1, Npad).astype(jnp.float32)
    t2 = shift.reshape(1, Npad).astype(jnp.float32)
    sv_spec = pl.BlockSpec((1, Npad), lambda b: (0, 0))

    # ---- Pass 2: mem-bound elementwise sweep over the cached activation -------
    out = pl.pallas_call(
        affine_relu_kernel,
        out_shape=jax.ShapeDtypeStruct((B, n, Npad), out_dtype),
        grid=(B,),
        in_specs=[y_spec, sv_spec, sv_spec],
        out_specs=y_spec,
        compiler_params=pltpu.CompilerParams(
            dimension_semantics=("parallel",), vmem_limit_bytes=vmem_limit),
    )(y, s2, t2)

    return out.reshape(B, H, W, Npad), Cout


def init_conv_block_params(key, in_channels, out_channels):
    """Deterministic synthetic parameters (shapes match nn.Conv2d / nn.BatchNorm2d)."""
    k1, k2, k3, k4 = jax.random.split(key, 4)
    return {
        "w1": jax.random.normal(k1, (3, 3, in_channels, out_channels), jnp.float32) * 0.1,
        "b1": jax.random.normal(k2, (out_channels,), jnp.float32) * 0.1,
        "gamma1": jnp.ones((out_channels,), jnp.float32),
        "beta1": jnp.zeros((out_channels,), jnp.float32),
        "w2": jax.random.normal(k3, (3, 3, out_channels, out_channels), jnp.float32) * 0.1,
        "b2": jax.random.normal(k4, (out_channels,), jnp.float32) * 0.1,
        "gamma2": jnp.ones((out_channels,), jnp.float32),
        "beta2": jnp.zeros((out_channels,), jnp.float32),
    }


def conv_block_forward(x_nchw, params):
    """Full ConvBlock forward. Input/output layout: NCHW (PyTorch convention).
    Conv biases b1/b2 are intentionally unused -- training-mode BatchNorm cancels
    any per-channel constant exactly, so adding them would be dead work."""
    x = jnp.transpose(x_nchw, (0, 2, 3, 1))                          # NCHW -> NHWC
    y, _ = _conv_bn_relu_layer(x, params["w1"], params["gamma1"], params["beta1"],
                               out_dtype=jnp.bfloat16)               # padded + bf16 feeds layer 2
    z, cout = _conv_bn_relu_layer(y, params["w2"], params["gamma2"], params["beta2"],
                                  out_dtype=jnp.float32)
    z = z[..., :cout]                                                # single slice at the very end
    return jnp.transpose(z, (0, 3, 1, 2))                            # NHWC -> NCHW


# ---------------------------------------------------------------------------
# Pure-JAX f32 reference (includes the conv bias to demonstrate it cancels).
# ---------------------------------------------------------------------------
def _ref_layer(x_nchw, w, b, gamma, beta):
    w_oihw = jnp.transpose(w, (3, 2, 0, 1))  # (Cout, Cin, kh, kw)
    y = jax.lax.conv_general_dilated(
        x_nchw, w_oihw, window_strides=(1, 1), padding=((1, 1), (1, 1)),
        dimension_numbers=("NCHW", "OIHW", "NCHW"))
    y = y + b[None, :, None, None]
    mean = jnp.mean(y, axis=(0, 2, 3), keepdims=True)
    var = jnp.mean(jnp.square(y - mean), axis=(0, 2, 3), keepdims=True)
    y = (y - mean) * jax.lax.rsqrt(var + BN_EPS)
    y = y * gamma[None, :, None, None] + beta[None, :, None, None]
    return jnp.maximum(y, 0.0)


def conv_block_reference(x_nchw, params):
    y = _ref_layer(x_nchw, params["w1"], params["b1"], params["gamma1"], params["beta1"])
    y = _ref_layer(y, params["w2"], params["b2"], params["gamma2"], params["beta2"])
    return y


if __name__ == "__main__":
    key = jax.random.PRNGKey(0)
    kx, kp = jax.random.split(key)

    B, C_IN, C_OUT, H, W = 2, 4, 8, 16, 16
    x = jax.random.normal(kx, (B, C_IN, H, W), jnp.float32)
    params = init_conv_block_params(kp, C_IN, C_OUT)

    out = jax.block_until_ready(jax.jit(conv_block_forward)(x, params))
    ref = jax.block_until_ready(conv_block_reference(x, params))

    assert out.shape == (B, C_OUT, H, W), out.shape
    # Tolerance accounts for bf16 MXU operands / bf16 cached activations vs f32 reference.
    assert jnp.allclose(out, ref, rtol=5e-2, atol=5e-2), "mismatch vs reference"

    print("KERNEL_OK")
</pallas_src>

<mosaic_0001>
module attributes {stable_mosaic.version = 11 : i64} {
  func.func @conv_stats_kernel(%arg0: i32, %arg1: memref<1x256x36xbf16, #tpu.memory_space<vmem>>, %arg2: memref<1x36x128xbf16, #tpu.memory_space<vmem>>, %arg3: memref<1x256x128xbf16, #tpu.memory_space<vmem>>, %arg4: memref<1x1x128xf32, #tpu.memory_space<vmem>>, %arg5: memref<1x1x128xf32, #tpu.memory_space<vmem>>) attributes {dimension_semantics = [#tpu.dimension_semantics<parallel>], iteration_bounds = array<i64: 2>, scalar_prefetch = 0 : i64, scratch_operands = 0 : i64, tpu.core_type = #tpu.core_type<tc>, window_params = [{transform_indices = @transform_0, window_bounds = array<i64: 1, 256, 36>}, {pipeline_mode = #tpu.pipeline_mode<synchronous>, transform_indices = @transform_1, window_bounds = array<i64: 1, 36, 128>}, {transform_indices = @transform_2, window_bounds = array<i64: 1, 256, 128>}, {transform_indices = @transform_3, window_bounds = array<i64: 1, 1, 128>}, {transform_indices = @transform_4, window_bounds = array<i64: 1, 1, 128>}]} {
    %c0 = arith.constant 0 : index
    %c0_0 = arith.constant 0 : index
    %c0_1 = arith.constant 0 : index
    %0 = vector.load %arg1[%c0, %c0_0, %c0_1] : memref<1x256x36xbf16, #tpu.memory_space<vmem>>, vector<1x256x36xbf16>
    %1 = vector.shape_cast %0 : vector<1x256x36xbf16> to vector<256x36xbf16>
    %c0_2 = arith.constant 0 : index
    %c0_3 = arith.constant 0 : index
    %c0_4 = arith.constant 0 : index
    %2 = vector.load %arg2[%c0_2, %c0_3, %c0_4] : memref<1x36x128xbf16, #tpu.memory_space<vmem>>, vector<1x36x128xbf16>
    %3 = vector.shape_cast %2 : vector<1x36x128xbf16> to vector<36x128xbf16>
    %cst = arith.constant dense<0.000000e+00> : vector<256x128xf32>
    %4 = tpu.matmul %1, %3, %cst {dimension_numbers = #tpu.dot_dimension_numbers<[1], [0], [0], [1], [0, 0, 1, 1], [], []>} : vector<256x36xbf16>, vector<36x128xbf16>, vector<256x128xf32> -> vector<256x128xf32>
    %5 = arith.truncf %4 : vector<256x128xf32> to vector<256x128xbf16>
    %6 = vector.shape_cast %5 : vector<256x128xbf16> to vector<1x256x128xbf16>
    %c0_5 = arith.constant 0 : index
    %c0_6 = arith.constant 0 : index
    %c0_7 = arith.constant 0 : index
    %7 = vector.load %arg3[%c0_5, %c0_6, %c0_7] : memref<1x256x128xbf16, #tpu.memory_space<vmem>>, vector<1x256x128xbf16>
    tpu.vector_store %arg3[%c0_5, %c0_6, %c0_7], %6 {strides = array<i32>} : memref<1x256x128xbf16, #tpu.memory_space<vmem>>, vector<1x256x128xbf16>,
    %8 = arith.extf %5 : vector<256x128xbf16> to vector<256x128xf32>
    %cst_8 = arith.constant dense<0.000000e+00> : vector<128xf32>
    %9 = vector.multi_reduction <add>, %8, %cst_8 [0] : vector<256x128xf32> to vector<128xf32>
    %10 = vector.shape_cast %9 : vector<128xf32> to vector<1x128xf32>
    %cst_9 = arith.constant 3.906250e-03 : f32
    %11 = vector.broadcast %cst_9 : f32 to vector<1x128xf32>
    %12 = arith.mulf %10, %11 : vector<1x128xf32>
    %13 = vector.broadcast %12 : vector<1x128xf32> to vector<256x128xf32>
    %14 = arith.subf %8, %13 : vector<256x128xf32>
    %15 = vector.shape_cast %10 : vector<1x128xf32> to vector<1x1x128xf32>
    %c0_10 = arith.constant 0 : index
    %c0_11 = arith.constant 0 : index
    %c0_12 = arith.constant 0 : index
    %16 = vector.load %arg4[%c0_10, %c0_11, %c0_12] : memref<1x1x128xf32, #tpu.memory_space<vmem>>, vector<1x1x128xf32>
    tpu.vector_store %arg4[%c0_10, %c0_11, %c0_12], %15 {strides = array<i32>} : memref<1x1x128xf32, #tpu.memory_space<vmem>>, vector<1x1x128xf32>,
    %17 = arith.mulf %14, %14 : vector<256x128xf32>
    %cst_13 = arith.constant dense<0.000000e+00> : vector<128xf32>
    %18 = vector.multi_reduction <add>, %17, %cst_13 [0] : vector<256x128xf32> to vector<128xf32>
    %19 = vector.shape_cast %18 : vector<128xf32> to vector<1x128xf32>
    %20 = vector.shape_cast %19 : vector<1x128xf32> to vector<1x1x128xf32>
    %c0_14 = arith.constant 0 : index
    %c0_15 = arith.constant 0 : index
    %c0_16 = arith.constant 0 : index
    %21 = vector.load %arg5[%c0_14, %c0_15, %c0_16] : memref<1x1x128xf32, #tpu.memory_space<vmem>>, vector<1x1x128xf32>
    tpu.vector_store %arg5[%c0_14, %c0_15, %c0_16], %20 {strides = array<i32>} : memref<1x1x128xf32, #tpu.memory_space<vmem>>, vector<1x1x128xf32>,
    return
  }
  func.func @transform_0(%arg0: i32) -> (i32, i32, i32) {
    %c0_i32 = arith.constant 0 : i32
    %c0_i32_0 = arith.constant 0 : i32
    %c0_i32_1 = arith.constant 0 : i32
    return %arg0, %c0_i32, %c0_i32_0 : i32, i32, i32
  }
  func.func @transform_1(%arg0: i32) -> (i32, i32, i32) {
    %c0_i32 = arith.constant 0 : i32
    %c0_i32_0 = arith.constant 0 : i32
    %c0_i32_1 = arith.constant 0 : i32
    %c0_i32_2 = arith.constant 0 : i32
    return %c0_i32, %c0_i32_0, %c0_i32_1 : i32, i32, i32
  }
  func.func @transform_2(%arg0: i32) -> (i32, i32, i32) {
    %c0_i32 = arith.constant 0 : i32
    %c0_i32_0 = arith.constant 0 : i32
    %c0_i32_1 = arith.constant 0 : i32
    return %arg0, %c0_i32, %c0_i32_0 : i32, i32, i32
  }
  func.func @transform_3(%arg0: i32) -> (i32, i32, i32) {
    %c0_i32 = arith.constant 0 : i32
    %c0_i32_0 = arith.constant 0 : i32
    %c0_i32_1 = arith.constant 0 : i32
    return %arg0, %c0_i32, %c0_i32_0 : i32, i32, i32
  }
  func.func @transform_4(%arg0: i32) -> (i32, i32, i32) {
    %c0_i32 = arith.constant 0 : i32
    %c0_i32_0 = arith.constant 0 : i32
    %c0_i32_1 = arith.constant 0 : i32
    return %arg0, %c0_i32, %c0_i32_0 : i32, i32, i32
  }
}

module attributes {stable_mosaic.version = 11 : i64} {
  func.func @affine_relu_kernel(%arg0: i32, %arg1: memref<1x256x128xbf16, #tpu.memory_space<vmem>>, %arg2: memref<1x128xf32, #tpu.memory_space<vmem>>, %arg3: memref<1x128xf32, #tpu.memory_space<vmem>>, %arg4: memref<1x256x128xbf16, #tpu.memory_space<vmem>>) attributes {dimension_semantics = [#tpu.dimension_semantics<parallel>], iteration_bounds = array<i64: 2>, scalar_prefetch = 0 : i64, scratch_operands = 0 : i64, tpu.core_type = #tpu.core_type<tc>, window_params = [{transform_indices = @transform_0, window_bounds = array<i64: 1, 256, 128>}, {pipeline_mode = #tpu.pipeline_mode<synchronous>, transform_indices = @transform_1, window_bounds = array<i64: 1, 128>}, {pipeline_mode = #tpu.pipeline_mode<synchronous>, transform_indices = @transform_2, window_bounds = array<i64: 1, 128>}, {transform_indices = @transform_3, window_bounds = array<i64: 1, 256, 128>}]} {
    %c0 = arith.constant 0 : index
    %c0_0 = arith.constant 0 : index
    %c0_1 = arith.constant 0 : index
    %0 = vector.load %arg1[%c0, %c0_0, %c0_1] : memref<1x256x128xbf16, #tpu.memory_space<vmem>>, vector<1x256x128xbf16>
    %1 = arith.extf %0 : vector<1x256x128xbf16> to vector<1x256x128xf32>
    %c0_2 = arith.constant 0 : index
    %c0_3 = arith.constant 0 : index
    %2 = vector.load %arg2[%c0_2, %c0_3] : memref<1x128xf32, #tpu.memory_space<vmem>>, vector<1x128xf32>
    %3 = vector.shape_cast %2 : vector<1x128xf32> to vector<1x1x128xf32>
    %4 = vector.broadcast %3 : vector<1x1x128xf32> to vector<1x256x128xf32>
    %5 = arith.mulf %1, %4 : vector<1x256x128xf32>
    %c0_4 = arith.constant 0 : index
    %c0_5 = arith.constant 0 : index
    %6 = vector.load %arg3[%c0_4, %c0_5] : memref<1x128xf32, #tpu.memory_space<vmem>>, vector<1x128xf32>
    %7 = vector.shape_cast %6 : vector<1x128xf32> to vector<1x1x128xf32>
    %8 = vector.broadcast %7 : vector<1x1x128xf32> to vector<1x256x128xf32>
    %9 = arith.addf %5, %8 : vector<1x256x128xf32>
    %cst = arith.constant 0.000000e+00 : f32
    %10 = vector.broadcast %cst : f32 to vector<1x256x128xf32>
    %11 = arith.maximumf %9, %10 : vector<1x256x128xf32>
    %12 = arith.truncf %11 : vector<1x256x128xf32> to vector<1x256x128xbf16>
    %c0_6 = arith.constant 0 : index
    %c0_7 = arith.constant 0 : index
    %c0_8 = arith.constant 0 : index
    %13 = vector.load %arg4[%c0_6, %c0_7, %c0_8] : memref<1x256x128xbf16, #tpu.memory_space<vmem>>, vector<1x256x128xbf16>
    tpu.vector_store %arg4[%c0_6, %c0_7, %c0_8], %12 {strides = array<i32>} : memref<1x256x128xbf16, #tpu.memory_space<vmem>>, vector<1x256x128xbf16>,
    return
  }
  func.func @transform_0(%arg0: i32) -> (i32, i32, i32) {
    %c0_i32 = arith.constant 0 : i32
    %c0_i32_0 = arith.constant 0 : i32
    %c0_i32_1 = arith.constant 0 : i32
    return %arg0, %c0_i32, %c0_i32_0 : i32, i32, i32
  }
  func.func @transform_1(%arg0: i32) -> (i32, i32) {
    %c0_i32 = arith.constant 0 : i32
    %c0_i32_0 = arith.constant 0 : i32
    %c0_i32_1 = arith.constant 0 : i32
    return %c0_i32, %c0_i32_0 : i32, i32
  }
  func.func @transform_2(%arg0: i32) -> (i32, i32) {
    %c0_i32 = arith.constant 0 : i32
    %c0_i32_0 = arith.constant 0 : i32
    %c0_i32_1 = arith.constant 0 : i32
    return %c0_i32, %c0_i32_0 : i32, i32
  }
  func.func @transform_3(%arg0: i32) -> (i32, i32, i32) {
    %c0_i32 = arith.constant 0 : i32
    %c0_i32_0 = arith.constant 0 : i32
    %c0_i32_1 = arith.constant 0 : i32
    return %arg0, %c0_i32, %c0_i32_0 : i32, i32, i32
  }
}

module attributes {stable_mosaic.version = 11 : i64} {
  func.func @conv_stats_kernel(%arg0: i32, %arg1: memref<1x18x16x384xbf16, #tpu.memory_space<vmem>>, %arg2: memref<3x384x128xbf16, #tpu.memory_space<vmem>>, %arg3: memref<1x256x128xbf16, #tpu.memory_space<vmem>>, %arg4: memref<1x1x128xf32, #tpu.memory_space<vmem>>, %arg5: memref<1x1x128xf32, #tpu.memory_space<vmem>>) attributes {dimension_semantics = [#tpu.dimension_semantics<parallel>], iteration_bounds = array<i64: 2>, scalar_prefetch = 0 : i64, scratch_operands = 0 : i64, tpu.core_type = #tpu.core_type<tc>, window_params = [{transform_indices = @transform_0, window_bounds = array<i64: 1, 18, 16, 384>}, {pipeline_mode = #tpu.pipeline_mode<synchronous>, transform_indices = @transform_1, window_bounds = array<i64: 3, 384, 128>}, {transform_indices = @transform_2, window_bounds = array<i64: 1, 256, 128>}, {transform_indices = @transform_3, window_bounds = array<i64: 1, 1, 128>}, {transform_indices = @transform_4, window_bounds = array<i64: 1, 1, 128>}]} {
    %c0 = arith.constant 0 : index
    %c0_0 = arith.constant 0 : index
    %c0_1 = arith.constant 0 : index
    %c0_2 = arith.constant 0 : index
    %0 = vector.load %arg1[%c0, %c0_0, %c0_1, %c0_2] : memref<1x18x16x384xbf16, #tpu.memory_space<vmem>>, vector<1x18x16x384xbf16>
    %1 = vector.shape_cast %0 : vector<1x18x16x384xbf16> to vector<18x16x384xbf16>
    %2 = vector.extract_strided_slice %1 {offsets = [0, 0, 0], sizes = [16, 16, 384], strides = [1, 1, 1]} : vector<18x16x384xbf16> to vector<16x16x384xbf16>
    %3 = vector.shape_cast %2 : vector<16x16x384xbf16> to vector<256x384xbf16>
    %c0_3 = arith.constant 0 : index
    %c0_4 = arith.constant 0 : index
    %c0_5 = arith.constant 0 : index
    %4 = vector.load %arg2[%c0_3, %c0_4, %c0_5] : memref<3x384x128xbf16, #tpu.memory_space<vmem>>, vector<1x384x128xbf16>
    %5 = vector.shape_cast %4 : vector<1x384x128xbf16> to vector<384x128xbf16>
    %cst = arith.constant dense<0.000000e+00> : vector<256x128xf32>
    %6 = tpu.matmul %3, %5, %cst {dimension_numbers = #tpu.dot_dimension_numbers<[1], [0], [0], [1], [0, 0, 1, 1], [], []>} : vector<256x384xbf16>, vector<384x128xbf16>, vector<256x128xf32> -> vector<256x128xf32>
    %7 = vector.extract_strided_slice %1 {offsets = [1, 0, 0], sizes = [16, 16, 384], strides = [1, 1, 1]} : vector<18x16x384xbf16> to vector<16x16x384xbf16>
    %8 = vector.shape_cast %7 : vector<16x16x384xbf16> to vector<256x384xbf16>
    %c1 = arith.constant 1 : index
    %c0_6 = arith.constant 0 : index
    %c0_7 = arith.constant 0 : index
    %9 = vector.load %arg2[%c1, %c0_6, %c0_7] : memref<3x384x128xbf16, #tpu.memory_space<vmem>>, vector<1x384x128xbf16>
    %10 = vector.shape_cast %9 : vector<1x384x128xbf16> to vector<384x128xbf16>
    %cst_8 = arith.constant dense<0.000000e+00> : vector<256x128xf32>
    %11 = tpu.matmul %8, %10, %cst_8 {dimension_numbers = #tpu.dot_dimension_numbers<[1], [0], [0], [1], [0, 0, 1, 1], [], []>} : vector<256x384xbf16>, vector<384x128xbf16>, vector<256x128xf32> -> vector<256x128xf32>
    %12 = arith.addf %6, %11 : vector<256x128xf32>
    %13 = vector.extract_strided_slice %1 {offsets = [2, 0, 0], sizes = [16, 16, 384], strides = [1, 1, 1]} : vector<18x16x384xbf16> to vector<16x16x384xbf16>
    %14 = vector.shape_cast %13 : vector<16x16x384xbf16> to vector<256x384xbf16>
    %c2 = arith.constant 2 : index
    %c0_9 = arith.constant 0 : index
    %c0_10 = arith.constant 0 : index
    %15 = vector.load %arg2[%c2, %c0_9, %c0_10] : memref<3x384x128xbf16, #tpu.memory_space<vmem>>, vector<1x384x128xbf16>
    %16 = vector.shape_cast %15 : vector<1x384x128xbf16> to vector<384x128xbf16>
    %cst_11 = arith.constant dense<0.000000e+00> : vector<256x128xf32>
    %17 = tpu.matmul %14, %16, %cst_11 {dimension_numbers = #tpu.dot_dimension_numbers<[1], [0], [0], [1], [0, 0, 1, 1], [], []>} : vector<256x384xbf16>, vector<384x128xbf16>, vector<256x128xf32> -> vector<256x128xf32>
    %18 = arith.addf %12, %17 : vector<256x128xf32>
    %19 = arith.truncf %18 : vector<256x128xf32> to vector<256x128xbf16>
    %20 = vector.shape_cast %19 : vector<256x128xbf16> to vector<1x256x128xbf16>
    %c0_12 = arith.constant 0 : index
    %c0_13 = arith.constant 0 : index
    %c0_14 = arith.constant 0 : index
    %21 = vector.load %arg3[%c0_12, %c0_13, %c0_14] : memref<1x256x128xbf16, #tpu.memory_space<vmem>>, vector<1x256x128xbf16>
    tpu.vector_store %arg3[%c0_12, %c0_13, %c0_14], %20 {strides = array<i32>} : memref<1x256x128xbf16, #tpu.memory_space<vmem>>, vector<1x256x128xbf16>,
    %22 = arith.extf %19 : vector<256x128xbf16> to vector<256x128xf32>
    %cst_15 = arith.constant dense<0.000000e+00> : vector<128xf32>
    %23 = vector.multi_reduction <add>, %22, %cst_15 [0] : vector<256x128xf32> to vector<128xf32>
    %24 = vector.shape_cast %23 : vector<128xf32> to vector<1x128xf32>
    %cst_16 = arith.constant 3.906250e-03 : f32
    %25 = vector.broadcast %cst_16 : f32 to vector<1x128xf32>
    %26 = arith.mulf %24, %25 : vector<1x128xf32>
    %27 = vector.broadcast %26 : vector<1x128xf32> to vector<256x128xf32>
    %28 = arith.subf %22, %27 : vector<256x128xf32>
    %29 = vector.shape_cast %24 : vector<1x128xf32> to vector<1x1x128xf32>
    %c0_17 = arith.constant 0 : index
    %c0_18 = arith.constant 0 : index
    %c0_19 = arith.constant 0 : index
    %30 = vector.load %arg4[%c0_17, %c0_18, %c0_19] : memref<1x1x128xf32, #tpu.memory_space<vmem>>, vector<1x1x128xf32>
    tpu.vector_store %arg4[%c0_17, %c0_18, %c0_19], %29 {strides = array<i32>} : memref<1x1x128xf32, #tpu.memory_space<vmem>>, vector<1x1x128xf32>,
    %31 = arith.mulf %28, %28 : vector<256x128xf32>
    %cst_20 = arith.constant dense<0.000000e+00> : vector<128xf32>
    %32 = vector.multi_reduction <add>, %31, %cst_20 [0] : vector<256x128xf32> to vector<128xf32>
    %33 = vector.shape_cast %32 : vector<128xf32> to vector<1x128xf32>
    %34 = vector.shape_cast %33 : vector<1x128xf32> to vector<1x1x128xf32>
    %c0_21 = arith.constant 0 : index
    %c0_22 = arith.constant 0 : index
    %c0_23 = arith.constant 0 : index
    %35 = vector.load %arg5[%c0_21, %c0_22, %c0_23] : memref<1x1x128xf32, #tpu.memory_space<vmem>>, vector<1x1x128xf32>
    tpu.vector_store %arg5[%c0_21, %c0_22, %c0_23], %34 {strides = array<i32>} : memref<1x1x128xf32, #tpu.memory_space<vmem>>, vector<1x1x128xf32>,
    return
  }
  func.func @transform_0(%arg0: i32) -> (i32, i32, i32, i32) {
    %c0_i32 = arith.constant 0 : i32
    %c0_i32_0 = arith.constant 0 : i32
    %c0_i32_1 = arith.constant 0 : i32
    %c0_i32_2 = arith.constant 0 : i32
    return %arg0, %c0_i32, %c0_i32_0, %c0_i32_1 : i32, i32, i32, i32
  }
  func.func @transform_1(%arg0: i32) -> (i32, i32, i32) {
    %c0_i32 = arith.constant 0 : i32
    %c0_i32_0 = arith.constant 0 : i32
    %c0_i32_1 = arith.constant 0 : i32
    %c0_i32_2 = arith.constant 0 : i32
    return %c0_i32, %c0_i32_0, %c0_i32_1 : i32, i32, i32
  }
  func.func @transform_2(%arg0: i32) -> (i32, i32, i32) {
    %c0_i32 = arith.constant 0 : i32
    %c0_i32_0 = arith.constant 0 : i32
    %c0_i32_1 = arith.constant 0 : i32
    return %arg0, %c0_i32, %c0_i32_0 : i32, i32, i32
  }
  func.func @transform_3(%arg0: i32) -> (i32, i32, i32) {
    %c0_i32 = arith.constant 0 : i32
    %c0_i32_0 = arith.constant 0 : i32
    %c0_i32_1 = arith.constant 0 : i32
    return %arg0, %c0_i32, %c0_i32_0 : i32, i32, i32
  }
  func.func @transform_4(%arg0: i32) -> (i32, i32, i32) {
    %c0_i32 = arith.constant 0 : i32
    %c0_i32_0 = arith.constant 0 : i32
    %c0_i32_1 = arith.constant 0 : i32
    return %arg0, %c0_i32, %c0_i32_0 : i32, i32, i32
  }
}

module attributes {stable_mosaic.version = 11 : i64} {
  func.func @affine_relu_kernel(%arg0: i32, %arg1: memref<1x256x128xbf16, #tpu.memory_space<vmem>>, %arg2: memref<1x128xf32, #tpu.memory_space<vmem>>, %arg3: memref<1x128xf32, #tpu.memory_space<vmem>>, %arg4: memref<1x256x128xf32, #tpu.memory_space<vmem>>) attributes {dimension_semantics = [#tpu.dimension_semantics<parallel>], iteration_bounds = array<i64: 2>, scalar_prefetch = 0 : i64, scratch_operands = 0 : i64, tpu.core_type = #tpu.core_type<tc>, window_params = [{transform_indices = @transform_0, window_bounds = array<i64: 1, 256, 128>}, {pipeline_mode = #tpu.pipeline_mode<synchronous>, transform_indices = @transform_1, window_bounds = array<i64: 1, 128>}, {pipeline_mode = #tpu.pipeline_mode<synchronous>, transform_indices = @transform_2, window_bounds = array<i64: 1, 128>}, {transform_indices = @transform_3, window_bounds = array<i64: 1, 256, 128>}]} {
    %c0 = arith.constant 0 : index
    %c0_0 = arith.constant 0 : index
    %c0_1 = arith.constant 0 : index
    %0 = vector.load %arg1[%c0, %c0_0, %c0_1] : memref<1x256x128xbf16, #tpu.memory_space<vmem>>, vector<1x256x128xbf16>
    %1 = arith.extf %0 : vector<1x256x128xbf16> to vector<1x256x128xf32>
    %c0_2 = arith.constant 0 : index
    %c0_3 = arith.constant 0 : index
    %2 = vector.load %arg2[%c0_2, %c0_3] : memref<1x128xf32, #tpu.memory_space<vmem>>, vector<1x128xf32>
    %3 = vector.shape_cast %2 : vector<1x128xf32> to vector<1x1x128xf32>
    %4 = vector.broadcast %3 : vector<1x1x128xf32> to vector<1x256x128xf32>
    %5 = arith.mulf %1, %4 : vector<1x256x128xf32>
    %c0_4 = arith.constant 0 : index
    %c0_5 = arith.constant 0 : index
    %6 = vector.load %arg3[%c0_4, %c0_5] : memref<1x128xf32, #tpu.memory_space<vmem>>, vector<1x128xf32>
    %7 = vector.shape_cast %6 : vector<1x128xf32> to vector<1x1x128xf32>
    %8 = vector.broadcast %7 : vector<1x1x128xf32> to vector<1x256x128xf32>
    %9 = arith.addf %5, %8 : vector<1x256x128xf32>
    %cst = arith.constant 0.000000e+00 : f32
    %10 = vector.broadcast %cst : f32 to vector<1x256x128xf32>
    %11 = arith.maximumf %9, %10 : vector<1x256x128xf32>
    %c0_6 = arith.constant 0 : index
    %c0_7 = arith.constant 0 : index
    %c0_8 = arith.constant 0 : index
    %12 = vector.load %arg4[%c0_6, %c0_7, %c0_8] : memref<1x256x128xf32, #tpu.memory_space<vmem>>, vector<1x256x128xf32>
    tpu.vector_store %arg4[%c0_6, %c0_7, %c0_8], %11 {strides = array<i32>} : memref<1x256x128xf32, #tpu.memory_space<vmem>>, vector<1x256x128xf32>,
    return
  }
  func.func @transform_0(%arg0: i32) -> (i32, i32, i32) {
    %c0_i32 = arith.constant 0 : i32
    %c0_i32_0 = arith.constant 0 : i32
    %c0_i32_1 = arith.constant 0 : i32
    return %arg0, %c0_i32, %c0_i32_0 : i32, i32, i32
  }
  func.func @transform_1(%arg0: i32) -> (i32, i32) {
    %c0_i32 = arith.constant 0 : i32
    %c0_i32_0 = arith.constant 0 : i32
    %c0_i32_1 = arith.constant 0 : i32
    return %c0_i32, %c0_i32_0 : i32, i32
  }
  func.func @transform_2(%arg0: i32) -> (i32, i32) {
    %c0_i32 = arith.constant 0 : i32
    %c0_i32_0 = arith.constant 0 : i32
    %c0_i32_1 = arith.constant 0 : i32
    return %c0_i32, %c0_i32_0 : i32, i32
  }
  func.func @transform_3(%arg0: i32) -> (i32, i32, i32) {
    %c0_i32 = arith.constant 0 : i32
    %c0_i32_0 = arith.constant 0 : i32
    %c0_i32_1 = arith.constant 0 : i32
    return %arg0, %c0_i32, %c0_i32_0 : i32, i32, i32
  }
}

</mosaic_0001>

<bundles_post_ra>
// kernel: conv_block_forward.5
= control target key start
LH: loop header
LB: loop body
LE: loop exit
PB: predicated region body
PF: predicated region fallthrough
CT: control target
= control target key end

     0   :  { %s849_s12 = smov 0   ;;  %s983_s0 = inlined_call_operand.vmem [shape: bf16[2,256,128], index: 0, kind: input, shape index: {}]   ;;  %s984_s1 = inlined_call_operand.vmem [shape: f32[1,128], index: 1, kind: input, shape index: {}]   ;;  %s985_s2 = inlined_call_operand.vmem [shape: f32[1,128], index: 2, kind: input, shape index: {}]   ;;  %s986_s3 = inlined_call_operand.vmem [shape: bf16[2,256,128], index: 3, kind: output, shape index: {}]  }
   0x1 LB: > { %s560_s13 = sadd.s32 4294967295, %s827_s12   ;;  %p564_p0 = scmp.ge.s32.totalorder %s827_s12, 1  ;;  %s827_s12 = sphi %s849_s12, %s13_s12  }
   0x2   : > { %p137_p1 = scmp.lt.s32.totalorder %s827_s12, 3 }
   0x4   : > { %p138_p2 = pnand %p564_p0, %p137_p1 }
   0x5   : > { %p161_p3 = scmp.lt.s32.totalorder (!%p138_p2), %s560_s13, 1 }
   0x6   : > { %141 = sbr.rel (%p138_p2) target bundleno = 57 (0x39), region = 32 }
   0xb   : > { %s988_s13 = smov (!%p161_p3, %s560_s13), 1  ;;  %v870_v0 = vld [vmem:[%s984_s1] ss:$0 sm:$0xff] }
   0xc   : > { %s605_s14 = sshll.u32 %s988_s13, 7  ;;  %v879_v9 = vld [vmem:[%s985_s2] ss:$0 sm:$0xff] }
   0xd   : > { %s865_s17 = scalar_lea.vmem %s983_s0, %s605_s14  ;;  %s904_s24 = scalar_lea.vmem %s986_s3, %s605_s14 }
   0xe   : > { %v640_v1 = vld [vmem:[%s865_s17] sm:$0xff]   ;;  %v783_v2 = vld [vmem:[%s865_s17 + $0x8] sm:$0xff]   ;;  %v784_v3 = vld [vmem:[%s865_s17 + $0x10] sm:$0xff]  }
   0xf   : > { %v641_v4 = vunpack.c.l.bf16 %v640_v1  ;;  %v642_v5 = vunpack.c.h.bf16 %v640_v1  ;;  %v645_v6 = vunpack.c.l.bf16 %v783_v2  ;;  %v646_v7 = vunpack.c.h.bf16 %v783_v2  ;;  %v785_v8 = vld [vmem:[%s865_s17 + $0x18] sm:$0xff]   ;;  %v786_v30 = vld [vmem:[%s865_s17 + $0x20] sm:$0xff]   ;;  %v787_v35 = vld [vmem:[%s865_s17 + $0x28] sm:$0xff]  }
  0x10   : > { %v649_v10 = vunpack.c.l.bf16 %v784_v3  ;;  %v650_v11 = vunpack.c.h.bf16 %v784_v3  ;;  %v653_v12 = vunpack.c.l.bf16 %v785_v8  ;;  %v654_v13 = vunpack.c.h.bf16 %v785_v8  ;;  %v788_v40 = vld [vmem:[%s865_s17 + $0x30] sm:$0xff]   ;;  %v789_v45 = vld [vmem:[%s865_s17 + $0x38] sm:$0xff]   ;;  %v790_v3 = vld [vmem:[%s865_s17 + $0x40] sm:$0xff]  }
  0x11   : > { %v242_v14 = vmul.f32 %v641_v4, %v870_v0  ;;  %v243_v15 = vmul.f32 %v642_v5, %v870_v0  ;;  %v244_v16 = vmul.f32 %v645_v6, %v870_v0  ;;  %v245_v17 = vmul.f32 %v646_v7, %v870_v0 }
  0x12   : > { %v246_v18 = vmul.f32 %v649_v10, %v870_v0  ;;  %v247_v19 = vmul.f32 %v650_v11, %v870_v0  ;;  %v248_v20 = vmul.f32 %v653_v12, %v870_v0  ;;  %v249_v21 = vmul.f32 %v654_v13, %v870_v0  ;;  %v791_v13 = vld [vmem:[%s865_s17 + $0x48] sm:$0xff]  }
  0x13   : > { %v281_v22 = vadd.f32 %v879_v9, %v242_v14  ;;  %v282_v23 = vadd.f32 %v879_v9, %v243_v15  ;;  %v283_v24 = vadd.f32 %v879_v9, %v244_v16  ;;  %v284_v25 = vadd.f32 %v879_v9, %v245_v17 }
  0x14   : > { %v285_v26 = vadd.f32 %v879_v9, %v246_v18  ;;  %v286_v27 = vadd.f32 %v879_v9, %v247_v19  ;;  %v287_v28 = vadd.f32 %v879_v9, %v248_v20  ;;  %v288_v29 = vadd.f32 %v879_v9, %v249_v21  ;;  %v792_v18 = vld [vmem:[%s865_s17 + $0x50] sm:$0xff]  }
  0x15   : > { %v313_v31 = vmax.f32 %v281_v22, 0.0  ;;  %v314_v32 = vmax.f32 %v282_v23, 0.0  ;;  %v315_v33 = vmax.f32 %v283_v24, 0.0  ;;  %v316_v34 = vmax.f32 %v284_v25, 0.0  ;;  %v793_v23 = vld [vmem:[%s865_s17 + $0x58] sm:$0xff]  }
  0x16   : > { %v317_v36 = vmax.f32 %v285_v26, 0.0  ;;  %v318_v37 = vmax.f32 %v286_v27, 0.0  ;;  %v319_v38 = vmax.f32 %v287_v28, 0.0  ;;  %v320_v39 = vmax.f32 %v288_v29, 0.0 }
  0x17   : > { %v706_v41 = vpack.c.bf16 %v314_v32, %v313_v31  ;;  %v711_v42 = vpack.c.bf16 %v316_v34, %v315_v33  ;;  %v657_v43 = vunpack.c.l.bf16 %v786_v30  ;;  %v658_v44 = vunpack.c.h.bf16 %v786_v30 }
  0x18   : > { %v716_v46 = vpack.c.bf16 %v318_v37, %v317_v36  ;;  %v721_v47 = vpack.c.bf16 %v320_v39, %v319_v38  ;;  %v661_v48 = vunpack.c.l.bf16 %v787_v35  ;;  %v662_v49 = vunpack.c.h.bf16 %v787_v35 }
  0x19   : > { %707 = vst [vmem:[%s904_s24] sm:$0xff] %v706_v41   ;;  %798 = vst [vmem:[%s904_s24 + $0x8] sm:$0xff] %v711_v42   ;;  %v250_v50 = vmul.f32 %v657_v43, %v870_v0  ;;  %v251_v51 = vmul.f32 %v658_v44, %v870_v0  ;;  %v665_v52 = vunpack.c.l.bf16 %v788_v40  ;;  %v666_v53 = vunpack.c.h.bf16 %v788_v40  ;;  %v794_v40 = vld [vmem:[%s865_s17 + $0x60] sm:$0xff]  }
  0x1a   : > { %799 = vst [vmem:[%s904_s24 + $0x10] sm:$0xff] %v716_v46   ;;  %800 = vst [vmem:[%s904_s24 + $0x18] sm:$0xff] %v721_v47   ;;  %v252_v54 = vmul.f32 %v661_v48, %v870_v0  ;;  %v253_v55 = vmul.f32 %v662_v49, %v870_v0  ;;  %v669_v56 = vunpack.c.l.bf16 %v789_v45  ;;  %v670_v57 = vunpack.c.h.bf16 %v789_v45 }
  0x1b   : > { %v289_v58 = vadd.f32 %v879_v9, %v250_v50  ;;  %v290_v59 = vadd.f32 %v879_v9, %v251_v51  ;;  %v254_v60 = vmul.f32 %v665_v52, %v870_v0  ;;  %v255_v61 = vmul.f32 %v666_v53, %v870_v0  ;;  %v795_v53 = vld [vmem:[%s865_s17 + $0x68] sm:$0xff]  }
  0x1c   : > { %v291_v62 = vadd.f32 %v879_v9, %v252_v54  ;;  %v292_v63 = vadd.f32 %v879_v9, %v253_v55  ;;  %v256_v1 = vmul.f32 %v669_v56, %v870_v0  ;;  %v257_v2 = vmul.f32 %v670_v57, %v870_v0 }
  0x1d   : > { %v321_v4 = vmax.f32 %v289_v58, 0.0  ;;  %v322_v5 = vmax.f32 %v290_v59, 0.0  ;;  %v293_v6 = vadd.f32 %v879_v9, %v254_v60  ;;  %v294_v7 = vadd.f32 %v879_v9, %v255_v61  ;;  %v796_v58 = vld [vmem:[%s865_s17 + $0x70] sm:$0xff]  }
  0x1e   : > { %v323_v8 = vmax.f32 %v291_v62, 0.0  ;;  %v324_v10 = vmax.f32 %v292_v63, 0.0  ;;  %v295_v11 = vadd.f32 %v879_v9, %v256_v1  ;;  %v296_v12 = vadd.f32 %v879_v9, %v257_v2  ;;  %v797_v63 = vld [vmem:[%s865_s17 + $0x78] sm:$0xff]  }
  0x1f   : > { %v726_v14 = vpack.c.bf16 %v322_v5, %v321_v4  ;;  %v325_v15 = vmax.f32 %v293_v6, 0.0  ;;  %v326_v16 = vmax.f32 %v294_v7, 0.0  ;;  %v673_v17 = vunpack.c.l.bf16 %v790_v3 }
  0x20   : > { %v731_v19 = vpack.c.bf16 %v324_v10, %v323_v8  ;;  %v327_v20 = vmax.f32 %v295_v11, 0.0  ;;  %v328_v21 = vmax.f32 %v296_v12, 0.0  ;;  %v674_v22 = vunpack.c.h.bf16 %v790_v3 }
  0x21   : > { %801 = vst [vmem:[%s904_s24 + $0x20] sm:$0xff] %v726_v14   ;;  %v736_v24 = vpack.c.bf16 %v326_v16, %v325_v15  ;;  %v258_v25 = vmul.f32 %v673_v17, %v870_v0  ;;  %v677_v26 = vunpack.c.l.bf16 %v791_v13  ;;  %v678_v27 = vunpack.c.h.bf16 %v791_v13 }
  0x22   : > { %802 = vst [vmem:[%s904_s24 + $0x28] sm:$0xff] %v731_v19   ;;  %v741_v28 = vpack.c.bf16 %v328_v21, %v327_v20  ;;  %v259_v29 = vmul.f32 %v674_v22, %v870_v0  ;;  %v681_v30 = vunpack.c.l.bf16 %v792_v18  ;;  %v682_v31 = vunpack.c.h.bf16 %v792_v18 }
  0x23   : > { %803 = vst [vmem:[%s904_s24 + $0x30] sm:$0xff] %v736_v24   ;;  %v297_v32 = vadd.f32 %v879_v9, %v258_v25  ;;  %v260_v33 = vmul.f32 %v677_v26, %v870_v0  ;;  %v261_v34 = vmul.f32 %v678_v27, %v870_v0  ;;  %v685_v35 = vunpack.c.l.bf16 %v793_v23 }
  0x24   : > { %804 = vst [vmem:[%s904_s24 + $0x38] sm:$0xff] %v741_v28   ;;  %v298_v36 = vadd.f32 %v879_v9, %v259_v29  ;;  %v262_v37 = vmul.f32 %v681_v30, %v870_v0  ;;  %v263_v38 = vmul.f32 %v682_v31, %v870_v0  ;;  %v686_v39 = vunpack.c.h.bf16 %v793_v23 }
  0x25   : > { %v329_v41 = vmax.f32 %v297_v32, 0.0  ;;  %v299_v42 = vadd.f32 %v879_v9, %v260_v33  ;;  %v300_v43 = vadd.f32 %v879_v9, %v261_v34  ;;  %v264_v44 = vmul.f32 %v685_v35, %v870_v0 }
  0x26   : > { %v330_v45 = vmax.f32 %v298_v36, 0.0  ;;  %v301_v46 = vadd.f32 %v879_v9, %v262_v37  ;;  %v302_v47 = vadd.f32 %v879_v9, %v263_v38  ;;  %v265_v48 = vmul.f32 %v686_v39, %v870_v0 }
  0x27   : > { %v331_v49 = vmax.f32 %v299_v42, 0.0  ;;  %v332_v50 = vmax.f32 %v300_v43, 0.0  ;;  %v303_v51 = vadd.f32 %v879_v9, %v264_v44  ;;  %v689_v52 = vunpack.c.l.bf16 %v794_v40 }
  0x28   : > { %v746_v54 = vpack.c.bf16 %v330_v45, %v329_v41  ;;  %v333_v55 = vmax.f32 %v301_v46, 0.0  ;;  %v334_v56 = vmax.f32 %v302_v47, 0.0  ;;  %v304_v57 = vadd.f32 %v879_v9, %v265_v48 }
  0x29   : > { %v751_v59 = vpack.c.bf16 %v332_v50, %v331_v49  ;;  %v335_v60 = vmax.f32 %v303_v51, 0.0  ;;  %v690_v61 = vunpack.c.h.bf16 %v794_v40  ;;  %v266_v62 = vmul.f32 %v689_v52, %v870_v0 }
  0x2a   : > { %805 = vst [vmem:[%s904_s24 + $0x40] sm:$0xff] %v746_v54   ;;  %v756_v1 = vpack.c.bf16 %v334_v56, %v333_v55  ;;  %v336_v2 = vmax.f32 %v304_v57, 0.0  ;;  %v693_v3 = vunpack.c.l.bf16 %v795_v53  ;;  %v694_v4 = vunpack.c.h.bf16 %v795_v53 }
  0x2b   : > { %806 = vst [vmem:[%s904_s24 + $0x48] sm:$0xff] %v751_v59   ;;  %v267_v5 = vmul.f32 %v690_v61, %v870_v0  ;;  %v305_v6 = vadd.f32 %v879_v9, %v266_v62  ;;  %v697_v7 = vunpack.c.l.bf16 %v796_v58  ;;  %v698_v8 = vunpack.c.h.bf16 %v796_v58 }
  0x2c   : > { %807 = vst [vmem:[%s904_s24 + $0x50] sm:$0xff] %v756_v1   ;;  %v761_v10 = vpack.c.bf16 %v336_v2, %v335_v60  ;;  %v268_v11 = vmul.f32 %v693_v3, %v870_v0  ;;  %v269_v12 = vmul.f32 %v694_v4, %v870_v0  ;;  %v701_v13 = vunpack.c.l.bf16 %v797_v63 }
  0x2d   : > { %v306_v14 = vadd.f32 %v879_v9, %v267_v5  ;;  %v337_v15 = vmax.f32 %v305_v6, 0.0  ;;  %v270_v16 = vmul.f32 %v697_v7, %v870_v0  ;;  %v271_v17 = vmul.f32 %v698_v8, %v870_v0 }
  0x2e   : > { %808 = vst [vmem:[%s904_s24 + $0x58] sm:$0xff] %v761_v10   ;;  %v307_v18 = vadd.f32 %v879_v9, %v268_v11  ;;  %v308_v19 = vadd.f32 %v879_v9, %v269_v12  ;;  %v702_v20 = vunpack.c.h.bf16 %v797_v63  ;;  %v272_v21 = vmul.f32 %v701_v13, %v870_v0 }
  0x2f   : > { %v338_v22 = vmax.f32 %v306_v14, 0.0  ;;  %v309_v23 = vadd.f32 %v879_v9, %v270_v16  ;;  %v310_v24 = vadd.f32 %v879_v9, %v271_v17 }
  0x30   : > { %v339_v25 = vmax.f32 %v307_v18, 0.0  ;;  %v340_v26 = vmax.f32 %v308_v19, 0.0  ;;  %v273_v27 = vmul.f32 %v702_v20, %v870_v0  ;;  %v311_v28 = vadd.f32 %v879_v9, %v272_v21 }
  0x31   : > { %v766_v29 = vpack.c.bf16 %v338_v22, %v337_v15  ;;  %v341_v30 = vmax.f32 %v309_v23, 0.0  ;;  %v342_v31 = vmax.f32 %v310_v24, 0.0 }
  0x32   : > { %v771_v32 = vpack.c.bf16 %v340_v26, %v339_v25  ;;  %v312_v33 = vadd.f32 %v879_v9, %v273_v27  ;;  %v343_v34 = vmax.f32 %v311_v28, 0.0 }
  0x33   : > { %809 = vst [vmem:[%s904_s24 + $0x60] sm:$0xff] %v766_v29   ;;  %v776_v35 = vpack.c.bf16 %v342_v31, %v341_v30 }
  0x34   : > { %810 = vst [vmem:[%s904_s24 + $0x68] sm:$0xff] %v771_v32   ;;  %v344_v36 = vmax.f32 %v312_v33, 0.0 }
  0x35   : > { %811 = vst [vmem:[%s904_s24 + $0x70] sm:$0xff] %v776_v35  }
  0x36   : > { %v781_v37 = vpack.c.bf16 %v344_v36, %v343_v34 }
  0x38   : > { %812 = vst [vmem:[%s904_s24 + $0x78] sm:$0xff] %v781_v37  }
  0x39 PF: > { %s13_s12 = sadd.s32 1, %s827_s12  }
  0x3a   : > { %p10_p4 = scmp.ge.s32.totalorder %s13_s12, 4  }
  0x3c   :  { %12 = sbr.rel (!%p10_p4) target bundleno = 1 (0x1), region = 62 }

// kernel: conv_block_forward.4
= control target key start
LH: loop header
LB: loop body
LE: loop exit
PB: predicated region body
PF: predicated region fallthrough
CT: control target
= control target key end

     0   :  { %s1332_s15 = smov 0   ;;  %s1667_s0 = inlined_call_operand.vmem [shape: bf16[2,256,36], index: 0, kind: input, shape index: {}]   ;;  %s1668_s1 = inlined_call_operand.vmem [shape: bf16[1,36,128], index: 1, kind: input, shape index: {}]   ;;  %s1669_s2 = inlined_call_operand.vmem [shape: bf16[2,256,128], index: 2, kind: output, shape index: {0}]   ;;  %s1670_s3 = inlined_call_operand.vmem [shape: f32[2,1,128], index: 3, kind: output, shape index: {1}]   ;;  %s1671_s4 = inlined_call_operand.vmem [shape: f32[2,1,128], index: 4, kind: output, shape index: {2}]  }
   0x1 LB: > { %s1000_s16 = sadd.s32 4294967295, %s1305_s15   ;;  %p1004_p0 = scmp.ge.s32.totalorder %s1305_s15, 1  ;;  %s1305_s15 = sphi %s1332_s15, %s15_s15  }
   0x2   : > { %p167_p1 = scmp.lt.s32.totalorder %s1305_s15, 3 }
   0x4   : > { %p168_p2 = pnand %p1004_p0, %p167_p1 }
   0x5   : > { %p199_p3 = scmp.lt.s32.totalorder (!%p168_p2), %s1000_s16, 1 }
   0x6   : > { %171 = sbr.rel (%p168_p2) target bundleno = 384 (0x180), region = 28 }
   0xb   : > { %v1280_v0 = vld [vmem:[%s1668_s1 + $0x10] ss:$0 sps:$4 sm:$0x33]   ;;  %vm397_vm0 = vcmask 1041408   ;;  %v1281_v1 = vld [vmem:[%s1668_s1 + $0x8] sm:$0xff]   ;;  %s1673_s16 = smov (!%p199_p3, %s1000_s16), 1 }
   0xc   : > { %1270 = vmatprep.subr.msk.bf16.mxu0 %vm397_vm0, %v1280_v0  ;;  %v399_v2 = vsel %vm397_vm0, %v1280_v0, 0  ;;  %1271 = vmatprep.subr.msk.bf16.mxu1 %vm397_vm0, %v1280_v0  ;;  %v1282_v3 = vld [vmem:[%s1668_s1] sm:$0xff]   ;;  %s1078_s23 = sshll.u32 %s1673_s16, 7  ;;  %vm348_vm1 = vcmask 293888   ;;  %s211_s6 = scalar_lea.vmem %s1670_s3, %s1673_s16 }
   0xd   : > { %1227 = vmatpush3.bf16.msra.mxu0 %v399_v2  ;;  %1267 = vmatpush3.bf16.msra.mxu1 %v399_v2  ;;  %s1357_s26 = scalar_lea.vmem %s1667_s0, %s1078_s23  ;;  %s1396_s29 = scalar_lea.vmem %s1669_s2, %s1078_s23 }
   0xe   : > { %1228 = vmatprep.subr.bf16.mxu0 %v1281_v1  ;;  %1265 = vmatprep.subr.bf16.mxu1 %v1281_v1  ;;  %v1283_v4 = vld [vmem:[%s1357_s26] sm:$0xff]   ;;  %v1284_v5 = vld [vmem:[%s1357_s26 + $0x8] sm:$0xff]   ;;  %v1285_v6 = vld [vmem:[%s1357_s26 + $0x10] sm:$0xff]   ;;  %s214_s9 = scalar_lea.vmem %s1671_s4, %s1673_s16 }
   0xf   : > { %1232 = vmatprep.mubr.msk.bf16.mxu0 %vm348_vm1, %v1283_v4  ;;  %v1291_v7 = vld [vmem:[%s1357_s26 + $0x40] sm:$0xff]   ;;  %v1292_v8 = vld [vmem:[%s1357_s26 + $0x48] sm:$0xff]   ;;  %v1293_v9 = vld [vmem:[%s1357_s26 + $0x50] sm:$0xff]  }
  0x10   : > { %1248 = vmatprep.mubr.msk.bf16.mxu1 %vm348_vm1, %v1291_v7  ;;  %v1286_v10 = vld [vmem:[%s1357_s26 + $0x18] sm:$0xff]   ;;  %v1287_v11 = vld [vmem:[%s1357_s26 + $0x20] sm:$0xff]   ;;  %v1288_v14 = vld [vmem:[%s1357_s26 + $0x28] sm:$0xff]  }
  0x11   : > { %1229 = vmatpush3.bf16.msra.mxu0 %v1281_v1  ;;  %1268 = vmatpush3.bf16.msra.mxu1 %v1281_v1  ;;  %v1294_v12 = vld [vmem:[%s1357_s26 + $0x58] sm:$0xff]   ;;  %v1295_v13 = vld [vmem:[%s1357_s26 + $0x60] sm:$0xff]   ;;  %v1289_v15 = vld [vmem:[%s1357_s26 + $0x30] sm:$0xff]  }
  0x12   : > { %1230 = vmatprep.subr.bf16.mxu0 %v1282_v3  ;;  %1266 = vmatprep.subr.bf16.mxu1 %v1282_v3  ;;  %v1296_v16 = vld [vmem:[%s1357_s26 + $0x68] sm:$0xff]   ;;  %v1297_v17 = vld [vmem:[%s1357_s26 + $0x70] sm:$0xff]   ;;  %v1290_v18 = vld [vmem:[%s1357_s26 + $0x38] sm:$0xff]  }
  0x13   : > { %v1298_v19 = vld [vmem:[%s1357_s26 + $0x78] sm:$0xff]  }
  0x15   : > { %1231 = vmatpush3.bf16.msra.mxu0 %v1282_v3  ;;  %1269 = vmatpush3.bf16.msra.mxu1 %v1282_v3 }
  0x18   : > { %1233 = vmatmul.mubr.msk.bf16.vlgmr.msra.gmra.mxu0 %vm348_vm1, %v1284_v5  ;;  %1249 = vmatmul.mubr.msk.bf16.vlgmr.msra.gmra.mxu1 %vm348_vm1, %v1292_v8 }
  0x19   : > { %1236 = vmatprep.mubr.msk.bf16.mxu0 %vm348_vm1, %v1285_v6  ;;  %1252 = vmatprep.mubr.msk.bf16.mxu1 %vm348_vm1, %v1293_v9 }
  0x20   : > { %1237 = vmatmul.mubr.msk.bf16.gmra.mxu0 %vm348_vm1, %v1286_v10  ;;  %1253 = vmatmul.mubr.msk.bf16.gmra.mxu1 %vm348_vm1, %v1294_v12 }
  0x21   : > { %1240 = vmatprep.mubr.msk.bf16.mxu0 %vm348_vm1, %v1287_v11  ;;  %1256 = vmatprep.mubr.msk.bf16.mxu1 %vm348_vm1, %v1295_v13 }
  0x28   : > { %1241 = vmatmul.mubr.msk.bf16.gmra.mxu0 %vm348_vm1, %v1288_v14  ;;  %1257 = vmatmul.mubr.msk.bf16.gmra.mxu1 %vm348_vm1, %v1296_v16 }
  0x29   : > { %1244 = vmatprep.mubr.msk.bf16.mxu0 %vm348_vm1, %v1289_v15  ;;  %1260 = vmatprep.mubr.msk.bf16.mxu1 %vm348_vm1, %v1297_v17 }
  0x30   : > { %1245 = vmatmul.mubr.msk.bf16.gmra.mxu0 %vm348_vm1, %v1290_v18  ;;  %1261 = vmatmul.mubr.msk.bf16.gmra.mxu1 %vm348_vm1, %v1298_v19 }
  0xd8   : > { %v1234_v20 = vpop.f32.mrf.mxu0  ;;  %v1250_v23 = vpop.f32.mrf.mxu1 }
  0xda   : > { %v435_v21 = vpop.f32.mrf.mxu0  ;;  %v499_v26 = vpop.f32.mrf.mxu1 }
  0xdc   : > { %v1235_v22 = vpop.f32.mrf.mxu0  ;;  %v1251_v29 = vpop.f32.mrf.mxu1 }
  0xdd   : > { %v1398_v24 = vpack.c.bf16 %v1235_v22, %v1234_v20  ;;  %v1408_v32 = vpack.c.bf16 %v1251_v29, %v1250_v23 }
  0xde   : > { %v438_v25 = vpop.f32.mrf.mxu0  ;;  %v502_v34 = vpop.f32.mrf.mxu1 }
  0xdf   : > { %1192 = vst [vmem:[%s1396_s29 + $0x8] sm:$0xff] %v1398_v24   ;;  %v1402_v27 = vpack.c.bf16 %v438_v25, %v435_v21  ;;  %v724_v35 = vunpack.c.l.bf16 %v1398_v24  ;;  %1200 = vst [vmem:[%s1396_s29 + $0x48] sm:$0xff] %v1408_v32   ;;  %v1417_v37 = vpack.c.bf16 %v502_v34, %v499_v26  ;;  %v725_v44 = vunpack.c.h.bf16 %v1398_v24 }
  0xe0   : > { %v1238_v28 = vpop.f32.mrf.mxu0  ;;  %v1254_v39 = vpop.f32.mrf.mxu1 }
  0xe1   : > { %1116 = vst [vmem:[%s1396_s29] sm:$0xff] %v1402_v27   ;;  %v722_v30 = vunpack.c.l.bf16 %v1402_v27  ;;  %v723_v31 = vunpack.c.h.bf16 %v1402_v27  ;;  %1199 = vst [vmem:[%s1396_s29 + $0x40] sm:$0xff] %v1417_v37  }
  0xe2   : > { %v451_v33 = vpop.f32.mrf.mxu0  ;;  %v515_v43 = vpop.f32.mrf.mxu1 }
  0xe3   : > { %v754_v36 = vadd.f32 %v723_v31, %v722_v30 }
  0xe4   : > { %v1239_v38 = vpop.f32.mrf.mxu0  ;;  %v1255_v47 = vpop.f32.mrf.mxu1 }
  0xe5   : > { %v755_v40 = vadd.f32 %v754_v36, %v724_v35  ;;  %v1421_v41 = vpack.c.bf16 %v1239_v38, %v1238_v28  ;;  %v1435_v50 = vpack.c.bf16 %v1255_v47, %v1254_v39 }
  0xe6   : > { %v454_v42 = vpop.f32.mrf.mxu0  ;;  %v518_v52 = vpop.f32.mrf.mxu1 }
  0xe7   : > { %1194 = vst [vmem:[%s1396_s29 + $0x18] sm:$0xff] %v1421_v41   ;;  %v1428_v45 = vpack.c.bf16 %v454_v42, %v451_v33  ;;  %v756_v49 = vadd.f32 %v755_v40, %v725_v44  ;;  %1202 = vst [vmem:[%s1396_s29 + $0x58] sm:$0xff] %v1435_v50   ;;  %v1442_v55 = vpack.c.bf16 %v518_v52, %v515_v43  ;;  %v728_v58 = vunpack.c.l.bf16 %v1421_v41 }
  0xe8   : > { %v1242_v46 = vpop.f32.mrf.mxu0  ;;  %v1258_v57 = vpop.f32.mrf.mxu1  ;;  %v729_v63 = vunpack.c.h.bf16 %v1421_v41  ;;  %v738_v42 = vunpack.c.l.bf16 %v1417_v37  ;;  %v741_v52 = vunpack.c.h.bf16 %v1408_v32 }
  0xe9   : > { %1193 = vst [vmem:[%s1396_s29 + $0x10] sm:$0xff] %v1428_v45   ;;  %v726_v48 = vunpack.c.l.bf16 %v1428_v45  ;;  %v727_v53 = vunpack.c.h.bf16 %v1428_v45  ;;  %1201 = vst [vmem:[%s1396_s29 + $0x50] sm:$0xff] %v1442_v55  }
  0xea   : > { %v467_v51 = vpop.f32.mrf.mxu0  ;;  %v531_v62 = vpop.f32.mrf.mxu1 }
  0xeb   : > { %v757_v54 = vadd.f32 %v756_v49, %v726_v48  ;;  %v740_v49 = vunpack.c.l.bf16 %v1408_v32 }
  0xec   : > { %v1243_v56 = vpop.f32.mrf.mxu0  ;;  %v1259_v3 = vpop.f32.mrf.mxu1 }
  0xed   : > { %v758_v59 = vadd.f32 %v757_v54, %v727_v53  ;;  %v1447_v60 = vpack.c.bf16 %v1243_v56, %v1242_v46  ;;  %v1463_v6 = vpack.c.bf16 %v1259_v3, %v1258_v57  ;;  %v739_v46 = vunpack.c.h.bf16 %v1417_v37 }
  0xee   : > { %v470_v61 = vpop.f32.mrf.mxu0  ;;  %v534_v8 = vpop.f32.mrf.mxu1  ;;  %v742_v56 = vunpack.c.l.bf16 %v1442_v55 }
  0xef   : > { %v759_v0 = vadd.f32 %v758_v59, %v728_v58  ;;  %1196 = vst [vmem:[%s1396_s29 + $0x28] sm:$0xff] %v1447_v60   ;;  %v1456_v1 = vpack.c.bf16 %v470_v61, %v467_v51  ;;  %1204 = vst [vmem:[%s1396_s29 + $0x68] sm:$0xff] %v1463_v6   ;;  %v1470_v11 = vpack.c.bf16 %v534_v8, %v531_v62  ;;  %v732_v14 = vunpack.c.l.bf16 %v1447_v60 }
  0xf0   : > { %v1246_v2 = vpop.f32.mrf.mxu0  ;;  %v1262_v13 = vpop.f32.mrf.mxu1  ;;  %v733_v19 = vunpack.c.h.bf16 %v1447_v60  ;;  %v743_v59 = vunpack.c.h.bf16 %v1442_v55  ;;  %v744_v62 = vunpack.c.l.bf16 %v1435_v50 }
  0xf1   : > { %1195 = vst [vmem:[%s1396_s29 + $0x20] sm:$0xff] %v1456_v1   ;;  %v730_v4 = vunpack.c.l.bf16 %v1456_v1  ;;  %v760_v5 = vadd.f32 %v759_v0, %v729_v63  ;;  %v731_v9 = vunpack.c.h.bf16 %v1456_v1  ;;  %1203 = vst [vmem:[%s1396_s29 + $0x60] sm:$0xff] %v1470_v11   ;;  %v747_v8 = vunpack.c.h.bf16 %v1470_v11 }
  0xf2   : > { %v483_v7 = vpop.f32.mrf.mxu0  ;;  %v547_v18 = vpop.f32.mrf.mxu1 }
  0xf3   : > { %v761_v10 = vadd.f32 %v760_v5, %v730_v4  ;;  %v746_v5 = vunpack.c.l.bf16 %v1470_v11 }
  0xf4   : > { %v1247_v12 = vpop.f32.mrf.mxu0  ;;  %v1263_v22 = vpop.f32.mrf.mxu1 }
  0xf5   : > { %v762_v15 = vadd.f32 %v761_v10, %v731_v9  ;;  %v1475_v16 = vpack.c.bf16 %v1247_v12, %v1246_v2  ;;  %v1491_v26 = vpack.c.bf16 %v1263_v22, %v1262_v13  ;;  %v745_v2 = vunpack.c.h.bf16 %v1435_v50 }
  0xf6   : > { %v486_v17 = vpop.f32.mrf.mxu0  ;;  %v550_v28 = vpop.f32.mrf.mxu1  ;;  %v748_v12 = vunpack.c.l.bf16 %v1463_v6 }
  0xf7   : > { %v763_v20 = vadd.f32 %v762_v15, %v732_v14  ;;  %1198 = vst [vmem:[%s1396_s29 + $0x38] sm:$0xff] %v1475_v16   ;;  %v1484_v21 = vpack.c.bf16 %v486_v17, %v483_v7  ;;  %1206 = vst [vmem:[%s1396_s29 + $0x78] sm:$0xff] %v1491_v26   ;;  %v1498_v34 = vpack.c.bf16 %v550_v28, %v547_v18  ;;  %v736_v36 = vunpack.c.l.bf16 %v1475_v16 }
  0xf8   : > { %v737_v39 = vunpack.c.h.bf16 %v1475_v16  ;;  %v749_v15 = vunpack.c.h.bf16 %v1463_v6  ;;  %v752_v28 = vunpack.c.l.bf16 %v1491_v26 }
  0xf9   : > { %1197 = vst [vmem:[%s1396_s29 + $0x30] sm:$0xff] %v1484_v21   ;;  %v734_v23 = vunpack.c.l.bf16 %v1484_v21  ;;  %v764_v25 = vadd.f32 %v763_v20, %v733_v19  ;;  %v735_v29 = vunpack.c.h.bf16 %v1484_v21  ;;  %1205 = vst [vmem:[%s1396_s29 + $0x70] sm:$0xff] %v1498_v34   ;;  %v750_v18 = vunpack.c.l.bf16 %v1498_v34 }
  0xfa   : > { %v751_v22 = vunpack.c.h.bf16 %v1498_v34 }
  0xfb   : > { %v765_v33 = vadd.f32 %v764_v25, %v734_v23 }
  0xfd   : > { %v766_v38 = vadd.f32 %v765_v33, %v735_v29 }
  0xff   : > { %v767_v40 = vadd.f32 %v766_v38, %v736_v36  ;;  %v753_v38 = vunpack.c.h.bf16 %v1491_v26 }
 0x101   : > { %v768_v43 = vadd.f32 %v767_v40, %v737_v39 }
 0x103   : > { %v769_v47 = vadd.f32 %v768_v43, %v738_v42 }
 0x105   : > { %v770_v51 = vadd.f32 %v769_v47, %v739_v46 }
 0x107   : > { %v771_v54 = vadd.f32 %v770_v51, %v740_v49 }
 0x109   : > { %v772_v57 = vadd.f32 %v771_v54, %v741_v52 }
 0x10b   : > { %v773_v61 = vadd.f32 %v772_v57, %v742_v56 }
 0x10d   : > { %v774_v0 = vadd.f32 %v773_v61, %v743_v59 }
 0x10f   : > { %v775_v3 = vadd.f32 %v774_v0, %v744_v62 }
 0x111   : > { %v776_v7 = vadd.f32 %v775_v3, %v745_v2 }
 0x113   : > { %v777_v10 = vadd.f32 %v776_v7, %v746_v5 }
 0x115   : > { %v778_v13 = vadd.f32 %v777_v10, %v747_v8 }
 0x117   : > { %v779_v17 = vadd.f32 %v778_v13, %v748_v12 }
 0x119   : > { %v780_v20 = vadd.f32 %v779_v17, %v749_v15 }
 0x11b   : > { %v781_v25 = vadd.f32 %v780_v20, %v750_v18 }
 0x11d   : > { %v782_v33 = vadd.f32 %v781_v25, %v751_v22 }
 0x11f   : > { %v783_v40 = vadd.f32 %v782_v33, %v752_v28 }
 0x121   : > { %v784_v43 = vadd.f32 %v783_v40, %v753_v38 }
 0x123   : > { %v785_v47 = vrot.slane %v784_v43, 4 }
 0x125   : > { %v786_v51 = vadd.f32 %v785_v47, %v784_v43 }
 0x127   : > { %v787_v54 = vrot.slane %v786_v51, 2 }
 0x129   : > { %v788_v57 = vadd.f32 %v787_v54, %v786_v51 }
 0x12b   : > { %v789_v61 = vrot.slane %v788_v57, 1 }
 0x12d   : > { %v790_v0 = vadd.f32 %v789_v61, %v788_v57 }
 0x12f   : > { %824 = vst [vmem:[%s211_s6] sm:$0x1] %v790_v0  ;;  %v1562_v3 = vmul.f32 0.00390625, %v790_v0 }
 0x131   : > { %v792_v7 = vsub.f32 %v722_v30, %v1562_v3  ;;  %v793_v10 = vsub.f32 %v723_v31, %v1562_v3  ;;  %v794_v13 = vsub.f32 %v724_v35, %v1562_v3  ;;  %v795_v25 = vsub.f32 %v725_v44, %v1562_v3 }
 0x132   : > { %v796_v33 = vsub.f32 %v726_v48, %v1562_v3  ;;  %v797_v27 = vsub.f32 %v727_v53, %v1562_v3  ;;  %v798_v35 = vsub.f32 %v728_v58, %v1562_v3  ;;  %v799_v24 = vsub.f32 %v729_v63, %v1562_v3 }
 0x133   : > { %v825_v17 = vmul.f32 %v792_v7, %v792_v7  ;;  %v826_v20 = vmul.f32 %v793_v10, %v793_v10  ;;  %v827_v40 = vmul.f32 %v794_v13, %v794_v13  ;;  %v828_v31 = vmul.f32 %v795_v25, %v795_v25 }
 0x134   : > { %v829_v47 = vmul.f32 %v796_v33, %v796_v33  ;;  %v830_v44 = vmul.f32 %v797_v27, %v797_v27  ;;  %v800_v54 = vsub.f32 %v730_v4, %v1562_v3  ;;  %v831_v45 = vmul.f32 %v798_v35, %v798_v35 }
 0x135   : > { %v857_v30 = vadd.f32 %v826_v20, %v825_v17  ;;  %v801_v57 = vsub.f32 %v731_v9, %v1562_v3  ;;  %v832_v61 = vmul.f32 %v799_v24, %v799_v24  ;;  %v802_v0 = vsub.f32 %v732_v14, %v1562_v3 }
 0x136   : > { %v833_v41 = vmul.f32 %v800_v54, %v800_v54  ;;  %v803_v7 = vsub.f32 %v733_v19, %v1562_v3  ;;  %v804_v13 = vsub.f32 %v734_v23, %v1562_v3  ;;  %v805_v17 = vsub.f32 %v735_v29, %v1562_v3 }
 0x137   : > { %v858_v43 = vadd.f32 %v857_v30, %v827_v40  ;;  %v834_v10 = vmul.f32 %v801_v57, %v801_v57  ;;  %v835_v1 = vmul.f32 %v802_v0, %v802_v0  ;;  %v806_v25 = vsub.f32 %v736_v36, %v1562_v3 }
 0x138   : > { %v836_v20 = vmul.f32 %v803_v7, %v803_v7  ;;  %v837_v60 = vmul.f32 %v804_v13, %v804_v13  ;;  %v807_v33 = vsub.f32 %v737_v39, %v1562_v3  ;;  %v838_v40 = vmul.f32 %v805_v17, %v805_v17 }
 0x139   : > { %v859_v51 = vadd.f32 %v858_v43, %v828_v31  ;;  %v808_v30 = vsub.f32 %v738_v42, %v1562_v3  ;;  %v839_v21 = vmul.f32 %v806_v25, %v806_v25  ;;  %v809_v27 = vsub.f32 %v739_v46, %v1562_v3 }
 0x13a   : > { %v840_v31 = vmul.f32 %v807_v33, %v807_v33  ;;  %v810_v43 = vsub.f32 %v740_v49, %v1562_v3  ;;  %v811_v35 = vsub.f32 %v741_v52, %v1562_v3  ;;  %v813_v24 = vsub.f32 %v743_v59, %v1562_v3 }
 0x13b   : > { %v860_v48 = vadd.f32 %v859_v51, %v829_v47  ;;  %v841_v16 = vmul.f32 %v808_v30, %v808_v30  ;;  %v842_v47 = vmul.f32 %v809_v27, %v809_v27  ;;  %v812_v51 = vsub.f32 %v742_v56, %v1562_v3 }
 0x13c   : > { %v843_v37 = vmul.f32 %v810_v43, %v810_v43  ;;  %v815_v54 = vsub.f32 %v745_v2, %v1562_v3  ;;  %v817_v57 = vsub.f32 %v747_v8, %v1562_v3  ;;  %v819_v0 = vsub.f32 %v749_v15, %v1562_v3 }
 0x13d   : > { %v861_v53 = vadd.f32 %v860_v48, %v830_v44  ;;  %v844_v44 = vmul.f32 %v811_v35, %v811_v35  ;;  %v814_v48 = vsub.f32 %v744_v62, %v1562_v3  ;;  %v845_v32 = vmul.f32 %v812_v51, %v812_v51 }
 0x13e   : > { %v821_v7 = vsub.f32 %v751_v22, %v1562_v3  ;;  %v823_v13 = vsub.f32 %v753_v38, %v1562_v3 }
 0x13f   : > { %v862_v58 = vadd.f32 %v861_v53, %v831_v45  ;;  %v846_v45 = vmul.f32 %v813_v24, %v813_v24  ;;  %v816_v53 = vsub.f32 %v746_v5, %v1562_v3  ;;  %v847_v55 = vmul.f32 %v814_v48, %v814_v48 }
 0x141   : > { %v863_v63 = vadd.f32 %v862_v58, %v832_v61  ;;  %v848_v61 = vmul.f32 %v815_v54, %v815_v54  ;;  %v818_v58 = vsub.f32 %v748_v12, %v1562_v3  ;;  %v849_v50 = vmul.f32 %v816_v53, %v816_v53 }
 0x143   : > { %v864_v4 = vadd.f32 %v863_v63, %v833_v41  ;;  %v850_v41 = vmul.f32 %v817_v57, %v817_v57  ;;  %v820_v63 = vsub.f32 %v750_v18, %v1562_v3  ;;  %v851_v11 = vmul.f32 %v818_v58, %v818_v58 }
 0x144   : > { %v854_v18 = vmul.f32 %v821_v7, %v821_v7 }
 0x145   : > { %v865_v9 = vadd.f32 %v864_v4, %v834_v10  ;;  %v852_v10 = vmul.f32 %v819_v0, %v819_v0  ;;  %v822_v4 = vsub.f32 %v752_v28, %v1562_v3  ;;  %v853_v6 = vmul.f32 %v820_v63, %v820_v63 }
 0x147   : > { %v866_v14 = vadd.f32 %v865_v9, %v835_v1  ;;  %v855_v9 = vmul.f32 %v822_v4, %v822_v4 }
 0x149   : > { %v867_v19 = vadd.f32 %v866_v14, %v836_v20  ;;  %v856_v20 = vmul.f32 %v823_v13, %v823_v13 }
 0x14b   : > { %v868_v23 = vadd.f32 %v867_v19, %v837_v60 }
 0x14d   : > { %v869_v29 = vadd.f32 %v868_v23, %v838_v40 }
 0x14f   : > { %v870_v36 = vadd.f32 %v869_v29, %v839_v21 }
 0x151   : > { %v871_v39 = vadd.f32 %v870_v36, %v840_v31 }
 0x153   : > { %v872_v42 = vadd.f32 %v871_v39, %v841_v16 }
 0x155   : > { %v873_v46 = vadd.f32 %v872_v42, %v842_v47 }
 0x157   : > { %v874_v49 = vadd.f32 %v873_v46, %v843_v37 }
 0x159   : > { %v875_v52 = vadd.f32 %v874_v49, %v844_v44 }
 0x15b   : > { %v876_v56 = vadd.f32 %v875_v52, %v845_v32 }
 0x15d   : > { %v877_v59 = vadd.f32 %v876_v56, %v846_v45 }
 0x15f   : > { %v878_v62 = vadd.f32 %v877_v59, %v847_v55 }
 0x161   : > { %v879_v2 = vadd.f32 %v878_v62, %v848_v61 }
 0x163   : > { %v880_v5 = vadd.f32 %v879_v2, %v849_v50 }
 0x165   : > { %v881_v8 = vadd.f32 %v880_v5, %v850_v41 }
 0x167   : > { %v882_v12 = vadd.f32 %v881_v8, %v851_v11 }
 0x169   : > { %v883_v15 = vadd.f32 %v882_v12, %v852_v10 }
 0x16b   : > { %v884_v1 = vadd.f32 %v883_v15, %v853_v6 }
 0x16d   : > { %v885_v17 = vadd.f32 %v884_v1, %v854_v18 }
 0x16f   : > { %v886_v34 = vadd.f32 %v885_v17, %v855_v9 }
 0x171   : > { %v887_v22 = vadd.f32 %v886_v34, %v856_v20 }
 0x173   : > { %v888_v14 = vrot.slane %v887_v22, 4 }
 0x175   : > { %v889_v25 = vadd.f32 %v888_v14, %v887_v22 }
 0x177   : > { %v890_v60 = vrot.slane %v889_v25, 2 }
 0x179   : > { %v891_v19 = vadd.f32 %v890_v60, %v889_v25 }
 0x17b   : > { %v892_v33 = vrot.slane %v891_v19, 1 }
 0x17d   : > { %v893_v28 = vadd.f32 %v892_v33, %v891_v19 }
 0x17f   : > { %894 = vst [vmem:[%s214_s9] sm:$0x1] %v893_v28 }
 0x180 PF: > { %s15_s15 = sadd.s32 1, %s1305_s15  }
 0x181   : > { %p12_p4 = scmp.ge.s32.totalorder %s15_s15, 4  }
 0x183   :  { %14 = sbr.rel (!%p12_p4) target bundleno = 1 (0x1), region = 82 }

// kernel: conv_block_forward.7
= control target key start
LH: loop header
LB: loop body
LE: loop exit
PB: predicated region body
PF: predicated region fallthrough
CT: control target
= control target key end

     0   :  { %s562_s12 = smov 0   ;;  %s709_s0 = inlined_call_operand.vmem [shape: bf16[2,256,128], index: 0, kind: input, shape index: {}]   ;;  %s710_s1 = inlined_call_operand.vmem [shape: f32[1,128], index: 1, kind: input, shape index: {}]   ;;  %s711_s2 = inlined_call_operand.vmem [shape: f32[1,128], index: 2, kind: input, shape index: {}]   ;;  %s712_s3 = inlined_call_operand.vmem [shape: f32[2,256,128], index: 3, kind: output, shape index: {}]  }
   0x1 LB: > { %s432_s13 = sadd.s32 4294967295, %s540_s12   ;;  %p436_p0 = scmp.ge.s32.totalorder %s540_s12, 1  ;;  %s540_s12 = sphi %s562_s12, %s13_s12  }
   0x2   : > { %p137_p1 = scmp.lt.s32.totalorder %s540_s12, 3 }
   0x4   : > { %p138_p2 = pnand %p436_p0, %p137_p1 }
   0x5   : > { %p161_p3 = scmp.lt.s32.totalorder (!%p138_p2), %s432_s13, 1 }
   0x6   : > { %141 = sbr.rel (%p138_p2) target bundleno = 51 (0x33), region = 32 }
   0xb   : > { %s714_s13 = smov (!%p161_p3, %s432_s13), 1  ;;  %v581_v0 = vld [vmem:[%s710_s1] ss:$0 sm:$0xff] }
   0xc   : > { %s445_s14 = sshll.u32 %s714_s13, 7  ;;  %v590_v9 = vld [vmem:[%s711_s2] ss:$0 sm:$0xff]  ;;  %s446_s22 = sshll.u32 %s714_s13, 8 }
   0xd   : > { %s576_s17 = scalar_lea.vmem %s709_s0, %s445_s14  ;;  %s608_s25 = scalar_lea.vmem %s712_s3, %s446_s22 }
   0xe   : > { %v448_v1 = vld [vmem:[%s576_s17] sm:$0xff]   ;;  %v511_v2 = vld [vmem:[%s576_s17 + $0x8] sm:$0xff]   ;;  %v512_v3 = vld [vmem:[%s576_s17 + $0x10] sm:$0xff]  }
   0xf   : > { %v449_v4 = vunpack.c.l.bf16 %v448_v1  ;;  %v450_v5 = vunpack.c.h.bf16 %v448_v1  ;;  %v453_v6 = vunpack.c.l.bf16 %v511_v2  ;;  %v454_v7 = vunpack.c.h.bf16 %v511_v2  ;;  %v513_v8 = vld [vmem:[%s576_s17 + $0x18] sm:$0xff]   ;;  %v514_v30 = vld [vmem:[%s576_s17 + $0x20] sm:$0xff]   ;;  %v515_v31 = vld [vmem:[%s576_s17 + $0x28] sm:$0xff]  }
  0x10   : > { %v457_v10 = vunpack.c.l.bf16 %v512_v3  ;;  %v458_v11 = vunpack.c.h.bf16 %v512_v3  ;;  %v461_v12 = vunpack.c.l.bf16 %v513_v8  ;;  %v462_v13 = vunpack.c.h.bf16 %v513_v8  ;;  %v516_v36 = vld [vmem:[%s576_s17 + $0x30] sm:$0xff]   ;;  %v517_v37 = vld [vmem:[%s576_s17 + $0x38] sm:$0xff]   ;;  %v518_v3 = vld [vmem:[%s576_s17 + $0x40] sm:$0xff]  }
  0x11   : > { %v242_v14 = vmul.f32 %v449_v4, %v581_v0  ;;  %v243_v15 = vmul.f32 %v450_v5, %v581_v0  ;;  %v244_v16 = vmul.f32 %v453_v6, %v581_v0  ;;  %v245_v17 = vmul.f32 %v454_v7, %v581_v0  ;;  %v519_v4 = vld [vmem:[%s576_s17 + $0x48] sm:$0xff]  }
  0x12   : > { %v246_v18 = vmul.f32 %v457_v10, %v581_v0  ;;  %v247_v19 = vmul.f32 %v458_v11, %v581_v0  ;;  %v248_v20 = vmul.f32 %v461_v12, %v581_v0  ;;  %v249_v21 = vmul.f32 %v462_v13, %v581_v0  ;;  %v520_v10 = vld [vmem:[%s576_s17 + $0x50] sm:$0xff]   ;;  %v521_v11 = vld [vmem:[%s576_s17 + $0x58] sm:$0xff]  }
  0x13   : > { %v281_v22 = vadd.f32 %v590_v9, %v242_v14  ;;  %v282_v23 = vadd.f32 %v590_v9, %v243_v15  ;;  %v283_v24 = vadd.f32 %v590_v9, %v244_v16  ;;  %v284_v25 = vadd.f32 %v590_v9, %v245_v17 }
  0x14   : > { %v285_v26 = vadd.f32 %v590_v9, %v246_v18  ;;  %v286_v27 = vadd.f32 %v590_v9, %v247_v19  ;;  %v287_v28 = vadd.f32 %v590_v9, %v248_v20  ;;  %v288_v29 = vadd.f32 %v590_v9, %v249_v21 }
  0x15   : > { %v313_v32 = vmax.f32 %v281_v22, 0.0  ;;  %v314_v33 = vmax.f32 %v282_v23, 0.0  ;;  %v315_v34 = vmax.f32 %v283_v24, 0.0  ;;  %v316_v35 = vmax.f32 %v284_v25, 0.0 }
  0x16   : > { %v317_v38 = vmax.f32 %v285_v26, 0.0  ;;  %v318_v39 = vmax.f32 %v286_v27, 0.0  ;;  %v319_v40 = vmax.f32 %v287_v28, 0.0  ;;  %v320_v41 = vmax.f32 %v288_v29, 0.0 }
  0x17   : > { %345 = vst [vmem:[%s608_s25] sm:$0xff] %v313_v32  ;;  %346 = vst [vmem:[%s608_s25 + $0x8] sm:$0xff] %v314_v33  ;;  %v465_v42 = vunpack.c.l.bf16 %v514_v30  ;;  %v466_v43 = vunpack.c.h.bf16 %v514_v30  ;;  %v469_v44 = vunpack.c.l.bf16 %v515_v31  ;;  %v470_v45 = vunpack.c.h.bf16 %v515_v31 }
  0x18   : > { %347 = vst [vmem:[%s608_s25 + $0x10] sm:$0xff] %v315_v34  ;;  %348 = vst [vmem:[%s608_s25 + $0x18] sm:$0xff] %v316_v35  ;;  %v473_v46 = vunpack.c.l.bf16 %v516_v36  ;;  %v474_v47 = vunpack.c.h.bf16 %v516_v36  ;;  %v477_v48 = vunpack.c.l.bf16 %v517_v37  ;;  %v478_v49 = vunpack.c.h.bf16 %v517_v37 }
  0x19   : > { %349 = vst [vmem:[%s608_s25 + $0x20] sm:$0xff] %v317_v38  ;;  %350 = vst [vmem:[%s608_s25 + $0x28] sm:$0xff] %v318_v39  ;;  %v250_v50 = vmul.f32 %v465_v42, %v581_v0  ;;  %v251_v51 = vmul.f32 %v466_v43, %v581_v0  ;;  %v252_v52 = vmul.f32 %v469_v44, %v581_v0  ;;  %v481_v16 = vunpack.c.l.bf16 %v518_v3 }
  0x1a   : > { %351 = vst [vmem:[%s608_s25 + $0x30] sm:$0xff] %v319_v40  ;;  %352 = vst [vmem:[%s608_s25 + $0x38] sm:$0xff] %v320_v41  ;;  %v253_v53 = vmul.f32 %v470_v45, %v581_v0  ;;  %v254_v54 = vmul.f32 %v473_v46, %v581_v0  ;;  %v255_v55 = vmul.f32 %v474_v47, %v581_v0  ;;  %v482_v17 = vunpack.c.h.bf16 %v518_v3  ;;  %v522_v40 = vld [vmem:[%s576_s17 + $0x60] sm:$0xff]   ;;  %v523_v41 = vld [vmem:[%s576_s17 + $0x68] sm:$0xff]  }
  0x1b   : > { %v256_v56 = vmul.f32 %v477_v48, %v581_v0  ;;  %v257_v57 = vmul.f32 %v478_v49, %v581_v0  ;;  %v289_v58 = vadd.f32 %v590_v9, %v250_v50  ;;  %v290_v59 = vadd.f32 %v590_v9, %v251_v51  ;;  %v524_v46 = vld [vmem:[%s576_s17 + $0x70] sm:$0xff]   ;;  %v525_v47 = vld [vmem:[%s576_s17 + $0x78] sm:$0xff]  }
  0x1c   : > { %v291_v60 = vadd.f32 %v590_v9, %v252_v52  ;;  %v292_v61 = vadd.f32 %v590_v9, %v253_v53  ;;  %v293_v62 = vadd.f32 %v590_v9, %v254_v54  ;;  %v294_v63 = vadd.f32 %v590_v9, %v255_v55 }
  0x1d   : > { %v295_v1 = vadd.f32 %v590_v9, %v256_v56  ;;  %v296_v2 = vadd.f32 %v590_v9, %v257_v57  ;;  %v321_v5 = vmax.f32 %v289_v58, 0.0  ;;  %v322_v6 = vmax.f32 %v290_v59, 0.0 }
  0x1e   : > { %v323_v7 = vmax.f32 %v291_v60, 0.0  ;;  %v324_v8 = vmax.f32 %v292_v61, 0.0  ;;  %v325_v12 = vmax.f32 %v293_v62, 0.0  ;;  %v326_v13 = vmax.f32 %v294_v63, 0.0 }
  0x1f   : > { %v327_v14 = vmax.f32 %v295_v1, 0.0  ;;  %v328_v15 = vmax.f32 %v296_v2, 0.0  ;;  %353 = vst [vmem:[%s608_s25 + $0x40] sm:$0xff] %v321_v5  ;;  %354 = vst [vmem:[%s608_s25 + $0x48] sm:$0xff] %v322_v6  ;;  %v485_v18 = vunpack.c.l.bf16 %v519_v4  ;;  %v486_v19 = vunpack.c.h.bf16 %v519_v4 }
  0x20   : > { %355 = vst [vmem:[%s608_s25 + $0x50] sm:$0xff] %v323_v7  ;;  %356 = vst [vmem:[%s608_s25 + $0x58] sm:$0xff] %v324_v8  ;;  %v489_v20 = vunpack.c.l.bf16 %v520_v10  ;;  %v490_v21 = vunpack.c.h.bf16 %v520_v10  ;;  %v493_v22 = vunpack.c.l.bf16 %v521_v11  ;;  %v494_v23 = vunpack.c.h.bf16 %v521_v11 }
  0x21   : > { %357 = vst [vmem:[%s608_s25 + $0x60] sm:$0xff] %v325_v12  ;;  %358 = vst [vmem:[%s608_s25 + $0x68] sm:$0xff] %v326_v13  ;;  %v258_v24 = vmul.f32 %v481_v16, %v581_v0  ;;  %v259_v25 = vmul.f32 %v482_v17, %v581_v0  ;;  %v260_v26 = vmul.f32 %v485_v18, %v581_v0  ;;  %v497_v52 = vunpack.c.l.bf16 %v522_v40 }
  0x22   : > { %359 = vst [vmem:[%s608_s25 + $0x70] sm:$0xff] %v327_v14  ;;  %360 = vst [vmem:[%s608_s25 + $0x78] sm:$0xff] %v328_v15  ;;  %v261_v27 = vmul.f32 %v486_v19, %v581_v0  ;;  %v262_v28 = vmul.f32 %v489_v20, %v581_v0  ;;  %v263_v29 = vmul.f32 %v490_v21, %v581_v0  ;;  %v498_v53 = vunpack.c.h.bf16 %v522_v40 }
  0x23   : > { %v264_v30 = vmul.f32 %v493_v22, %v581_v0  ;;  %v265_v31 = vmul.f32 %v494_v23, %v581_v0  ;;  %v297_v32 = vadd.f32 %v590_v9, %v258_v24  ;;  %v298_v33 = vadd.f32 %v590_v9, %v259_v25 }
  0x24   : > { %v299_v34 = vadd.f32 %v590_v9, %v260_v26  ;;  %v300_v35 = vadd.f32 %v590_v9, %v261_v27  ;;  %v301_v36 = vadd.f32 %v590_v9, %v262_v28  ;;  %v302_v37 = vadd.f32 %v590_v9, %v263_v29 }
  0x25   : > { %v303_v38 = vadd.f32 %v590_v9, %v264_v30  ;;  %v304_v39 = vadd.f32 %v590_v9, %v265_v31  ;;  %v329_v42 = vmax.f32 %v297_v32, 0.0  ;;  %v330_v43 = vmax.f32 %v298_v33, 0.0 }
  0x26   : > { %v331_v44 = vmax.f32 %v299_v34, 0.0  ;;  %v332_v45 = vmax.f32 %v300_v35, 0.0  ;;  %v333_v48 = vmax.f32 %v301_v36, 0.0  ;;  %v334_v49 = vmax.f32 %v302_v37, 0.0 }
  0x27   : > { %v335_v50 = vmax.f32 %v303_v38, 0.0  ;;  %v336_v51 = vmax.f32 %v304_v39, 0.0  ;;  %361 = vst [vmem:[%s608_s25 + $0x80] sm:$0xff] %v329_v42  ;;  %362 = vst [vmem:[%s608_s25 + $0x88] sm:$0xff] %v330_v43  ;;  %v501_v54 = vunpack.c.l.bf16 %v523_v41  ;;  %v502_v55 = vunpack.c.h.bf16 %v523_v41 }
  0x28   : > { %363 = vst [vmem:[%s608_s25 + $0x90] sm:$0xff] %v331_v44  ;;  %364 = vst [vmem:[%s608_s25 + $0x98] sm:$0xff] %v332_v45  ;;  %v505_v56 = vunpack.c.l.bf16 %v524_v46  ;;  %v506_v57 = vunpack.c.h.bf16 %v524_v46  ;;  %v509_v58 = vunpack.c.l.bf16 %v525_v47  ;;  %v510_v59 = vunpack.c.h.bf16 %v525_v47 }
  0x29   : > { %365 = vst [vmem:[%s608_s25 + $0xa0] sm:$0xff] %v333_v48  ;;  %366 = vst [vmem:[%s608_s25 + $0xa8] sm:$0xff] %v334_v49  ;;  %v266_v60 = vmul.f32 %v497_v52, %v581_v0  ;;  %v267_v61 = vmul.f32 %v498_v53, %v581_v0  ;;  %v268_v62 = vmul.f32 %v501_v54, %v581_v0 }
  0x2a   : > { %367 = vst [vmem:[%s608_s25 + $0xb0] sm:$0xff] %v335_v50  ;;  %368 = vst [vmem:[%s608_s25 + $0xb8] sm:$0xff] %v336_v51  ;;  %v269_v63 = vmul.f32 %v502_v55, %v581_v0  ;;  %v270_v1 = vmul.f32 %v505_v56, %v581_v0  ;;  %v271_v2 = vmul.f32 %v506_v57, %v581_v0 }
  0x2b   : > { %v272_v3 = vmul.f32 %v509_v58, %v581_v0  ;;  %v273_v4 = vmul.f32 %v510_v59, %v581_v0  ;;  %v305_v5 = vadd.f32 %v590_v9, %v266_v60  ;;  %v306_v6 = vadd.f32 %v590_v9, %v267_v61 }
  0x2c   : > { %v307_v7 = vadd.f32 %v590_v9, %v268_v62  ;;  %v308_v8 = vadd.f32 %v590_v9, %v269_v63  ;;  %v309_v10 = vadd.f32 %v590_v9, %v270_v1  ;;  %v310_v11 = vadd.f32 %v590_v9, %v271_v2 }
  0x2d   : > { %v311_v0 = vadd.f32 %v590_v9, %v272_v3  ;;  %v312_v12 = vadd.f32 %v590_v9, %v273_v4  ;;  %v337_v13 = vmax.f32 %v305_v5, 0.0  ;;  %v338_v14 = vmax.f32 %v306_v6, 0.0 }
  0x2e   : > { %v339_v15 = vmax.f32 %v307_v7, 0.0  ;;  %v340_v16 = vmax.f32 %v308_v8, 0.0  ;;  %v341_v17 = vmax.f32 %v309_v10, 0.0  ;;  %v342_v18 = vmax.f32 %v310_v11, 0.0 }
  0x2f   : > { %v343_v19 = vmax.f32 %v311_v0, 0.0  ;;  %v344_v20 = vmax.f32 %v312_v12, 0.0  ;;  %369 = vst [vmem:[%s608_s25 + $0xc0] sm:$0xff] %v337_v13  ;;  %370 = vst [vmem:[%s608_s25 + $0xc8] sm:$0xff] %v338_v14 }
  0x30   : > { %371 = vst [vmem:[%s608_s25 + $0xd0] sm:$0xff] %v339_v15  ;;  %372 = vst [vmem:[%s608_s25 + $0xd8] sm:$0xff] %v340_v16 }
  0x31   : > { %373 = vst [vmem:[%s608_s25 + $0xe0] sm:$0xff] %v341_v17  ;;  %374 = vst [vmem:[%s608_s25 + $0xe8] sm:$0xff] %v342_v18 }
  0x32   : > { %375 = vst [vmem:[%s608_s25 + $0xf0] sm:$0xff] %v343_v19  ;;  %376 = vst [vmem:[%s608_s25 + $0xf8] sm:$0xff] %v344_v20 }
  0x33 PF: > { %s13_s12 = sadd.s32 1, %s540_s12  }
  0x34   : > { %p10_p4 = scmp.ge.s32.totalorder %s13_s12, 4  }
  0x36   :  { %12 = sbr.rel (!%p10_p4) target bundleno = 1 (0x1), region = 62 }

// kernel: conv_block_forward.6
= control target key start
LH: loop header
LB: loop body
LE: loop exit
PB: predicated region body
PF: predicated region fallthrough
CT: control target
= control target key end

     0   :  { %s3744_s15 = smov 0   ;;  %s4896_s0 = inlined_call_operand.vmem [shape: bf16[2,18,16,384], index: 0, kind: input, shape index: {}]   ;;  %s4897_s1 = inlined_call_operand.vmem [shape: bf16[3,384,128], index: 1, kind: input, shape index: {}]   ;;  %s4898_s2 = inlined_call_operand.vmem [shape: bf16[2,256,128], index: 2, kind: output, shape index: {0}]   ;;  %s4899_s3 = inlined_call_operand.vmem [shape: f32[2,1,128], index: 3, kind: output, shape index: {1}]   ;;  %s4900_s4 = inlined_call_operand.vmem [shape: f32[2,1,128], index: 4, kind: output, shape index: {2}]  }
   0x1 LB: > { %s2590_s16 = sadd.s32 4294967295, %s3717_s15   ;;  %p2594_p0 = scmp.ge.s32.totalorder %s3717_s15, 1  ;;  %s3717_s15 = sphi %s3744_s15, %s15_s15  }
   0x2   : > { %p167_p1 = scmp.lt.s32.totalorder %s3717_s15, 3 }
   0x4   : > { %p168_p2 = pnand %p2594_p0, %p167_p1 }
   0x6   : > { %171 = sbr.rel (%p168_p2) target bundleno = 638 (0x27e), region = 28 }
   0xb   : > { %v3559_v0 = vld [vmem:[%s4897_s1 + $0x138] sm:$0xff]   ;;  %v3561_v2 = vld [vmem:[%s4897_s1 + $0x130] sm:$0xff]   ;;  %p199_p3 = scmp.lt.s32.totalorder %s2590_s16, 1  ;;  %v3563_v4 = vld [vmem:[%s4897_s1 + $0x128] sm:$0xff]  }
   0xc   : > { %v3560_v1 = vld [vmem:[%s4897_s1 + $0xf8] sm:$0xff]   ;;  %2982 = vmatprep.subr.bf16.mxu0 %v3559_v0  ;;  %3534 = vmatprep.subr.bf16.mxu1 %v3559_v0  ;;  %v3562_v3 = vld [vmem:[%s4897_s1 + $0xf0] sm:$0xff]   ;;  %v3564_v5 = vld [vmem:[%s4897_s1 + $0xe8] sm:$0xff]  }
   0xd   : > { %2983 = vmatpush3.bf16.msra.mxu0 %v3560_v1  ;;  %3542 = vmatpush3.bf16.msra.mxu1 %v3560_v1  ;;  %s4934_s16 = smov (!%p199_p3, %s2590_s16), 1  ;;  %v3565_v6 = vld [vmem:[%s4897_s1 + $0x120] sm:$0xff]   ;;  %v3567_v8 = vld [vmem:[%s4897_s1 + $0x118] sm:$0xff]   ;;  %v3569_v10 = vld [vmem:[%s4897_s1 + $0x110] sm:$0xff]  }
   0xe   : > { %2984 = vmatprep.subr.bf16.mxu0 %v3561_v2  ;;  %3535 = vmatprep.subr.bf16.mxu1 %v3561_v2  ;;  %s3550_s5 = smul.u32 432, %s4934_s16  ;;  %v3566_v7 = vld [vmem:[%s4897_s1 + $0xe0] sm:$0xff]   ;;  %v3568_v9 = vld [vmem:[%s4897_s1 + $0xd8] sm:$0xff]   ;;  %v3570_v13 = vld [vmem:[%s4897_s1 + $0xd0] sm:$0xff]   ;;  %s214_s8 = scalar_lea.vmem %s4900_s4, %s4934_s16 }
   0xf   : > { %v3571_v14 = vld [vmem:[%s4897_s1 + $0x108] sm:$0xff]   ;;  %v3573_v16 = vld [vmem:[%s4897_s1 + $0x100] sm:$0xff]   ;;  %v3581_v18 = vld [vmem:[%s4897_s1 + $0x178] sm:$0xff]  }
  0x10   : > { %s3785_s12 = scalar_lea.vmem %s4896_s0, %s3550_s5  ;;  %v3572_v15 = vld [vmem:[%s4897_s1 + $0xc8] sm:$0xff]   ;;  %v3574_v17 = vld [vmem:[%s4897_s1 + $0xc0] sm:$0xff]   ;;  %v3582_v19 = vld [vmem:[%s4897_s1 + $0xb8] sm:$0xff]   ;;  %s211_s5 = scalar_lea.vmem %s4899_s3, %s4934_s16 }
  0x11   : > { %2985 = vmatpush3.bf16.msra.mxu0 %v3562_v3  ;;  %3543 = vmatpush3.bf16.msra.mxu1 %v3562_v3  ;;  %v3794_v11 = vld [vmem:[%s3785_s12 + $0x1c] ss:$12 sps:$4 sm:$0xff]   ;;  %v3823_v20 = vld [vmem:[%s3785_s12 + $0x18] ss:$12 sps:$4 sm:$0xff]   ;;  %v3583_v22 = vld [vmem:[%s4897_s1 + $0x170] sm:$0xff]  }
  0x12   : > { %2986 = vmatprep.subr.bf16.mxu0 %v3563_v4  ;;  %3536 = vmatprep.subr.bf16.mxu1 %v3563_v4  ;;  %v3797_v12 = vld [vmem:[%s3785_s12 + $0x13c] ss:$12 sps:$4 sm:$0xff]   ;;  %v3826_v21 = vld [vmem:[%s3785_s12 + $0x138] ss:$12 sps:$4 sm:$0xff]   ;;  %v3832_v23 = vld [vmem:[%s3785_s12 + $0x34] ss:$12 sps:$4 sm:$0xff]  }
  0x13   : > { %817 = vmatprep.mubr.bf16.mxu0 %v3794_v11  ;;  %913 = vmatprep.mubr.bf16.mxu1 %v3797_v12  ;;  %v3835_v24 = vld [vmem:[%s3785_s12 + $0x154] ss:$12 sps:$4 sm:$0xff]   ;;  %v3590_v26 = vld [vmem:[%s4897_s1 + $0x168] sm:$0xff]   ;;  %v3851_v28 = vld [vmem:[%s3785_s12 + $0x30] ss:$12 sps:$4 sm:$0xff]  }
  0x14   : > { %v3592_v25 = vld [vmem:[%s4897_s1 + $0xb0] sm:$0xff]   ;;  %v3608_v27 = vld [vmem:[%s4897_s1 + $0xa8] sm:$0xff]   ;;  %v3591_v30 = vld [vmem:[%s4897_s1 + $0x160] sm:$0xff]  }
  0x15   : > { %2987 = vmatpush3.bf16.msra.mxu0 %v3564_v5  ;;  %3544 = vmatpush3.bf16.msra.mxu1 %v3564_v5  ;;  %v3854_v29 = vld [vmem:[%s3785_s12 + $0x150] ss:$12 sps:$4 sm:$0xff]   ;;  %v3860_v31 = vld [vmem:[%s3785_s12 + $0x4c] ss:$12 sps:$4 sm:$0xff]   ;;  %v3617_v33 = vld [vmem:[%s4897_s1 + $0xa0] sm:$0xff]  }
  0x16   : > { %2988 = vmatprep.subr.bf16.mxu0 %v3565_v6  ;;  %3537 = vmatprep.subr.bf16.mxu1 %v3565_v6  ;;  %v3863_v32 = vld [vmem:[%s3785_s12 + $0x16c] ss:$12 sps:$4 sm:$0xff]   ;;  %v3873_v34 = vld [vmem:[%s3785_s12 + $0x48] ss:$12 sps:$4 sm:$0xff]   ;;  %v3885_v38 = vld [vmem:[%s3785_s12 + $0x64] ss:$12 sps:$4 sm:$0xff]  }
  0x17   : > { %v3599_v35 = vld [vmem:[%s4897_s1 + $0x158] sm:$0xff]   ;;  %v3879_v36 = vld [vmem:[%s3785_s12 + $0x168] ss:$12 sps:$4 sm:$0xff]   ;;  %v3603_v39 = vld [vmem:[%s3785_s12 + $0x184] ss:$12 sps:$4 sm:$0xff]  }
  0x18   : > { %v3600_v37 = vld [vmem:[%s4897_s1 + $0x150] sm:$0xff]   ;;  %v3892_v40 = vld [vmem:[%s3785_s12 + $0x60] ss:$12 sps:$4 sm:$0xff]   ;;  %v3902_v44 = vld [vmem:[%s3785_s12 + $0x7c] ss:$12 sps:$4 sm:$0xff]  }
  0x19   : > { %2989 = vmatpush3.bf16.msra.mxu0 %v3566_v7  ;;  %3545 = vmatpush3.bf16.msra.mxu1 %v3566_v7  ;;  %v3607_v41 = vld [vmem:[%s4897_s1 + $0x148] sm:$0xff]   ;;  %v3609_v43 = vld [vmem:[%s4897_s1 + $0x140] sm:$0xff]   ;;  %v3632_v45 = vld [vmem:[%s4897_s1 + $0x98] sm:$0xff]  }
  0x1a   : > { %2990 = vmatprep.subr.bf16.mxu0 %v3567_v8  ;;  %3538 = vmatprep.subr.bf16.mxu1 %v3567_v8  ;;  %v3606_v42 = vld [vmem:[%s3785_s12 + $0x180] ss:$12 sps:$4 sm:$0xff]   ;;  %v3914_v47 = vld [vmem:[%s3785_s12 + $0x78] ss:$12 sps:$4 sm:$0xff]   ;;  %v3640_v51 = vld [vmem:[%s4897_s1 + $0x90] sm:$0xff]  }
  0x1b   : > { %v3908_v46 = vld [vmem:[%s3785_s12 + $0x20] ss:$12 sps:$4 sm:$0xff]   ;;  %v3917_v48 = vld [vmem:[%s3785_s12 + $0x38] ss:$12 sps:$4 sm:$0xff]   ;;  %v3932_v53 = vld [vmem:[%s3785_s12 + $0x50] ss:$12 sps:$4 sm:$0xff]  }
  0x1c   : > { %v3615_v49 = vld [vmem:[%s4897_s1 + $0x78] sm:$0xff]   ;;  %v3929_v52 = vld [vmem:[%s3785_s12 + $0x94] ss:$12 sps:$4 sm:$0xff]   ;;  %v3630_v57 = vld [vmem:[%s4897_s1 + $0x68] sm:$0xff]  }
  0x1d   : > { %2991 = vmatpush3.bf16.msra.mxu0 %v3568_v9  ;;  %3546 = vmatpush3.bf16.msra.mxu1 %v3568_v9  ;;  %v3616_v50 = vld [vmem:[%s4897_s1 + $0x38] sm:$0xff]   ;;  %v3623_v54 = vld [vmem:[%s4897_s1 + $0x70] sm:$0xff]   ;;  %v3957_v60 = vld [vmem:[%s3785_s12 + $0x80] ss:$12 sps:$4 sm:$0xff]  }
  0x1e   : > { %2992 = vmatprep.subr.bf16.mxu0 %v3569_v10  ;;  %3539 = vmatprep.subr.bf16.mxu1 %v3569_v10  ;;  %v3624_v55 = vld [vmem:[%s4897_s1 + $0x30] sm:$0xff]   ;;  %v3954_v59 = vld [vmem:[%s3785_s12 + $0xac] ss:$12 sps:$4 sm:$0xff]   ;;  %v3638_v62 = vld [vmem:[%s4897_s1 + $0x60] sm:$0xff]  }
  0x1f   : > { %v3945_v56 = vld [vmem:[%s3785_s12 + $0x90] ss:$12 sps:$4 sm:$0xff]   ;;  %v3951_v58 = vld [vmem:[%s3785_s12 + $0x68] ss:$12 sps:$4 sm:$0xff]   ;;  %v3976_v1 = vld [vmem:[%s3785_s12 + $0x98] ss:$12 sps:$4 sm:$0xff]  }
  0x20   : > { %v3631_v61 = vld [vmem:[%s4897_s1 + $0x28] sm:$0xff]   ;;  %v3639_v2 = vld [vmem:[%s4897_s1 + $0x20] sm:$0xff]   ;;  %v3646_v4 = vld [vmem:[%s4897_s1 + $0x58] sm:$0xff]  }
  0x21   : > { %2993 = vmatpush3.bf16.msra.mxu0 %v3570_v13  ;;  %3547 = vmatpush3.bf16.msra.mxu1 %v3570_v13  ;;  %v3655_v63 = vld [vmem:[%s4897_s1 + $0x88] sm:$0xff]   ;;  %v3982_v3 = vld [vmem:[%s3785_s12 + $0xc4] ss:$12 sps:$4 sm:$0xff]   ;;  %v3647_v7 = vld [vmem:[%s4897_s1 + $0x18] sm:$0xff]  }
  0x22   : > { %2994 = vmatprep.subr.bf16.mxu0 %v3571_v14  ;;  %3540 = vmatprep.subr.bf16.mxu1 %v3571_v14  ;;  %v3973_v0 = vld [vmem:[%s3785_s12 + $0xa8] ss:$12 sps:$4 sm:$0xff]   ;;  %v3988_v5 = vld [vmem:[%s3785_s12 + $0xb0] ss:$12 sps:$4 sm:$0xff]   ;;  %v3663_v6 = vld [vmem:[%s4897_s1 + $0x80] sm:$0xff]  }
  0x23   : > { %v3653_v8 = vld [vmem:[%s4897_s1 + $0x50] sm:$0xff]   ;;  %v4004_v9 = vld [vmem:[%s3785_s12 + $0xc0] ss:$12 sps:$4 sm:$0xff]  }
  0x24   : > { %v4007_v10 = vld [vmem:[%s3785_s12 + $0xc8] ss:$12 sps:$4 sm:$0xff]  }
  0x25   : > { %2995 = vmatpush3.bf16.msra.mxu0 %v3572_v15  ;;  %3548 = vmatpush3.bf16.msra.mxu1 %v3572_v15  ;;  %v3654_v13 = vld [vmem:[%s4897_s1 + $0x10] sm:$0xff]   ;;  %v3661_v14 = vld [vmem:[%s4897_s1 + $0x48] sm:$0xff]  }
  0x26   : > { %2996 = vmatprep.subr.bf16.mxu0 %v3573_v16  ;;  %3541 = vmatprep.subr.bf16.mxu1 %v3573_v16  ;;  %v4016_v15 = vld [vmem:[%s3785_s12 + $0xdc] ss:$12 sps:$4 sm:$0xff]   ;;  %v4019_v16 = vld [vmem:[%s3785_s12 + $0xe0] ss:$12 sps:$4 sm:$0xff]  }
  0x29   : > { %2997 = vmatpush3.bf16.msra.mxu0 %v3574_v17  ;;  %3549 = vmatpush3.bf16.msra.mxu1 %v3574_v17  ;;  %v3662_v17 = vld [vmem:[%s4897_s1 + $0x8] sm:$0xff]  }
  0x2a   : > { %3390 = vmatprep.subr.bf16.mxu1 %v3581_v18  ;;  %3438 = vmatprep.subr.bf16.mxu0 %v3582_v19 }
  0x2c   : > { %818 = vmatmul.mubr.bf16.vlgmr.msra.gmra.mxu0 %v3823_v20  ;;  %914 = vmatmul.mubr.bf16.vlgmr.msra.gmra.mxu1 %v3826_v21 }
  0x2d   : > { %3391 = vmatpush3.bf16.msra.mxu1 %v3581_v18  ;;  %3439 = vmatpush3.bf16.msra.mxu0 %v3582_v19  ;;  %v3669_v18 = vld [vmem:[%s4897_s1 + $0x40] sm:$0xff]   ;;  %v3676_v19 = vld [vmem:[%s4897_s1 + $0x1f8] sm:$0xff]  }
  0x2e   : > { %3392 = vmatprep.subr.bf16.mxu1 %v3583_v22  ;;  %825 = vmatprep.mubr.bf16.mxu0 %v3832_v23 }
  0x2f   : > { %921 = vmatprep.mubr.bf16.mxu1 %v3835_v24  ;;  %3440 = vmatprep.subr.bf16.mxu0 %v3592_v25 }
  0x31   : > { %3393 = vmatpush3.bf16.msra.mxu1 %v3583_v22  ;;  %3441 = vmatpush3.bf16.msra.mxu0 %v3592_v25  ;;  %v4035_v22 = vld [vmem:[%s3785_s12 + $0xd8] ss:$12 sps:$4 sm:$0xff]  }
  0x32   : > { %3394 = vmatprep.subr.bf16.mxu1 %v3590_v26  ;;  %3442 = vmatprep.subr.bf16.mxu0 %v3608_v27  ;;  %v4038_v25 = vld [vmem:[%s3785_s12 + $0xf8] ss:$12 sps:$4 sm:$0xff]  }
  0x34   : > { %826 = vmatmul.mubr.bf16.gmra.mxu0 %v3851_v28  ;;  %922 = vmatmul.mubr.bf16.gmra.mxu1 %v3854_v29 }
  0x35   : > { %3395 = vmatpush3.bf16.msra.mxu1 %v3590_v26  ;;  %833 = vmatprep.mubr.bf16.mxu0 %v3860_v31  ;;  %v3670_v26 = vld [vmem:[%s4897_s1] sm:$0xff]  }
  0x36   : > { %3396 = vmatprep.subr.bf16.mxu1 %v3591_v30  ;;  %929 = vmatprep.mubr.bf16.mxu1 %v3863_v32 }
  0x37   : > { %3443 = vmatpush3.bf16.msra.mxu0 %v3608_v27  ;;  %v3675_v27 = vld [vmem:[%s4897_s1 + $0x238] sm:$0xff]  }
  0x38   : > { %3444 = vmatprep.subr.bf16.mxu0 %v3617_v33 }
  0x39   : > { %3397 = vmatpush3.bf16.msra.mxu1 %v3591_v30  ;;  %v4047_v30 = vld [vmem:[%s3785_s12 + $0xf4] ss:$12 sps:$4 sm:$0xff]  }
  0x3a   : > { %3398 = vmatprep.subr.bf16.mxu1 %v3599_v35 }
  0x3b   : > { %3445 = vmatpush3.bf16.msra.mxu0 %v3617_v33  ;;  %v4050_v33 = vld [vmem:[%s3785_s12 + $0x110] ss:$12 sps:$4 sm:$0xff]  }
  0x3c   : > { %834 = vmatmul.mubr.bf16.gmra.mxu0 %v3873_v34  ;;  %930 = vmatmul.mubr.bf16.gmra.mxu1 %v3879_v36 }
  0x3d   : > { %3399 = vmatpush3.bf16.msra.mxu1 %v3599_v35  ;;  %841 = vmatprep.mubr.bf16.mxu0 %v3885_v38  ;;  %v4057_v35 = vld [vmem:[%s3785_s12 + $0xf0] ss:$12 sps:$4 sm:$0xff]  }
  0x3e   : > { %3400 = vmatprep.subr.bf16.mxu1 %v3600_v37  ;;  %937 = vmatprep.mubr.bf16.mxu1 %v3603_v39  ;;  %v4063_v39 = vld [vmem:[%s3785_s12 + $0x10c] ss:$12 sps:$4 sm:$0xff]  }
  0x3f   : > { %3446 = vmatprep.subr.bf16.mxu0 %v3632_v45 }
  0x40   : > { %3447 = vmatpush3.bf16.msra.mxu0 %v3632_v45  ;;  %v4079_v45 = vld [vmem:[%s3785_s12 + $0x124] ss:$12 sps:$4 sm:$0xff]  }
  0x41   : > { %3401 = vmatpush3.bf16.msra.mxu1 %v3600_v37  ;;  %3448 = vmatprep.subr.bf16.mxu0 %v3640_v51  ;;  %v4060_v37 = vld [vmem:[%s3785_s12 + $0x128] ss:$12 sps:$4 sm:$0xff]  }
  0x42   : > { %3402 = vmatprep.subr.bf16.mxu1 %v3607_v41 }
  0x44   : > { %842 = vmatmul.mubr.bf16.gmra.mxu0 %v3892_v40  ;;  %938 = vmatmul.mubr.bf16.gmra.mxu1 %v3606_v42  ;;  %v4073_v42 = vld [vmem:[%s3785_s12 + $0x108] ss:$12 sps:$4 sm:$0xff]  }
  0x45   : > { %3403 = vmatpush3.bf16.msra.mxu1 %v3607_v41  ;;  %849 = vmatprep.mubr.bf16.mxu0 %v3902_v44  ;;  %v4066_v41 = vld [vmem:[%s3785_s12 + $0x140] ss:$12 sps:$4 sm:$0xff]  }
  0x46   : > { %3404 = vmatprep.subr.bf16.mxu1 %v3609_v43  ;;  %3406 = vmatprep.mubr.bf16.mxu1 %v3908_v46 }
  0x47   : > { %3449 = vmatpush3.bf16.msra.mxu0 %v3640_v51  ;;  %v4092_v51 = vld [vmem:[%s3785_s12 + $0x188] ss:$12 sps:$4 sm:$0xff]  }
  0x48   : > { %3450 = vmatprep.subr.bf16.mxu0 %v3655_v63 }
  0x49   : > { %3405 = vmatpush3.bf16.msra.mxu1 %v3609_v43  ;;  %v4076_v43 = vld [vmem:[%s3785_s12 + $0x158] ss:$12 sps:$4 sm:$0xff]  }
  0x4a   : > { %3118 = vmatprep.subr.bf16.mxu1 %v3615_v49  ;;  %v4082_v49 = vld [vmem:[%s3785_s12 + $0x170] ss:$12 sps:$4 sm:$0xff]  }
  0x4b   : > { %3451 = vmatpush3.bf16.msra.mxu0 %v3655_v63  ;;  %v3680_v63 = vld [vmem:[%s4897_s1 + $0x230] sm:$0xff]  }
  0x4c   : > { %850 = vmatmul.mubr.bf16.gmra.mxu0 %v3914_v47  ;;  %3407 = vmatmul.mubr.bf16.vlgmr.msra.gmra.mxu1 %v3917_v48 }
  0x4d   : > { %3119 = vmatpush3.bf16.msra.mxu1 %v3616_v50  ;;  %857 = vmatprep.mubr.bf16.mxu0 %v3929_v52  ;;  %v4089_v50 = vld [vmem:[%s3785_s12 + $0x120] ss:$12 sps:$4 sm:$0xff]  }
  0x4e   : > { %3410 = vmatprep.mubr.bf16.mxu1 %v3932_v53  ;;  %3120 = vmatprep.subr.bf16.mxu1 %v3623_v54  ;;  %v3673_v54 = vld [vmem:[%s3785_s12 + $0x4] ss:$12 sps:$4 sm:$0xff]  }
  0x4f   : > { %3452 = vmatprep.subr.bf16.mxu0 %v3663_v6 }
  0x50   : > { %3453 = vmatpush3.bf16.msra.mxu0 %v3663_v6  ;;  %v3685_v6 = vld [vmem:[%s4897_s1 + $0x228] sm:$0xff]  }
  0x51   : > { %3121 = vmatpush3.bf16.msra.mxu1 %v3624_v55  ;;  %3254 = vmatprep.subr.bf16.mxu0 %v3676_v19  ;;  %v3674_v55 = vld [vmem:[%s3785_s12 + $0x8] ss:$12 sps:$4 sm:$0xff]  }
  0x52   : > { %3122 = vmatprep.subr.bf16.mxu1 %v3630_v57  ;;  %v3671_v57 = vld [vmem:[%s3785_s12] ss:$12 sps:$4 sm:$0xff]   ;;  %v3689_v19 = vld [vmem:[%s4897_s1 + $0x190] sm:$0xff]  }
  0x54   : > { %858 = vmatmul.mubr.bf16.gmra.mxu0 %v3945_v56  ;;  %3411 = vmatmul.mubr.bf16.gmra.mxu1 %v3951_v58 }
  0x55   : > { %865 = vmatprep.mubr.bf16.mxu0 %v3954_v59  ;;  %3414 = vmatprep.mubr.bf16.mxu1 %v3957_v60 }
  0x56   : > { %3123 = vmatpush3.bf16.msra.mxu1 %v3631_v61  ;;  %v3677_v61 = vld [vmem:[%s4897_s1 + $0x1b8] sm:$0xff]  }
  0x57   : > { %3124 = vmatprep.subr.bf16.mxu1 %v3638_v62  ;;  %v3678_v62 = vld [vmem:[%s4897_s1 + $0x1f0] sm:$0xff]  }
  0x5a   : > { %3125 = vmatpush3.bf16.msra.mxu1 %v3639_v2  ;;  %v3679_v2 = vld [vmem:[%s4897_s1 + $0x1b0] sm:$0xff]  }
  0x5b   : > { %3126 = vmatprep.subr.bf16.mxu1 %v3646_v4  ;;  %v3681_v4 = vld [vmem:[%s4897_s1 + $0x1e8] sm:$0xff]  }
  0x5c   : > { %866 = vmatmul.mubr.bf16.gmra.mxu0 %v3973_v0  ;;  %3415 = vmatmul.mubr.bf16.gmra.mxu1 %v3976_v1 }
  0x5d   : > { %873 = vmatprep.mubr.bf16.mxu0 %v3982_v3  ;;  %3418 = vmatprep.mubr.bf16.mxu1 %v3988_v5 }
  0x5e   : > { %3127 = vmatpush3.bf16.msra.mxu1 %v3647_v7  ;;  %v3690_v7 = vld [vmem:[%s4897_s1 + $0x220] sm:$0xff]  }
  0x5f   : > { %3128 = vmatprep.subr.bf16.mxu1 %v3653_v8  ;;  %v3684_v8 = vld [vmem:[%s4897_s1 + $0x1a0] sm:$0xff]  }
  0x62   : > { %3129 = vmatpush3.bf16.msra.mxu1 %v3654_v13  ;;  %v3686_v13 = vld [vmem:[%s4897_s1 + $0x1d8] sm:$0xff]  }
  0x63   : > { %3130 = vmatprep.subr.bf16.mxu1 %v3661_v14  ;;  %v3687_v14 = vld [vmem:[%s4897_s1 + $0x198] sm:$0xff]  }
  0x64   : > { %874 = vmatmul.mubr.bf16.gmra.mxu0 %v4004_v9  ;;  %3419 = vmatmul.mubr.bf16.gmra.mxu1 %v4007_v10 }
  0x65   : > { %881 = vmatprep.mubr.bf16.mxu0 %v4016_v15  ;;  %3422 = vmatprep.mubr.bf16.mxu1 %v4019_v16 }
  0x66   : > { %3131 = vmatpush3.bf16.msra.mxu1 %v3662_v17  ;;  %v3688_v17 = vld [vmem:[%s4897_s1 + $0x1d0] sm:$0xff]  }
  0x67   : > { %3132 = vmatprep.subr.bf16.mxu1 %v3669_v18  ;;  %v3696_v18 = vld [vmem:[%s4897_s1 + $0x210] sm:$0xff]  }
  0x6a   : > { %3133 = vmatpush3.bf16.msra.mxu1 %v3670_v26  ;;  %v3691_v26 = vld [vmem:[%s4897_s1 + $0x1c8] sm:$0xff]  }
  0x6b   : > { %3486 = vmatprep.subr.bf16.mxu1 %v3675_v27 }
  0x6c   : > { %882 = vmatmul.mubr.bf16.gmra.mxu0 %v4035_v22  ;;  %3423 = vmatmul.mubr.bf16.gmra.mxu1 %v4038_v25 }
  0x6d   : > { %889 = vmatprep.mubr.bf16.mxu0 %v4047_v30  ;;  %3426 = vmatprep.mubr.bf16.mxu1 %v4050_v33 }
  0x74   : > { %890 = vmatmul.mubr.bf16.gmra.mxu0 %v4057_v35  ;;  %3427 = vmatmul.mubr.bf16.gmra.mxu1 %v4060_v37 }
  0x75   : > { %897 = vmatprep.mubr.bf16.mxu0 %v4063_v39  ;;  %3430 = vmatprep.mubr.bf16.mxu1 %v4066_v41 }
  0x7c   : > { %898 = vmatmul.mubr.bf16.gmra.mxu0 %v4073_v42  ;;  %3431 = vmatmul.mubr.bf16.gmra.mxu1 %v4076_v43 }
  0x7d   : > { %905 = vmatprep.mubr.bf16.mxu0 %v4079_v45  ;;  %3434 = vmatprep.mubr.bf16.mxu1 %v4082_v49 }
  0x84   : > { %906 = vmatmul.mubr.bf16.gmra.mxu0 %v4089_v50  ;;  %3435 = vmatmul.mubr.bf16.gmra.mxu1 %v4092_v51 }
  0x85   : > { %1299 = vmatprep.mubr.bf16.mxu1 %v3673_v54  ;;  %3454 = vmatprep.mubr.bf16.mxu0 %v3674_v55  ;;  %v3692_v54 = vld [vmem:[%s4897_s1 + $0x188] sm:$0xff]   ;;  %v3693_v55 = vld [vmem:[%s4897_s1 + $0x1c0] sm:$0xff]  }
  0x8c   : > { %1300 = vmatmul.mubr.bf16.vlgmr.msra.gmra.mxu1 %v3671_v57  ;;  %3455 = vmatmul.mubr.bf16.vlgmr.msra.gmra.mxu0 %v3908_v46  ;;  %v3682_v46 = vld [vmem:[%s4897_s1 + $0x1a8] sm:$0xff]   ;;  %v3698_v57 = vld [vmem:[%s4897_s1 + $0x200] sm:$0xff]  }
  0x8d   : > { %3487 = vmatpush3.bf16.msra.mxu1 %v3675_v27  ;;  %3255 = vmatpush3.bf16.msra.mxu0 %v3677_v61  ;;  %v3697_v27 = vld [vmem:[%s4897_s1 + $0x208] sm:$0xff]   ;;  %v3694_v61 = vld [vmem:[%s4897_s1 + $0x180] sm:$0xff]  }
  0x8e   : > { %1307 = vmatprep.mubr.bf16.mxu1 %v3794_v11  ;;  %3458 = vmatprep.mubr.bf16.mxu0 %v3917_v48  ;;  %v3683_v11 = vld [vmem:[%s4897_s1 + $0x1e0] sm:$0xff]  }
  0x8f   : > { %3256 = vmatprep.subr.bf16.mxu0 %v3678_v62  ;;  %3488 = vmatprep.subr.bf16.mxu1 %v3680_v63 }
  0x91   : > { %3257 = vmatpush3.bf16.msra.mxu0 %v3679_v2  ;;  %3489 = vmatpush3.bf16.msra.mxu1 %v3680_v63 }
  0x92   : > { %3258 = vmatprep.subr.bf16.mxu0 %v3681_v4  ;;  %3490 = vmatprep.subr.bf16.mxu1 %v3685_v6 }
  0x94   : > { %1308 = vmatmul.mubr.bf16.gmra.mxu1 %v3823_v20  ;;  %3459 = vmatmul.mubr.bf16.gmra.mxu0 %v3932_v53  ;;  %v3695_v20 = vld [vmem:[%s4897_s1 + $0x218] sm:$0xff]  }
  0x95   : > { %1315 = vmatprep.mubr.bf16.mxu1 %v3832_v23  ;;  %3462 = vmatprep.mubr.bf16.mxu0 %v3951_v58 }
  0x96   : > { %3259 = vmatpush3.bf16.msra.mxu0 %v3682_v46  ;;  %3491 = vmatpush3.bf16.msra.mxu1 %v3685_v6 }
  0x97   : > { %3260 = vmatprep.subr.bf16.mxu0 %v3683_v11  ;;  %3492 = vmatprep.subr.bf16.mxu1 %v3690_v7 }
  0x9a   : > { %3261 = vmatpush3.bf16.msra.mxu0 %v3684_v8  ;;  %3493 = vmatpush3.bf16.msra.mxu1 %v3690_v7 }
  0x9b   : > { %3262 = vmatprep.subr.bf16.mxu0 %v3686_v13  ;;  %3494 = vmatprep.subr.bf16.mxu1 %v3695_v20 }
  0x9c   : > { %1316 = vmatmul.mubr.bf16.gmra.mxu1 %v3851_v28  ;;  %3463 = vmatmul.mubr.bf16.gmra.mxu0 %v3957_v60 }
  0x9d   : > { %1323 = vmatprep.mubr.bf16.mxu1 %v3860_v31  ;;  %3466 = vmatprep.mubr.bf16.mxu0 %v3976_v1 }
  0x9e   : > { %3263 = vmatpush3.bf16.msra.mxu0 %v3687_v14  ;;  %3495 = vmatpush3.bf16.msra.mxu1 %v3695_v20 }
  0x9f   : > { %3264 = vmatprep.subr.bf16.mxu0 %v3688_v17  ;;  %3496 = vmatprep.subr.bf16.mxu1 %v3696_v18 }
  0xa2   : > { %3265 = vmatpush3.bf16.msra.mxu0 %v3689_v19  ;;  %3497 = vmatpush3.bf16.msra.mxu1 %v3696_v18 }
  0xa3   : > { %3266 = vmatprep.subr.bf16.mxu0 %v3691_v26  ;;  %3498 = vmatprep.subr.bf16.mxu1 %v3697_v27 }
  0xa4   : > { %1324 = vmatmul.mubr.bf16.gmra.mxu1 %v3873_v34  ;;  %3467 = vmatmul.mubr.bf16.gmra.mxu0 %v3988_v5 }
  0xa5   : > { %1331 = vmatprep.mubr.bf16.mxu1 %v3885_v38  ;;  %3470 = vmatprep.mubr.bf16.mxu0 %v4007_v10 }
  0xa6   : > { %3267 = vmatpush3.bf16.msra.mxu0 %v3692_v54  ;;  %3499 = vmatpush3.bf16.msra.mxu1 %v3697_v27 }
  0xa7   : > { %3268 = vmatprep.subr.bf16.mxu0 %v3693_v55  ;;  %3500 = vmatprep.subr.bf16.mxu1 %v3698_v57 }
  0xaa   : > { %3269 = vmatpush3.bf16.msra.mxu0 %v3694_v61  ;;  %3501 = vmatpush3.bf16.msra.mxu1 %v3698_v57 }
  0xac   : > { %1332 = vmatmul.mubr.bf16.gmra.mxu1 %v3892_v40  ;;  %3471 = vmatmul.mubr.bf16.gmra.mxu0 %v4019_v16 }
  0xad   : > { %1339 = vmatprep.mubr.bf16.mxu1 %v3902_v44  ;;  %3474 = vmatprep.mubr.bf16.mxu0 %v4038_v25 }
  0xb4   : > { %1340 = vmatmul.mubr.bf16.gmra.mxu1 %v3914_v47  ;;  %3475 = vmatmul.mubr.bf16.gmra.mxu0 %v4050_v33 }
  0xb5   : > { %1347 = vmatprep.mubr.bf16.mxu1 %v3929_v52  ;;  %3478 = vmatprep.mubr.bf16.mxu0 %v4060_v37 }
  0xbc   : > { %1348 = vmatmul.mubr.bf16.gmra.mxu1 %v3945_v56  ;;  %3479 = vmatmul.mubr.bf16.gmra.mxu0 %v4066_v41 }
  0xbd   : > { %1355 = vmatprep.mubr.bf16.mxu1 %v3954_v59  ;;  %3482 = vmatprep.mubr.bf16.mxu0 %v4076_v43 }
  0xc4   : > { %1356 = vmatmul.mubr.bf16.gmra.mxu1 %v3973_v0  ;;  %3483 = vmatmul.mubr.bf16.gmra.mxu0 %v4082_v49 }
  0xc5   : > { %1363 = vmatprep.mubr.bf16.mxu1 %v3982_v3  ;;  %1830 = vmatprep.mubr.bf16.mxu0 %v3832_v23 }
  0xcc   : > { %1364 = vmatmul.mubr.bf16.gmra.mxu1 %v4004_v9  ;;  %1831 = vmatmul.mubr.bf16.vlgmr.msra.gmra.mxu0 %v3851_v28 }
  0xcd   : > { %1371 = vmatprep.mubr.bf16.mxu1 %v4016_v15  ;;  %1838 = vmatprep.mubr.bf16.mxu0 %v3860_v31 }
  0xd4   : > { %1372 = vmatmul.mubr.bf16.gmra.mxu1 %v4035_v22  ;;  %1839 = vmatmul.mubr.bf16.gmra.mxu0 %v3873_v34 }
  0xd5   : > { %1379 = vmatprep.mubr.bf16.mxu1 %v4047_v30  ;;  %1846 = vmatprep.mubr.bf16.mxu0 %v3885_v38 }
  0xdc   : > { %1380 = vmatmul.mubr.bf16.gmra.mxu1 %v4057_v35  ;;  %1847 = vmatmul.mubr.bf16.gmra.mxu0 %v3892_v40 }
  0xdd   : > { %1387 = vmatprep.mubr.bf16.mxu1 %v4063_v39  ;;  %1854 = vmatprep.mubr.bf16.mxu0 %v3902_v44 }
  0xe4   : > { %1388 = vmatmul.mubr.bf16.gmra.mxu1 %v4073_v42  ;;  %1855 = vmatmul.mubr.bf16.gmra.mxu0 %v3914_v47 }
  0xe5   : > { %1395 = vmatprep.mubr.bf16.mxu1 %v4079_v45  ;;  %1862 = vmatprep.mubr.bf16.mxu0 %v3929_v52 }
  0xec   : > { %v2998_v23 = vpop.f32.mrf.mxu0  ;;  %v3070_v28 = vpop.f32.mrf.mxu1  ;;  %1396 = vmatmul.mubr.bf16.gmra.mxu1 %v4089_v50  ;;  %1863 = vmatmul.mubr.bf16.gmra.mxu0 %v3945_v56 }
  0xed   : > { %1403 = vmatprep.mubr.bf16.mxu1 %v3797_v12  ;;  %1870 = vmatprep.mubr.bf16.mxu0 %v3954_v59 }
  0xee   : > { %v2999_v31 = vpop.f32.mrf.mxu0  ;;  %v3071_v34 = vpop.f32.mrf.mxu1 }
  0xef   : > { %v4216_v38 = vadd.f32 %v2999_v31, %v2998_v23  ;;  %v4218_v40 = vadd.f32 %v3071_v34, %v3070_v28 }
  0xf0   : > { %v3001_v44 = vpop.f32.mrf.mxu0  ;;  %v3073_v47 = vpop.f32.mrf.mxu1 }
  0xf2   : > { %v3002_v62 = vpop.f32.mrf.mxu0  ;;  %v3074_v52 = vpop.f32.mrf.mxu1 }
  0xf3   : > { %v4220_v63 = vadd.f32 %v3002_v62, %v3001_v44  ;;  %v4222_v2 = vadd.f32 %v3074_v52, %v3073_v47 }
  0xf4   : > { %v3004_v4 = vpop.f32.mrf.mxu0  ;;  %v3076_v56 = vpop.f32.mrf.mxu1  ;;  %1404 = vmatmul.mubr.bf16.gmra.mxu1 %v3826_v21  ;;  %1871 = vmatmul.mubr.bf16.gmra.mxu0 %v3973_v0 }
  0xf5   : > { %1411 = vmatprep.mubr.bf16.mxu1 %v3835_v24  ;;  %1878 = vmatprep.mubr.bf16.mxu0 %v3982_v3 }
  0xf6   : > { %v3005_v12 = vpop.f32.mrf.mxu0  ;;  %v3077_v59 = vpop.f32.mrf.mxu1 }
  0xf7   : > { %v3006_v6 = vadd.f32 %v3005_v12, %v3004_v4  ;;  %v4228_v46 = vadd.f32 %v3077_v59, %v3076_v56 }
  0xf8   : > { %v3007_v11 = vpop.f32.mrf.mxu0  ;;  %v3079_v7 = vpop.f32.mrf.mxu1 }
  0xfa   : > { %v3008_v8 = vpop.f32.mrf.mxu0  ;;  %v3080_v13 = vpop.f32.mrf.mxu1 }
  0xfb   : > { %v3009_v20 = vadd.f32 %v3008_v8, %v3007_v11  ;;  %v4230_v14 = vadd.f32 %v3080_v13, %v3079_v7 }
  0xfc   : > { %v3010_v17 = vpop.f32.mrf.mxu0  ;;  %v3082_v21 = vpop.f32.mrf.mxu1  ;;  %1412 = vmatmul.mubr.bf16.gmra.mxu1 %v3854_v29  ;;  %1879 = vmatmul.mubr.bf16.gmra.mxu0 %v4004_v9 }
  0xfd   : > { %1419 = vmatprep.mubr.bf16.mxu1 %v3863_v32  ;;  %1886 = vmatprep.mubr.bf16.mxu0 %v4016_v15 }
  0xfe   : > { %v3011_v24 = vpop.f32.mrf.mxu0  ;;  %v3083_v0 = vpop.f32.mrf.mxu1 }
  0xff   : > { %v3012_v3 = vadd.f32 %v3011_v24, %v3010_v17  ;;  %v4236_v18 = vadd.f32 %v3083_v0, %v3082_v21 }
 0x100   : > { %v3013_v19 = vpop.f32.mrf.mxu0  ;;  %v3085_v26 = vpop.f32.mrf.mxu1 }
 0x102   : > { %v3014_v27 = vpop.f32.mrf.mxu0  ;;  %v3086_v54 = vpop.f32.mrf.mxu1 }
 0x103   : > { %v3015_v55 = vadd.f32 %v3014_v27, %v3013_v19  ;;  %v4238_v57 = vadd.f32 %v3086_v54, %v3085_v26 }
 0x104   : > { %v3016_v61 = vpop.f32.mrf.mxu0  ;;  %v3088_v29 = vpop.f32.mrf.mxu1  ;;  %1420 = vmatmul.mubr.bf16.gmra.mxu1 %v3879_v36  ;;  %1887 = vmatmul.mubr.bf16.gmra.mxu0 %v4035_v22 }
 0x105   : > { %1894 = vmatprep.mubr.bf16.mxu0 %v4047_v30  ;;  %3502 = vmatprep.mubr.bf16.mxu1 %v3917_v48 }
 0x106   : > { %v3017_v32 = vpop.f32.mrf.mxu0  ;;  %v3089_v9 = vpop.f32.mrf.mxu1 }
 0x107   : > { %v3018_v15 = vadd.f32 %v3017_v32, %v3016_v61  ;;  %v4244_v23 = vadd.f32 %v3089_v9, %v3088_v29 }
 0x108   : > { %v3019_v28 = vpop.f32.mrf.mxu0  ;;  %v3091_v31 = vpop.f32.mrf.mxu1 }
 0x10a   : > { %v3020_v34 = vpop.f32.mrf.mxu0  ;;  %v3092_v44 = vpop.f32.mrf.mxu1 }
 0x10b   : > { %v3021_v47 = vadd.f32 %v3020_v34, %v3019_v28  ;;  %v4246_v62 = vadd.f32 %v3092_v44, %v3091_v31  ;;  %v3704_v44 = vld [vmem:[%s3785_s12 + $0x138] ss:$12 sps:$4 sm:$0xff]  }
 0x10c   : > { %v3022_v52 = vpop.f32.mrf.mxu0  ;;  %v3408_v36 = vpop.f32.mrf.mxu1  ;;  %1895 = vmatmul.mubr.bf16.gmra.mxu0 %v4057_v35  ;;  %3503 = vmatmul.mubr.bf16.vlgmr.msra.gmra.mxu1 %v3932_v53 }
 0x10d   : > { %v4250_v22 = vadd.f32 %v3408_v36, %v3006_v6  ;;  %1902 = vmatprep.mubr.bf16.mxu0 %v4063_v39  ;;  %3506 = vmatprep.mubr.bf16.mxu1 %v3951_v58 }
 0x10e   : > { %v3023_v48 = vpop.f32.mrf.mxu0  ;;  %v980_v30 = vpop.f32.mrf.mxu1 }
 0x10f   : > { %v3024_v4 = vadd.f32 %v3023_v48, %v3022_v52  ;;  %v4255_v56 = vadd.f32 %v4216_v38, %v980_v30 }
 0x110   : > { %v3025_v12 = vpop.f32.mrf.mxu0  ;;  %v3409_v59 = vpop.f32.mrf.mxu1 }
 0x111   : > { %v4257_v11 = vadd.f32 %v3409_v59, %v3009_v20 }
 0x112   : > { %v3026_v7 = vpop.f32.mrf.mxu0  ;;  %v983_v35 = vpop.f32.mrf.mxu1 }
 0x113   : > { %v3027_v8 = vadd.f32 %v3026_v7, %v3025_v12  ;;  %v4260_v53 = vadd.f32 %v4220_v63, %v983_v35 }
 0x114   : > { %v3028_v6 = vpop.f32.mrf.mxu0  ;;  %v3412_v39 = vpop.f32.mrf.mxu1  ;;  %1903 = vmatmul.mubr.bf16.gmra.mxu0 %v4073_v42  ;;  %3507 = vmatmul.mubr.bf16.gmra.mxu1 %v3957_v60 }
 0x115   : > { %v4264_v58 = vadd.f32 %v3412_v39, %v3018_v15  ;;  %1910 = vmatprep.mubr.bf16.mxu0 %v4079_v45  ;;  %3510 = vmatprep.mubr.bf16.mxu1 %v3976_v1  ;;  %v3703_v45 = vld [vmem:[%s3785_s12 + $0x13c] ss:$12 sps:$4 sm:$0xff]  }
 0x116   : > { %v3029_v38 = vpop.f32.mrf.mxu0  ;;  %v996_v13 = vpop.f32.mrf.mxu1  ;;  %v3706_v39 = vld [vmem:[%s3785_s12 + $0x150] ss:$12 sps:$4 sm:$0xff]  }
 0x117   : > { %v3030_v20 = vadd.f32 %v3029_v38, %v3028_v6  ;;  %v4268_v17 = vadd.f32 %v3012_v3, %v996_v13  ;;  %v3707_v38 = vld [vmem:[%s3785_s12 + $0x16c] ss:$12 sps:$4 sm:$0xff]  }
 0x118   : > { %v3031_v63 = vpop.f32.mrf.mxu0  ;;  %v3413_v21 = vpop.f32.mrf.mxu1 }
 0x119   : > { %v4270_v24 = vadd.f32 %v3413_v21, %v3021_v47 }
 0x11a   : > { %v3032_v0 = vpop.f32.mrf.mxu0  ;;  %v999_v42 = vpop.f32.mrf.mxu1 }
 0x11b   : > { %v3033_v19 = vadd.f32 %v3032_v0, %v3031_v63  ;;  %v4272_v60 = vadd.f32 %v3015_v55, %v999_v42 }
 0x11c   : > { %v3034_v26 = vpop.f32.mrf.mxu0  ;;  %v3416_v27 = vpop.f32.mrf.mxu1  ;;  %1911 = vmatmul.mubr.bf16.gmra.mxu0 %v4089_v50  ;;  %3511 = vmatmul.mubr.bf16.gmra.mxu1 %v3988_v5 }
 0x11d   : > { %v4276_v1 = vadd.f32 %v3416_v27, %v3030_v20  ;;  %1918 = vmatprep.mubr.bf16.mxu0 %v3703_v45  ;;  %3514 = vmatprep.mubr.bf16.mxu1 %v4007_v10  ;;  %v3705_v10 = vld [vmem:[%s3785_s12 + $0x154] ss:$12 sps:$4 sm:$0xff]  }
 0x11e   : > { %v3035_v3 = vpop.f32.mrf.mxu0  ;;  %v1012_v54 = vpop.f32.mrf.mxu1 }
 0x11f   : > { %v3036_v61 = vadd.f32 %v3035_v3, %v3034_v26  ;;  %v4280_v29 = vadd.f32 %v3024_v4, %v1012_v54  ;;  %v3708_v3 = vld [vmem:[%s3785_s12 + $0x168] ss:$12 sps:$4 sm:$0xff]  }
 0x120   : > { %v3037_v55 = vpop.f32.mrf.mxu0  ;;  %v3417_v32 = vpop.f32.mrf.mxu1 }
 0x121   : > { %v4282_v9 = vadd.f32 %v3417_v32, %v3033_v19 }
 0x122   : > { %v3038_v50 = vpop.f32.mrf.mxu0  ;;  %v1015_v15 = vpop.f32.mrf.mxu1 }
 0x123   : > { %v3039_v5 = vadd.f32 %v3038_v50, %v3037_v55  ;;  %v4284_v28 = vadd.f32 %v3027_v8, %v1015_v15 }
 0x124   : > { %v3040_v31 = vpop.f32.mrf.mxu0  ;;  %v3420_v34 = vpop.f32.mrf.mxu1  ;;  %1919 = vmatmul.mubr.bf16.gmra.mxu0 %v3704_v44  ;;  %3515 = vmatmul.mubr.bf16.gmra.mxu1 %v4019_v16 }
 0x125   : > { %1926 = vmatprep.mubr.bf16.mxu0 %v3705_v10  ;;  %3518 = vmatprep.mubr.bf16.mxu1 %v4038_v25 }
 0x126   : > { %v3041_v47 = vpop.f32.mrf.mxu0  ;;  %v1028_v52 = vpop.f32.mrf.mxu1 }
 0x127   : > { %v3042_v36 = vadd.f32 %v3041_v47, %v3040_v31  ;;  %v4290_v48 = vadd.f32 %v3036_v61, %v1028_v52  ;;  %v3701_v31 = vld [vmem:[%s3785_s12 + $0x19c] ss:$12 sps:$4 sm:$0xff]   ;;  %v3710_v52 = vld [vmem:[%s3785_s12 + $0x180] ss:$12 sps:$4 sm:$0xff]  }
 0x128   : > { %v3043_v30 = vpop.f32.mrf.mxu0  ;;  %v3421_v4 = vpop.f32.mrf.mxu1 }
 0x129   : > { %v4292_v12 = vadd.f32 %v3420_v34, %v3042_v36 }
 0x12a   : > { %v3044_v59 = vpop.f32.mrf.mxu0  ;;  %v1031_v7 = vpop.f32.mrf.mxu1 }
 0x12b   : > { %v3045_v35 = vadd.f32 %v3044_v59, %v3043_v30  ;;  %v4294_v8 = vadd.f32 %v3039_v5, %v1031_v7 }
 0x12c   : > { %v3046_v16 = vpop.f32.mrf.mxu0  ;;  %v3424_v6 = vpop.f32.mrf.mxu1  ;;  %1927 = vmatmul.mubr.bf16.gmra.mxu0 %v3706_v39  ;;  %3519 = vmatmul.mubr.bf16.gmra.mxu1 %v4050_v33  ;;  %v3702_v39 = vld [vmem:[%s3785_s12 + $0x1a0] ss:$12 sps:$4 sm:$0xff]  }
 0x12d   : > { %v4298_v25 = vadd.f32 %v3421_v4, %v3045_v35  ;;  %1934 = vmatprep.mubr.bf16.mxu0 %v3707_v38  ;;  %3522 = vmatprep.mubr.bf16.mxu1 %v4060_v37  ;;  %v3709_v37 = vld [vmem:[%s3785_s12 + $0x184] ss:$12 sps:$4 sm:$0xff]  }
 0x12e   : > { %v3047_v13 = vpop.f32.mrf.mxu0  ;;  %v1044_v20 = vpop.f32.mrf.mxu1 }
 0x12f   : > { %v3048_v63 = vadd.f32 %v3047_v13, %v3046_v16 }
 0x130   : > { %v3049_v21 = vpop.f32.mrf.mxu0  ;;  %v3425_v0 = vpop.f32.mrf.mxu1 }
 0x131   : > { %v4302_v42 = vadd.f32 %v3048_v63, %v1044_v20 }
 0x132   : > { %v3050_v19 = vpop.f32.mrf.mxu0  ;;  %v1047_v26 = vpop.f32.mrf.mxu1 }
 0x133   : > { %v3051_v27 = vadd.f32 %v3050_v19, %v3049_v21 }
 0x134   : > { %v3052_v33 = vpop.f32.mrf.mxu0  ;;  %v3428_v45 = vpop.f32.mrf.mxu1  ;;  %1935 = vmatmul.mubr.bf16.gmra.mxu0 %v3708_v3  ;;  %3523 = vmatmul.mubr.bf16.gmra.mxu1 %v4066_v41 }
 0x135   : > { %v4306_v54 = vadd.f32 %v3051_v27, %v1047_v26  ;;  %1942 = vmatprep.mubr.bf16.mxu0 %v3709_v37  ;;  %3526 = vmatprep.mubr.bf16.mxu1 %v4076_v43 }
 0x136   : > { %v3053_v61 = vpop.f32.mrf.mxu0  ;;  %v1060_v55 = vpop.f32.mrf.mxu1 }
 0x137   : > { %v3054_v32 = vadd.f32 %v3053_v61, %v3052_v33 }
 0x138   : > { %v3055_v50 = vpop.f32.mrf.mxu0  ;;  %v3429_v15 = vpop.f32.mrf.mxu1 }
 0x139   : > { %v4310_v5 = vadd.f32 %v3424_v6, %v3054_v32  ;;  %v3699_v6 = vld [vmem:[%s3785_s12 + $0x198] ss:$12 sps:$4 sm:$0xff]   ;;  %s2854_s12 = sshll.u32 %s4934_s16, 7 }
 0x13a   : > { %v3056_v34 = vpop.f32.mrf.mxu0  ;;  %v1063_v44 = vpop.f32.mrf.mxu1  ;;  %s4584_s28 = scalar_lea.vmem %s4898_s2, %s2854_s12 }
 0x13b   : > { %v3057_v10 = vadd.f32 %v3056_v34, %v3055_v50 }
 0x13c   : > { %v3058_v41 = vpop.f32.mrf.mxu0  ;;  %v3432_v47 = vpop.f32.mrf.mxu1  ;;  %1943 = vmatmul.mubr.bf16.gmra.mxu0 %v3710_v52  ;;  %3527 = vmatmul.mubr.bf16.gmra.mxu1 %v4082_v49 }
 0x13d   : > { %v4315_v43 = vadd.f32 %v3425_v0, %v3057_v10  ;;  %v4318_v36 = vadd.f32 %v3432_v47, %v4228_v46  ;;  %1950 = vmatprep.mubr.bf16.mxu0 %v3701_v31  ;;  %3530 = vmatprep.mubr.bf16.mxu1 %v4092_v51 }
 0x13e   : > { %v3059_v30 = vpop.f32.mrf.mxu0  ;;  %v1076_v4 = vpop.f32.mrf.mxu1 }
 0x13f   : > { %v3060_v59 = vadd.f32 %v3059_v30, %v3058_v41  ;;  %v4322_v7 = vadd.f32 %v4218_v40, %v1076_v4 }
 0x140   : > { %v3061_v35 = vpop.f32.mrf.mxu0  ;;  %v3433_v16 = vpop.f32.mrf.mxu1 }
 0x141   : > { %v4326_v38 = vadd.f32 %v3060_v59, %v1060_v55  ;;  %v4329_v49 = vadd.f32 %v3433_v16, %v4230_v14 }
 0x142   : > { %v3062_v46 = vpop.f32.mrf.mxu0  ;;  %v1079_v13 = vpop.f32.mrf.mxu1 }
 0x143   : > { %v3063_v20 = vadd.f32 %v3062_v46, %v3061_v35  ;;  %v4332_v51 = vadd.f32 %v4222_v2, %v1079_v13 }
 0x144   : > { %v3064_v63 = vpop.f32.mrf.mxu0  ;;  %v3436_v21 = vpop.f32.mrf.mxu1  ;;  %1951 = vmatmul.mubr.bf16.gmra.mxu0 %v3699_v6  ;;  %3531 = vmatmul.mubr.bf16.gmra.mxu1 %v3702_v39 }
 0x145   : > { %v4334_v40 = vadd.f32 %v3063_v20, %v1063_v44  ;;  %v4337_v0 = vadd.f32 %v3436_v21, %v4244_v23 }
 0x146   : > { %v3065_v19 = vpop.f32.mrf.mxu0  ;;  %v1092_v26 = vpop.f32.mrf.mxu1 }
 0x147   : > { %v3066_v27 = vadd.f32 %v3065_v19, %v3064_v63  ;;  %v4340_v14 = vadd.f32 %v4236_v18, %v1092_v26 }
 0x148   : > { %v3067_v33 = vpop.f32.mrf.mxu0  ;;  %v3437_v3 = vpop.f32.mrf.mxu1 }
 0x149   : > { %v4342_v37 = vadd.f32 %v3428_v45, %v3066_v27  ;;  %v4345_v2 = vadd.f32 %v3437_v3, %v4246_v62 }
 0x14a   : > { %v3068_v61 = vpop.f32.mrf.mxu0  ;;  %v1095_v55 = vpop.f32.mrf.mxu1 }
 0x14b   : > { %v3069_v32 = vadd.f32 %v3068_v61, %v3067_v33  ;;  %v4348_v50 = vadd.f32 %v4238_v57, %v1095_v55 }
 0x14c   : > { %v3134_v23 = vpop.f32.mrf.mxu1  ;;  %v3456_v31 = vpop.f32.mrf.mxu0 }
 0x14d   : > { %v4350_v34 = vadd.f32 %v3429_v15, %v3069_v32 }
 0x14e   : > { %v3135_v44 = vpop.f32.mrf.mxu1  ;;  %v1462_v18 = vpop.f32.mrf.mxu0 }
 0x14f   : > { %v3136_v10 = vadd.f32 %v3135_v44, %v3134_v23 }
 0x150   : > { %v3137_v41 = vpop.f32.mrf.mxu1  ;;  %v3457_v47 = vpop.f32.mrf.mxu0 }
 0x151   : > { %v1302_v45 = vadd.f32 %v3136_v10, %v4255_v56 }
 0x152   : > { %v3138_v52 = vpop.f32.mrf.mxu1  ;;  %v1465_v62 = vpop.f32.mrf.mxu0 }
 0x153   : > { %v4353_v30 = vadd.f32 %v1462_v18, %v1302_v45  ;;  %v3139_v4 = vadd.f32 %v3138_v52, %v3137_v41 }
 0x154   : > { %v3140_v59 = vpop.f32.mrf.mxu1  ;;  %v3460_v35 = vpop.f32.mrf.mxu0 }
 0x155   : > { %v1305_v57 = vadd.f32 %v3139_v4, %v4260_v53 }
 0x156   : > { %v3141_v16 = vpop.f32.mrf.mxu1  ;;  %v1478_v6 = vpop.f32.mrf.mxu0 }
 0x157   : > { %v4356_v15 = vadd.f32 %v1465_v62, %v1305_v57  ;;  %v3142_v39 = vadd.f32 %v3141_v16, %v3140_v59 }
 0x158   : > { %v3143_v46 = vpop.f32.mrf.mxu1  ;;  %v3461_v13 = vpop.f32.mrf.mxu0 }
 0x159   : > { %v1310_v20 = vadd.f32 %v3142_v39, %v4250_v22 }
 0x15a   : > { %v3144_v63 = vpop.f32.mrf.mxu1  ;;  %v1481_v56 = vpop.f32.mrf.mxu0 }
 0x15b   : > { %v3145_v21 = vadd.f32 %v3144_v63, %v3143_v46  ;;  %v4359_v19 = vadd.f32 %v3456_v31, %v1310_v20 }
 0x15c   : > { %v3146_v26 = vpop.f32.mrf.mxu1  ;;  %v3464_v27 = vpop.f32.mrf.mxu0 }
 0x15d   : > { %v1313_v33 = vadd.f32 %v3145_v21, %v4257_v11 }
 0x15e   : > { %v3147_v3 = vpop.f32.mrf.mxu1  ;;  %v1494_v53 = vpop.f32.mrf.mxu0 }
 0x15f   : > { %v3148_v61 = vadd.f32 %v3147_v3, %v3146_v26  ;;  %v4362_v55 = vadd.f32 %v3457_v47, %v1313_v33 }
 0x160   : > { %v3149_v32 = vpop.f32.mrf.mxu1  ;;  %v3465_v23 = vpop.f32.mrf.mxu0 }
 0x161   : > { %v1318_v44 = vadd.f32 %v3148_v61, %v4268_v17 }
 0x162   : > { %v3150_v18 = vpop.f32.mrf.mxu1  ;;  %v1497_v22 = vpop.f32.mrf.mxu0 }
 0x163   : > { %v3151_v10 = vadd.f32 %v3150_v18, %v3149_v32  ;;  %v4365_v41 = vadd.f32 %v1478_v6, %v1318_v44 }
 0x164   : > { %v3152_v31 = vpop.f32.mrf.mxu1  ;;  %v4367_v45 = vpop.f32.mrf.mxu0 }
 0x165   : > { %v1321_v52 = vadd.f32 %v3151_v10, %v4272_v60 }
 0x166   : > { %v3153_v11 = vpop.f32.mrf.mxu1  ;;  %v1510_v62 = vpop.f32.mrf.mxu0 }
 0x167   : > { %v3154_v4 = vadd.f32 %v3153_v11, %v3152_v31  ;;  %v4370_v59 = vadd.f32 %v1481_v56, %v1321_v52 }
 0x168   : > { %v3155_v47 = vpop.f32.mrf.mxu1  ;;  %v4372_v57 = vpop.f32.mrf.mxu0 }
 0x169   : > { %v1326_v17 = vadd.f32 %v3154_v4, %v4264_v58 }
 0x16a   : > { %v3156_v16 = vpop.f32.mrf.mxu1  ;;  %v1513_v39 = vpop.f32.mrf.mxu0 }
 0x16b   : > { %v3157_v46 = vadd.f32 %v3156_v16, %v3155_v47  ;;  %v4375_v6 = vadd.f32 %v3460_v35, %v1326_v17 }
 0x16c   : > { %v3158_v20 = vpop.f32.mrf.mxu1  ;;  %v4377_v63 = vpop.f32.mrf.mxu0 }
 0x16d   : > { %v1329_v60 = vadd.f32 %v3157_v46, %v4270_v24 }
 0x16e   : > { %v3159_v21 = vpop.f32.mrf.mxu1  ;;  %v4380_v26 = vpop.f32.mrf.mxu0 }
 0x16f   : > { %v3160_v56 = vadd.f32 %v3159_v21, %v3158_v20  ;;  %v4382_v33 = vadd.f32 %v3461_v13, %v1329_v60 }
 0x170   : > { %v3161_v3 = vpop.f32.mrf.mxu1  ;;  %v4384_v61 = vpop.f32.mrf.mxu0 }
 0x171   : > { %v1334_v58 = vadd.f32 %v3160_v56, %v4280_v29 }
 0x172   : > { %v3162_v32 = vpop.f32.mrf.mxu1  ;;  %v4387_v44 = vpop.f32.mrf.mxu0 }
 0x173   : > { %v3163_v35 = vadd.f32 %v3162_v32, %v3161_v3  ;;  %v4389_v18 = vadd.f32 %v1494_v53, %v1334_v58 }
 0x174   : > { %v3164_v10 = vpop.f32.mrf.mxu1  ;;  %v4391_v31 = vpop.f32.mrf.mxu0 }
 0x175   : > { %v1337_v24 = vadd.f32 %v3163_v35, %v4284_v28 }
 0x176   : > { %v3165_v52 = vpop.f32.mrf.mxu1  ;;  %v4394_v11 = vpop.f32.mrf.mxu0 }
 0x177   : > { %v3166_v13 = vadd.f32 %v3165_v52, %v3164_v10  ;;  %v4396_v4 = vadd.f32 %v1497_v22, %v1337_v24 }
 0x178   : > { %v3167_v47 = vpop.f32.mrf.mxu1  ;;  %v4398_v17 = vpop.f32.mrf.mxu0 }
 0x179   : > { %v1342_v29 = vadd.f32 %v3166_v13, %v4276_v1 }
 0x17a   : > { %v3168_v16 = vpop.f32.mrf.mxu1  ;;  %v4401_v46 = vpop.f32.mrf.mxu0 }
 0x17b   : > { %v3169_v53 = vadd.f32 %v3168_v16, %v3167_v47  ;;  %v4403_v20 = vadd.f32 %v3464_v27, %v1342_v29 }
 0x17c   : > { %v3170_v60 = vpop.f32.mrf.mxu1  ;;  %v4405_v21 = vpop.f32.mrf.mxu0 }
 0x17d   : > { %v1345_v28 = vadd.f32 %v3169_v53, %v4282_v9 }
 0x17e   : > { %v3171_v56 = vpop.f32.mrf.mxu1  ;;  %v4408_v3 = vpop.f32.mrf.mxu0 }
 0x17f   : > { %v3172_v22 = vadd.f32 %v3171_v56, %v3170_v60  ;;  %v4410_v58 = vadd.f32 %v3465_v23, %v1345_v28 }
 0x180   : > { %v3173_v32 = vpop.f32.mrf.mxu1  ;;  %v4412_v35 = vpop.f32.mrf.mxu0 }
 0x181   : > { %v1350_v1 = vadd.f32 %v3172_v22, %v4290_v48 }
 0x182   : > { %v3174_v10 = vpop.f32.mrf.mxu1  ;;  %v4415_v24 = vpop.f32.mrf.mxu0 }
 0x183   : > { %v3175_v27 = vadd.f32 %v3174_v10, %v3173_v32  ;;  %v4417_v52 = vadd.f32 %v1510_v62, %v1350_v1 }
 0x184   : > { %v3176_v13 = vpop.f32.mrf.mxu1  ;;  %v4419_v47 = vpop.f32.mrf.mxu0 }
 0x185   : > { %4902 = vst [vmem:[#allocation2_spill] sm:$0xff] %v4419_v47  ;;  %v1353_v9 = vadd.f32 %v3175_v27, %v4294_v8 }
 0x186   : > { %v3177_v29 = vpop.f32.mrf.mxu1  ;;  %v4422_v16 = vpop.f32.mrf.mxu0 }
 0x187   : > { %v3178_v23 = vadd.f32 %v3177_v29, %v3176_v13  ;;  %v4424_v53 = vadd.f32 %v1513_v39, %v1353_v9 }
 0x188   : > { %v3179_v60 = vpop.f32.mrf.mxu1  ;;  %v4426_v28 = vpop.f32.mrf.mxu0 }
 0x189   : > { %4903 = vst [vmem:[#allocation3_spill] sm:$0xff] %v4426_v28  ;;  %v1358_v48 = vadd.f32 %v3178_v23, %v4292_v12 }
 0x18a   : > { %v3180_v56 = vpop.f32.mrf.mxu1  ;;  %v4429_v22 = vpop.f32.mrf.mxu0 }
 0x18b   : > { %v3181_v62 = vadd.f32 %v3180_v56, %v3179_v60  ;;  %v4432_v32 = vadd.f32 %v4367_v45, %v1358_v48 }
 0x18c   : > { %v3182_v1 = vpop.f32.mrf.mxu1  ;;  %v3270_v8 = vpop.f32.mrf.mxu0 }
 0x18d   : > { %v1361_v10 = vadd.f32 %v3181_v62, %v4298_v25 }
 0x18e   : > { %v3183_v27 = vpop.f32.mrf.mxu1  ;;  %v3271_v13 = vpop.f32.mrf.mxu0 }
 0x18f   : > { %v3184_v39 = vadd.f32 %v3183_v27, %v3182_v1  ;;  %v4435_v9 = vadd.f32 %v3271_v13, %v3270_v8  ;;  %v4438_v29 = vadd.f32 %v4372_v57, %v1361_v10 }
 0x190   : > { %v3185_v12 = vpop.f32.mrf.mxu1  ;;  %v4440_v23 = vpop.f32.mrf.mxu0 }
 0x191   : > { %v1366_v60 = vadd.f32 %v3184_v39, %v4302_v42 }
 0x192   : > { %v3186_v56 = vpop.f32.mrf.mxu1  ;;  %v4443_v45 = vpop.f32.mrf.mxu0 }
 0x193   : > { %v3187_v48 = vadd.f32 %v3186_v56, %v3185_v12  ;;  %v4446_v28 = vadd.f32 %v4380_v26, %v1366_v60 }
 0x194   : > { %v3188_v25 = vpop.f32.mrf.mxu1  ;;  %v4448_v62 = vpop.f32.mrf.mxu0 }
 0x195   : > { %4904 = vst [vmem:[#allocation4_spill] sm:$0xff] %v4446_v28  ;;  %v1369_v1 = vadd.f32 %v3187_v48, %v4306_v54 }
 0x196   : > { %v3189_v8 = vpop.f32.mrf.mxu1  ;;  %v4451_v57 = vpop.f32.mrf.mxu0 }
 0x197   : > { %v3190_v10 = vadd.f32 %v3189_v8, %v3188_v25  ;;  %v4454_v27 = vadd.f32 %v4387_v44, %v1369_v1 }
 0x198   : > { %v3191_v42 = vpop.f32.mrf.mxu1  ;;  %v4456_v13 = vpop.f32.mrf.mxu0 }
 0x199   : > { %4905 = vst [vmem:[#allocation5_spill] sm:$0xff] %v4454_v27  ;;  %v1374_v39 = vadd.f32 %v3190_v10, %v4310_v5 }
 0x19a   : > { %v3192_v12 = vpop.f32.mrf.mxu1  ;;  %v4459_v26 = vpop.f32.mrf.mxu0 }
 0x19b   : > { %v3193_v60 = vadd.f32 %v3192_v12, %v3191_v42  ;;  %v4462_v56 = vadd.f32 %v4377_v63, %v1374_v39 }
 0x19c   : > { %v3194_v54 = vpop.f32.mrf.mxu1  ;;  %v4464_v48 = vpop.f32.mrf.mxu0 }
 0x19d   : > { %v1377_v25 = vadd.f32 %v3193_v60, %v4315_v43 }
 0x19e   : > { %v3195_v8 = vpop.f32.mrf.mxu1  ;;  %v4467_v44 = vpop.f32.mrf.mxu0 }
 0x19f   : > { %v3196_v1 = vadd.f32 %v3195_v8, %v3194_v54  ;;  %v4470_v47 = vadd.f32 %v4384_v61, %v1377_v25 }
 0x1a0   : > { %v3197_v5 = vpop.f32.mrf.mxu1  ;;  %v4472_v10 = vpop.f32.mrf.mxu0 }
 0x1a1   : > { %v1382_v42 = vadd.f32 %v3196_v1, %v4326_v38 }
 0x1a2   : > { %v3198_v12 = vpop.f32.mrf.mxu1  ;;  %v4475_v63 = vpop.f32.mrf.mxu0 }
 0x1a3   : > { %v3199_v39 = vadd.f32 %v3198_v12, %v3197_v5  ;;  %v4478_v27 = vadd.f32 %v4394_v11, %v1382_v42 }
 0x1a4   : > { %v3200_v43 = vpop.f32.mrf.mxu1  ;;  %v4480_v60 = vpop.f32.mrf.mxu0 }
 0x1a5   : > { %4906 = vst [vmem:[#allocation6_spill] sm:$0xff] %v4478_v27  ;;  %v1385_v54 = vadd.f32 %v3199_v39, %v4334_v40 }
 0x1a6   : > { %v3201_v8 = vpop.f32.mrf.mxu1  ;;  %v4483_v61 = vpop.f32.mrf.mxu0 }
 0x1a7   : > { %v3202_v25 = vadd.f32 %v3201_v8, %v3200_v43  ;;  %v4486_v28 = vadd.f32 %v4401_v46, %v1385_v54 }
 0x1a8   : > { %v3203_v38 = vpop.f32.mrf.mxu1  ;;  %v4488_v1 = vpop.f32.mrf.mxu0 }
 0x1a9   : > { %4907 = vst [vmem:[#allocation7_spill] sm:$0xff] %v4486_v28  ;;  %v1390_v5 = vadd.f32 %v3202_v25, %v4342_v37 }
 0x1aa   : > { %v3204_v12 = vpop.f32.mrf.mxu1  ;;  %v4491_v11 = vpop.f32.mrf.mxu0 }
 0x1ab   : > { %v3205_v42 = vadd.f32 %v3204_v12, %v3203_v38  ;;  %v4494_v27 = vadd.f32 %v4391_v31, %v1390_v5 }
 0x1ac   : > { %v3206_v40 = vpop.f32.mrf.mxu1  ;;  %v4496_v39 = vpop.f32.mrf.mxu0 }
 0x1ad   : > { %4908 = vst [vmem:[#allocation8_spill] sm:$0xff] %v4494_v27  ;;  %v1393_v43 = vadd.f32 %v3205_v42, %v4350_v34 }
 0x1ae   : > { %v3207_v8 = vpop.f32.mrf.mxu1  ;;  %v4499_v46 = vpop.f32.mrf.mxu0 }
 0x1af   : > { %v3208_v54 = vadd.f32 %v3207_v8, %v3206_v40  ;;  %v4502_v28 = vadd.f32 %v4398_v17, %v1393_v43 }
 0x1b0   : > { %v3209_v37 = vpop.f32.mrf.mxu1  ;;  %v4504_v25 = vpop.f32.mrf.mxu0 }
 0x1b1   : > { %4909 = vst [vmem:[#allocation9_spill] sm:$0xff] %v4502_v28  ;;  %v1398_v38 = vadd.f32 %v3208_v54, %v4322_v7 }
 0x1b2   : > { %v3210_v12 = vpop.f32.mrf.mxu1  ;;  %v4507_v31 = vpop.f32.mrf.mxu0 }
 0x1b3   : > { %v3211_v5 = vadd.f32 %v3210_v12, %v3209_v37  ;;  %v4510_v27 = vadd.f32 %v4408_v3, %v1398_v38 }
 0x1b4   : > { %v3212_v34 = vpop.f32.mrf.mxu1  ;;  %v4512_v42 = vpop.f32.mrf.mxu0 }
 0x1b5   : > { %4910 = vst [vmem:[#allocation10_spill] sm:$0xff] %v4510_v27  ;;  %v1401_v40 = vadd.f32 %v3211_v5, %v4332_v51 }
 0x1b6   : > { %v3213_v8 = vpop.f32.mrf.mxu1  ;;  %v4515_v17 = vpop.f32.mrf.mxu0 }
 0x1b7   : > { %v3214_v43 = vadd.f32 %v3213_v8, %v3212_v34  ;;  %v4518_v28 = vadd.f32 %v4415_v24, %v1401_v40 }
 0x1b8   : > { %v3215_v7 = vpop.f32.mrf.mxu1  ;;  %v4520_v54 = vpop.f32.mrf.mxu0 }
 0x1b9   : > { %4911 = vst [vmem:[#allocation11_spill] sm:$0xff] %v4518_v28  ;;  %v1406_v37 = vadd.f32 %v3214_v43, %v4318_v36 }
 0x1ba   : > { %v3216_v12 = vpop.f32.mrf.mxu1  ;;  %v4523_v3 = vpop.f32.mrf.mxu0 }
 0x1bb   : > { %v3217_v38 = vadd.f32 %v3216_v12, %v3215_v7  ;;  %v4526_v27 = vadd.f32 %v4405_v21, %v1406_v37 }
 0x1bc   : > { %v3218_v51 = vpop.f32.mrf.mxu1  ;;  %v4528_v5 = vpop.f32.mrf.mxu0 }
 0x1bd   : > { %4912 = vst [vmem:[#allocation12_spill] sm:$0xff] %v4526_v27  ;;  %v1409_v34 = vadd.f32 %v3217_v38, %v4329_v49 }
 0x1be   : > { %v3219_v8 = vpop.f32.mrf.mxu1  ;;  %v4531_v24 = vpop.f32.mrf.mxu0 }
 0x1bf   : > { %v3220_v40 = vadd.f32 %v3219_v8, %v3218_v51  ;;  %v4534_v28 = vadd.f32 %v4412_v35, %v1409_v34 }
 0x1c0   : > { %v3221_v36 = vpop.f32.mrf.mxu1  ;;  %v4536_v43 = vpop.f32.mrf.mxu0 }
 0x1c1   : > { %4913 = vst [vmem:[#allocation13_spill] sm:$0xff] %v4534_v28  ;;  %v1414_v7 = vadd.f32 %v3220_v40, %v4340_v14 }
 0x1c2   : > { %v3222_v12 = vpop.f32.mrf.mxu1  ;;  %v4539_v21 = vpop.f32.mrf.mxu0 }
 0x1c3   : > { %v3223_v37 = vadd.f32 %v3222_v12, %v3221_v36  ;;  %v4542_v27 = vadd.f32 %v4422_v16, %v1414_v7 }
 0x1c4   : > { %v3224_v49 = vpop.f32.mrf.mxu1  ;;  %v4544_v38 = vpop.f32.mrf.mxu0 }
 0x1c5   : > { %4914 = vst [vmem:[#allocation14_spill] sm:$0xff] %v4542_v27  ;;  %v1417_v51 = vadd.f32 %v3223_v37, %v4348_v50  ;;  %v3278_v37 = vadd.f32 %v4451_v57, %v4448_v62 }
 0x1c6   : > { %v3225_v8 = vpop.f32.mrf.mxu1  ;;  %v4547_v35 = vpop.f32.mrf.mxu0 }
 0x1c7   : > { %v3226_v34 = vadd.f32 %v3225_v8, %v3224_v49  ;;  %v4550_v28 = vadd.f32 %v4429_v22, %v1417_v51 }
 0x1c8   : > { %v3227_v14 = vpop.f32.mrf.mxu1  ;;  %v4552_v40 = vpop.f32.mrf.mxu0 }
 0x1c9   : > { %4915 = vst [vmem:[#allocation15_spill] sm:$0xff] %v4550_v28  ;;  %v4555_v36 = vadd.f32 %v3226_v34, %v4337_v0  ;;  %v3281_v0 = vadd.f32 %v4459_v26, %v4456_v13 }
 0x1ca   : > { %v3228_v16 = vpop.f32.mrf.mxu1  ;;  %v4557_v7 = vpop.f32.mrf.mxu0 }
 0x1cb   : > { %v3229_v12 = vadd.f32 %v3228_v16, %v3227_v14  ;;  %v3275_v16 = vadd.f32 %v4443_v45, %v4440_v23  ;;  %v3290_v23 = vadd.f32 %v4483_v61, %v4480_v60  ;;  %v3287_v60 = vadd.f32 %v4475_v63, %v4472_v10 }
 0x1cc   : > { %v4559_v27 = vpop.f32.mrf.mxu0  ;;  %v3504_v50 = vpop.f32.mrf.mxu1 }
 0x1cd   : > { %v4564_v22 = vadd.f32 %v3229_v12, %v4345_v2  ;;  %v2002_v8 = vadd.f32 %v3504_v50, %v3278_v37  ;;  %v3284_v37 = vadd.f32 %v4467_v44, %v4464_v48 }
 0x1ce   : > { %v4566_v49 = vpop.f32.mrf.mxu0  ;;  %v1993_v51 = vpop.f32.mrf.mxu1 }
 0x1cf   : > { %4916 = vst [vmem:[#allocation16_spill] sm:$0xff] %v4564_v22  ;;  %v1994_v34 = vadd.f32 %v4435_v9, %v1993_v51  ;;  %v2122_v22 = vadd.f32 %v2002_v8, %v4359_v19  ;;  %v3293_v51 = vadd.f32 %v4491_v11, %v4488_v1 }
 0x1d0   : > { %v4571_v28 = vpop.f32.mrf.mxu0  ;;  %v3505_v14 = vpop.f32.mrf.mxu1 }
 0x1d1   : > { %v2120_v62 = vadd.f32 %v1994_v34, %v4353_v30  ;;  %v2005_v2 = vadd.f32 %v3505_v14, %v3281_v0 }
 0x1d2   : > { %v4577_v57 = vpop.f32.mrf.mxu0  ;;  %v1996_v12 = vpop.f32.mrf.mxu1 }
 0x1d3   : > { %v2123_v13 = vadd.f32 %v2005_v2, %v4362_v55  ;;  %v1997_v26 = vadd.f32 %v3275_v16, %v1996_v12  ;;  %v3302_v2 = vadd.f32 %v4515_v17, %v4512_v42  ;;  %v3296_v42 = vadd.f32 %v4499_v46, %v4496_v39 }
 0x1d4   : > { %v4586_v9 = vpop.f32.mrf.mxu0  ;;  %v3508_v30 = vpop.f32.mrf.mxu1  ;;  %v3305_v17 = vadd.f32 %v4523_v3, %v4520_v54 }
 0x1d5   : > { %v4590_v45 = vpack.c.bf16 %v2123_v13, %v2122_v22  ;;  %v2121_v19 = vadd.f32 %v1997_v26, %v4356_v15  ;;  %v2018_v8 = vadd.f32 %v3508_v30, %v3290_v23 }
 0x1d6   : > { %v4593_v50 = vpop.f32.mrf.mxu0  ;;  %v2009_v55 = vpop.f32.mrf.mxu1 }
 0x1d7   : > { %2967 = vst [vmem:[%s4584_s28 + $0x8] sm:$0xff] %v4590_v45   ;;  %v4601_v0 = vpack.c.bf16 %v2121_v19, %v2120_v62  ;;  %v2010_v44 = vadd.f32 %v3284_v37, %v2009_v55  ;;  %v2314_v1 = vunpack.c.l.bf16 %v4590_v45  ;;  %v2126_v63 = vadd.f32 %v2018_v8, %v4375_v6 }
 0x1d8   : > { %v4605_v61 = vpop.f32.mrf.mxu0  ;;  %v3509_v15 = vpop.f32.mrf.mxu1  ;;  %v2315_v37 = vunpack.c.h.bf16 %v4590_v45 }
 0x1d9   : > { %2891 = vst [vmem:[%s4584_s28] sm:$0xff] %v4601_v0   ;;  %v2312_v22 = vunpack.c.l.bf16 %v4601_v0  ;;  %v2313_v48 = vunpack.c.h.bf16 %v4601_v0  ;;  %v2021_v34 = vadd.f32 %v3509_v15, %v3293_v51  ;;  %v2124_v30 = vadd.f32 %v2010_v44, %v4365_v41 }
 0x1da   : > { %v4612_v11 = vpop.f32.mrf.mxu0  ;;  %v2012_v14 = vpop.f32.mrf.mxu1  ;;  %v3299_v41 = vadd.f32 %v4507_v31, %v4504_v25 }
 0x1db   : > { %v2344_v10 = vadd.f32 %v2313_v48, %v2312_v22  ;;  %v2127_v16 = vadd.f32 %v2021_v34, %v4382_v33  ;;  %v2013_v62 = vadd.f32 %v3287_v60, %v2012_v14 }
 0x1dc   : > { %v4622_v12 = vpop.f32.mrf.mxu0  ;;  %v3512_v13 = vpop.f32.mrf.mxu1 }
 0x1dd   : > { %v2345_v26 = vadd.f32 %v2344_v10, %v2314_v1  ;;  %v4627_v23 = vpack.c.bf16 %v2127_v16, %v2126_v63  ;;  %v2125_v6 = vadd.f32 %v2013_v62, %v4370_v59  ;;  %v2034_v19 = vadd.f32 %v3512_v13, %v3302_v2 }
 0x1de   : > { %v4630_v55 = vpop.f32.mrf.mxu0  ;;  %v2025_v33 = vpop.f32.mrf.mxu1  ;;  %v3314_v10 = vadd.f32 %v4547_v35, %v4544_v38  ;;  %v3317_v35 = vadd.f32 %v4557_v7, %v4552_v40 }
 0x1df   : > { %2969 = vst [vmem:[%s4584_s28 + $0x18] sm:$0xff] %v4627_v23   ;;  %v4639_v51 = vpack.c.bf16 %v2125_v6, %v2124_v30  ;;  %v2346_v39 = vadd.f32 %v2345_v26, %v2315_v37  ;;  %v2026_v46 = vadd.f32 %v3296_v42, %v2025_v33  ;;  %v2130_v3 = vadd.f32 %v2034_v19, %v4403_v20 }
 0x1e0   : > { %v4643_v59 = vpop.f32.mrf.mxu0  ;;  %v3513_v8 = vpop.f32.mrf.mxu1  ;;  %v2318_v63 = vunpack.c.l.bf16 %v4627_v23  ;;  %v4901_v19 = vunpack.c.h.bf16 %v4627_v23 }
 0x1e1   : > { %2968 = vst [vmem:[%s4584_s28 + $0x10] sm:$0xff] %v4639_v51   ;;  %v2316_v60 = vunpack.c.l.bf16 %v4639_v51  ;;  %v2037_v54 = vadd.f32 %v3513_v8, %v3305_v17  ;;  %v2317_v34 = vunpack.c.h.bf16 %v4639_v51  ;;  %v2128_v2 = vadd.f32 %v2026_v46, %v4389_v18 }
 0x1e2   : > { %v4651_v15 = vpop.f32.mrf.mxu0  ;;  %v2028_v44 = vpop.f32.mrf.mxu1 }
 0x1e3   : > { %v2347_v25 = vadd.f32 %v2346_v39, %v2316_v60  ;;  %v2131_v31 = vadd.f32 %v2037_v54, %v4410_v58  ;;  %v2029_v14 = vadd.f32 %v3299_v41, %v2028_v44  ;;  %v3308_v58 = vadd.f32 %v4531_v24, %v4528_v5 }
 0x1e4   : > { %v3336_v16 = vpop.f32.mrf.mxu0  ;;  %v3516_v62 = vpop.f32.mrf.mxu1 }
 0x1e5   : > { %v2348_v20 = vadd.f32 %v2347_v25, %v2317_v34  ;;  %v4663_v13 = vpack.c.bf16 %v2131_v31, %v2130_v3  ;;  %v2129_v26 = vadd.f32 %v2029_v14, %v4396_v4  ;;  %v2050_v30 = vadd.f32 %v3516_v62, %v3314_v10 }
 0x1e6   : > { %v3337_v6 = vpop.f32.mrf.mxu0  ;;  %v2041_v38 = vpop.f32.mrf.mxu1  ;;  %v3311_v4 = vadd.f32 %v4539_v21, %v4536_v43  ;;  %v3326_v3 = vadd.f32 %v4593_v50, %v4586_v9  ;;  %v3320_v62 = vadd.f32 %v4566_v49, %v4559_v27 }
 0x1e7   : > { %v2349_v33 = vadd.f32 %v2348_v20, %v2318_v63  ;;  %2971 = vst [vmem:[%s4584_s28 + $0x28] sm:$0xff] %v4663_v13   ;;  %v4675_v18 = vpack.c.bf16 %v2129_v26, %v2128_v2  ;;  %v2042_v7 = vadd.f32 %v3308_v58, %v2041_v38  ;;  %v2134_v41 = vadd.f32 %v2050_v30, %v4432_v32 }
 0x1e8   : > { %v3339_v42 = vpop.f32.mrf.mxu0  ;;  %v3517_v5 = vpop.f32.mrf.mxu1  ;;  %v2322_v44 = vunpack.c.l.bf16 %v4663_v13  ;;  %v3329_v2 = vadd.f32 %v4612_v11, %v4605_v61  ;;  %v2323_v26 = vunpack.c.h.bf16 %v4663_v13 }
 0x1e9   : > { %2970 = vst [vmem:[%s4584_s28 + $0x20] sm:$0xff] %v4675_v18   ;;  %v2320_v24 = vunpack.c.l.bf16 %v4675_v18  ;;  %v2350_v40 = vadd.f32 %v2349_v33, %v4901_v19  ;;  %v2053_v17 = vadd.f32 %v3517_v5, %v3317_v35  ;;  %v2321_v46 = vunpack.c.h.bf16 %v4675_v18 }
 0x1ea   : > { %v3340_v8 = vpop.f32.mrf.mxu0  ;;  %v2044_v39 = vpop.f32.mrf.mxu1  ;;  %v2132_v14 = vadd.f32 %v2042_v7, %v4417_v52  ;;  %v3338_v7 = vadd.f32 %v3337_v6, %v3336_v16 }
 0x1eb   : > { %v2351_v43 = vadd.f32 %v2350_v40, %v2320_v24  ;;  %v2135_v21 = vadd.f32 %v2053_v17, %v4438_v29  ;;  %v2045_v54 = vadd.f32 %v3311_v4, %v2044_v39 }
 0x1ec   : > { %v4692_v25 = vpop.f32.mrf.mxu0  ;;  %v3520_v31 = vpop.f32.mrf.mxu1 }
 0x1ed   : > { %v2352_v32 = vadd.f32 %v2351_v43, %v2321_v46  ;;  %v4697_v10 = vpack.c.bf16 %v2135_v21, %v2134_v41  ;;  %v2133_v29 = vadd.f32 %v2045_v54, %v4424_v53  ;;  %v2066_v20 = vadd.f32 %v3520_v31, %v3326_v3  ;;  %v4918_v3 = vld [vmem:[#allocation5_spill] sm:$0xff] }
 0x1ee   : > { %v3343_v9 = vpop.f32.mrf.mxu0  ;;  %v2057_v50 = vpop.f32.mrf.mxu1  ;;  %v3323_v53 = vadd.f32 %v4577_v57, %v4571_v28 }
 0x1ef   : > { %v2353_v58 = vadd.f32 %v2352_v32, %v2322_v44  ;;  %2973 = vst [vmem:[%s4584_s28 + $0x38] sm:$0xff] %v4697_v10   ;;  %v4709_v52 = vpack.c.bf16 %v2133_v29, %v2132_v14  ;;  %v2058_v11 = vadd.f32 %v3320_v62, %v2057_v50  ;;  %v2138_v35 = vadd.f32 %v2066_v20, %v4462_v56  ;;  %v4917_v56 = vld [vmem:[#allocation4_spill] sm:$0xff] }
 0x1f0   : > { %v4713_v30 = vpop.f32.mrf.mxu0  ;;  %v3521_v27 = vpop.f32.mrf.mxu1  ;;  %v2326_v17 = vunpack.c.l.bf16 %v4697_v10  ;;  %v2327_v6 = vunpack.c.h.bf16 %v4697_v10  ;;  %v3341_v29 = vadd.f32 %v3340_v8, %v3339_v42  ;;  %v3335_v50 = vadd.f32 %v4651_v15, %v4643_v59  ;;  %v4920_v15 = vld [vmem:[#allocation9_spill] sm:$0xff] }
 0x1f1   : > { %2972 = vst [vmem:[%s4584_s28 + $0x30] sm:$0xff] %v4709_v52   ;;  %v2324_v49 = vunpack.c.l.bf16 %v4709_v52  ;;  %v2354_v61 = vadd.f32 %v2353_v58, %v2323_v26  ;;  %v2069_v38 = vadd.f32 %v3521_v27, %v3329_v2  ;;  %v2325_v5 = vunpack.c.h.bf16 %v4709_v52 }
 0x1f2   : > { %v3346_v33 = vpop.f32.mrf.mxu0  ;;  %v2060_v4 = vpop.f32.mrf.mxu1  ;;  %v2136_v21 = vadd.f32 %v2058_v11, %v4917_v56 }
 0x1f3   : > { %v2355_v28 = vadd.f32 %v2354_v61, %v2324_v49  ;;  %v2139_v57 = vadd.f32 %v2069_v38, %v4470_v47  ;;  %v2061_v40 = vadd.f32 %v3323_v53, %v2060_v4  ;;  %v3332_v47 = vadd.f32 %v4630_v55, %v4622_v12  ;;  %v4919_v53 = vld [vmem:[#allocation8_spill] sm:$0xff] }
 0x1f4   : > { %v3348_v41 = vpop.f32.mrf.mxu0  ;;  %v3524_v39 = vpop.f32.mrf.mxu1 }
 0x1f5   : > { %v2356_v43 = vadd.f32 %v2355_v28, %v2325_v5  ;;  %v4729_v54 = vpack.c.bf16 %v2139_v57, %v2138_v35  ;;  %v2137_v31 = vadd.f32 %v2061_v40, %v4918_v3  ;;  %v2082_v32 = vadd.f32 %v3524_v39, %v3338_v7  ;;  %v4922_v3 = vld [vmem:[#allocation7_spill] sm:$0xff] }
 0x1f6   : > { %v3349_v14 = vpop.f32.mrf.mxu0  ;;  %v2073_v16 = vpop.f32.mrf.mxu1 }
 0x1f7   : > { %v2357_v62 = vadd.f32 %v2356_v43, %v2326_v17  ;;  %2975 = vst [vmem:[%s4584_s28 + $0x48] sm:$0xff] %v4729_v54   ;;  %v4739_v20 = vpack.c.bf16 %v2137_v31, %v2136_v21  ;;  %v2074_v42 = vadd.f32 %v3332_v47, %v2073_v16  ;;  %v2142_v27 = vadd.f32 %v2082_v32, %v4919_v53  ;;  %v4921_v43 = vld [vmem:[#allocation6_spill] sm:$0xff] }
 0x1f8   : > { %v3351_v2 = vpop.f32.mrf.mxu0  ;;  %v3525_v58 = vpop.f32.mrf.mxu1  ;;  %v2330_v28 = vunpack.c.l.bf16 %v4729_v54  ;;  %v3350_v57 = vadd.f32 %v3349_v14, %v3348_v41  ;;  %v3344_v47 = vadd.f32 %v3343_v9, %v4692_v25 }
 0x1f9   : > { %2974 = vst [vmem:[%s4584_s28 + $0x40] sm:$0xff] %v4739_v20   ;;  %v2328_v12 = vunpack.c.l.bf16 %v4739_v20  ;;  %v2358_v55 = vadd.f32 %v2357_v62, %v2327_v6  ;;  %v2085_v8 = vadd.f32 %v3525_v58, %v3341_v29  ;;  %v2329_v38 = vunpack.c.h.bf16 %v4739_v20 }
 0x1fa   : > { %v3352_v61 = vpop.f32.mrf.mxu0  ;;  %v2076_v11 = vpop.f32.mrf.mxu1  ;;  %v2140_v56 = vadd.f32 %v2074_v42, %v4921_v43  ;;  %v2331_v62 = vunpack.c.h.bf16 %v4729_v54  ;;  %v3347_v58 = vadd.f32 %v3346_v33, %v4713_v30  ;;  %v4924_v33 = vld [vmem:[#allocation13_spill] sm:$0xff]  ;;  %v4925_v43 = vld [vmem:[#allocation10_spill] sm:$0xff] }
 0x1fb   : > { %v2359_v59 = vadd.f32 %v2358_v55, %v2328_v12  ;;  %v2143_v35 = vadd.f32 %v2085_v8, %v4920_v15  ;;  %v2077_v4 = vadd.f32 %v3335_v50, %v2076_v11  ;;  %v3353_v14 = vadd.f32 %v3352_v61, %v3351_v2 }
 0x1fc   : > { %v3354_v40 = vpop.f32.mrf.mxu0  ;;  %v3528_v7 = vpop.f32.mrf.mxu1 }
 0x1fd   : > { %v2360_v39 = vadd.f32 %v2359_v59, %v2329_v38  ;;  %v4757_v21 = vpack.c.bf16 %v2143_v35, %v2142_v27  ;;  %v2141_v31 = vadd.f32 %v2077_v4, %v4922_v3  ;;  %v2098_v32 = vadd.f32 %v3528_v7, %v3350_v57  ;;  %v4923_v27 = vld [vmem:[#allocation12_spill] sm:$0xff] }
 0x1fe   : > { %v3355_v16 = vpop.f32.mrf.mxu0  ;;  %v2089_v29 = vpop.f32.mrf.mxu1 }
 0x1ff   : > { %v2361_v41 = vadd.f32 %v2360_v39, %v2330_v28  ;;  %2977 = vst [vmem:[%s4584_s28 + $0x58] sm:$0xff] %v4757_v21   ;;  %v4766_v50 = vpack.c.bf16 %v2141_v31, %v2140_v56  ;;  %v2090_v8 = vadd.f32 %v3344_v47, %v2089_v29  ;;  %v2146_v11 = vadd.f32 %v2098_v32, %v4923_v27  ;;  %v4926_v31 = vld [vmem:[#allocation11_spill] sm:$0xff] }
 0x200   : > { %v3357_v55 = vpop.f32.mrf.mxu0  ;;  %v3529_v42 = vpop.f32.mrf.mxu1  ;;  %v2334_v4 = vunpack.c.l.bf16 %v4757_v21 }
 0x201   : > { %2976 = vst [vmem:[%s4584_s28 + $0x50] sm:$0xff] %v4766_v50   ;;  %v2332_v25 = vunpack.c.l.bf16 %v4766_v50  ;;  %v2362_v9 = vadd.f32 %v2361_v41, %v2331_v62  ;;  %v2101_v53 = vadd.f32 %v3529_v42, %v3353_v14  ;;  %v2333_v2 = vunpack.c.h.bf16 %v4766_v50 }
 0x202   : > { %v3358_v59 = vpop.f32.mrf.mxu0  ;;  %v2092_v15 = vpop.f32.mrf.mxu1  ;;  %v2144_v56 = vadd.f32 %v2090_v8, %v4925_v43  ;;  %v2335_v41 = vunpack.c.h.bf16 %v4757_v21  ;;  %v4927_v43 = vld [vmem:[#allocation2_spill] sm:$0xff] }
 0x203   : > { %v2363_v30 = vadd.f32 %v2362_v9, %v2332_v25  ;;  %v2147_v61 = vadd.f32 %v2101_v53, %v4924_v33  ;;  %v2093_v35 = vadd.f32 %v3347_v58, %v2092_v15  ;;  %v3356_v58 = vadd.f32 %v3355_v16, %v3354_v40 }
 0x204   : > { %v3360_v57 = vpop.f32.mrf.mxu0  ;;  %v3532_v7 = vpop.f32.mrf.mxu1  ;;  %v3359_v8 = vadd.f32 %v3358_v59, %v3357_v55  ;;  %v1583_v55 = vadd.f32 %v4927_v43, %v4555_v36  ;;  %v4928_v59 = vld [vmem:[#allocation16_spill] sm:$0xff] }
 0x205   : > { %v2364_v39 = vadd.f32 %v2363_v30, %v2333_v2  ;;  %v4783_v3 = vpack.c.bf16 %v2147_v61, %v2146_v11  ;;  %v2145_v47 = vadd.f32 %v2093_v35, %v4926_v31 }
 0x206   : > { %v3361_v32 = vpop.f32.mrf.mxu0  ;;  %v2105_v29 = vpop.f32.mrf.mxu1 }
 0x207   : > { %v2365_v14 = vadd.f32 %v2364_v39, %v2334_v4  ;;  %2979 = vst [vmem:[%s4584_s28 + $0x68] sm:$0xff] %v4783_v3   ;;  %v4791_v42 = vpack.c.bf16 %v2145_v47, %v2144_v56  ;;  %v3362_v9 = vadd.f32 %v3361_v32, %v3360_v57  ;;  %v2106_v30 = vadd.f32 %v3356_v58, %v2105_v29  ;;  %v4929_v56 = vld [vmem:[#allocation3_spill] sm:$0xff]  ;;  %v4930_v29 = vld [vmem:[#allocation14_spill] sm:$0xff] }
 0x208   : > { %v3363_v53 = vpop.f32.mrf.mxu0  ;;  %v3533_v27 = vpop.f32.mrf.mxu1  ;;  %v1586_v31 = vadd.f32 %v4929_v56, %v4928_v59  ;;  %v2338_v47 = vunpack.c.l.bf16 %v4783_v3 }
 0x209   : > { %2978 = vst [vmem:[%s4584_s28 + $0x60] sm:$0xff] %v4791_v42   ;;  %v2336_v11 = vunpack.c.l.bf16 %v4791_v42  ;;  %v2366_v15 = vadd.f32 %v2365_v14, %v2335_v41  ;;  %v2337_v33 = vunpack.c.h.bf16 %v4791_v42  ;;  %v2114_v35 = vadd.f32 %v3532_v7, %v3362_v9  ;;  %v4931_v42 = vld [vmem:[#allocation15_spill] sm:$0xff] }
 0x20a   : > { %v3364_v61 = vpop.f32.mrf.mxu0  ;;  %v2108_v40 = vpop.f32.mrf.mxu1  ;;  %v2148_v14 = vadd.f32 %v2106_v30, %v4930_v29  ;;  %v2339_v7 = vunpack.c.h.bf16 %v4783_v3 }
 0x20b   : > { %v2367_v16 = vadd.f32 %v2366_v15, %v2336_v11  ;;  %v3365_v39 = vadd.f32 %v3364_v61, %v3363_v53  ;;  %v2109_v57 = vadd.f32 %v3359_v8, %v2108_v40  ;;  %v2150_v53 = vadd.f32 %v2114_v35, %v1583_v55 }
 0x20d   : > { %v2368_v32 = vadd.f32 %v2367_v16, %v2337_v33  ;;  %v2117_v58 = vadd.f32 %v3533_v27, %v3365_v39  ;;  %v2149_v19 = vadd.f32 %v2109_v57, %v4931_v42 }
 0x20f   : > { %v2369_v9 = vadd.f32 %v2368_v32, %v2338_v47  ;;  %v2151_v8 = vadd.f32 %v2117_v58, %v1586_v31  ;;  %v2166_v15 = vpack.c.bf16 %v2149_v19, %v2148_v14 }
 0x211   : > { %v2167_v61 = vpack.c.bf16 %v2151_v8, %v2150_v53  ;;  %2980 = vst [vmem:[%s4584_s28 + $0x70] sm:$0xff] %v2166_v15   ;;  %v2340_v36 = vunpack.c.l.bf16 %v2166_v15  ;;  %v2370_v40 = vadd.f32 %v2369_v9, %v2339_v7  ;;  %v2341_v43 = vunpack.c.h.bf16 %v2166_v15 }
 0x212   : > { %v4932_v15 = vunpack.c.h.bf16 %v4627_v23 }
 0x213   : > { %2981 = vst [vmem:[%s4584_s28 + $0x78] sm:$0xff] %v2167_v61   ;;  %v2371_v59 = vadd.f32 %v2370_v40, %v2340_v36  ;;  %v2342_v16 = vunpack.c.l.bf16 %v2167_v61  ;;  %v2343_v30 = vunpack.c.h.bf16 %v2167_v61 }
 0x215   : > { %v2372_v56 = vadd.f32 %v2371_v59, %v2341_v43 }
 0x217   : > { %v2373_v27 = vadd.f32 %v2372_v56, %v2342_v16 }
 0x219   : > { %v2374_v39 = vadd.f32 %v2373_v27, %v2343_v30 }
 0x21b   : > { %v2375_v57 = vrot.slane %v2374_v39, 4 }
 0x21d   : > { %v2376_v29 = vadd.f32 %v2375_v57, %v2374_v39 }
 0x21f   : > { %v2377_v3 = vrot.slane %v2376_v29, 2 }
 0x221   : > { %v2378_v32 = vadd.f32 %v2377_v3, %v2376_v29 }
 0x223   : > { %v2379_v35 = vrot.slane %v2378_v32, 1 }
 0x225   : > { %v2380_v19 = vadd.f32 %v2379_v35, %v2378_v32 }
 0x227   : > { %v2381_v55 = vmul.f32 0.00390625, %v2380_v19  ;;  %2414 = vst [vmem:[%s211_s5] sm:$0x1] %v2380_v19 }
 0x229   : > { %v2390_v31 = vsub.f32 %v2320_v24, %v2381_v55  ;;  %v2391_v14 = vsub.f32 %v2321_v46, %v2381_v55  ;;  %v2392_v58 = vsub.f32 %v2322_v44, %v2381_v55  ;;  %v2393_v42 = vsub.f32 %v2323_v26, %v2381_v55 }
 0x22a   : > { %v2394_v9 = vsub.f32 %v2324_v49, %v2381_v55  ;;  %v2395_v53 = vsub.f32 %v2325_v5, %v2381_v55  ;;  %v2396_v8 = vsub.f32 %v2326_v17, %v2381_v55  ;;  %v2397_v24 = vsub.f32 %v2327_v6, %v2381_v55 }
 0x22b   : > { %v2398_v18 = vsub.f32 %v2328_v12, %v2381_v55  ;;  %v2399_v46 = vsub.f32 %v2329_v38, %v2381_v55  ;;  %v2400_v13 = vsub.f32 %v2330_v28, %v2381_v55  ;;  %v2401_v44 = vsub.f32 %v2331_v62, %v2381_v55 }
 0x22c   : > { %v2402_v26 = vsub.f32 %v2332_v25, %v2381_v55  ;;  %v2403_v52 = vsub.f32 %v2333_v2, %v2381_v55  ;;  %v2404_v10 = vsub.f32 %v2334_v4, %v2381_v55  ;;  %v2405_v49 = vsub.f32 %v2335_v41, %v2381_v55 }
 0x22d   : > { %v2406_v5 = vsub.f32 %v2336_v11, %v2381_v55  ;;  %v4845_v17 = vsub.f32 %v2337_v33, %v2381_v55  ;;  %v4847_v6 = vsub.f32 %v2338_v47, %v2381_v55  ;;  %v4849_v20 = vsub.f32 %v2339_v7, %v2381_v55 }
 0x22e   : > { %v4851_v54 = vsub.f32 %v2340_v36, %v2381_v55  ;;  %v4853_v12 = vsub.f32 %v2341_v43, %v2381_v55  ;;  %v4855_v38 = vsub.f32 %v2342_v16, %v2381_v55  ;;  %v4857_v28 = vsub.f32 %v2343_v30, %v2381_v55 }
 0x22f   : > { %v2382_v62 = vsub.f32 %v2312_v22, %v2381_v55  ;;  %v2383_v21 = vsub.f32 %v2313_v48, %v2381_v55  ;;  %v2384_v50 = vsub.f32 %v2314_v1, %v2381_v55  ;;  %v2385_v4 = vsub.f32 %v2315_v37, %v2381_v55 }
 0x230   : > { %v2386_v41 = vsub.f32 %v2316_v60, %v2381_v55  ;;  %v2387_v47 = vsub.f32 %v2317_v34, %v2381_v55  ;;  %v2388_v0 = vsub.f32 %v2318_v63, %v2381_v55  ;;  %v2389_v61 = vsub.f32 %v4932_v15, %v2381_v55 }
 0x231   : > { %v2415_v25 = vmul.f32 %v2382_v62, %v2382_v62  ;;  %v2416_v2 = vmul.f32 %v2383_v21, %v2383_v21  ;;  %v2417_v11 = vmul.f32 %v2384_v50, %v2384_v50  ;;  %v2418_v22 = vmul.f32 %v2385_v4, %v2385_v4 }
 0x232   : > { %v2419_v48 = vmul.f32 %v2386_v41, %v2386_v41  ;;  %v2420_v45 = vmul.f32 %v2387_v47, %v2387_v47  ;;  %v2421_v36 = vmul.f32 %v2388_v0, %v2388_v0  ;;  %v2422_v60 = vmul.f32 %v2389_v61, %v2389_v61 }
 0x233   : > { %v2447_v33 = vadd.f32 %v2416_v2, %v2415_v25  ;;  %v2423_v59 = vmul.f32 %v2390_v31, %v2390_v31  ;;  %v2424_v51 = vmul.f32 %v2391_v14, %v2391_v14  ;;  %v2425_v56 = vmul.f32 %v2392_v58, %v2392_v58 }
 0x234   : > { %v2426_v27 = vmul.f32 %v2393_v42, %v2393_v42  ;;  %v2427_v63 = vmul.f32 %v2394_v9, %v2394_v9  ;;  %v2428_v29 = vmul.f32 %v2395_v53, %v2395_v53  ;;  %v2429_v23 = vmul.f32 %v2396_v8, %v2396_v8 }
 0x235   : > { %v2448_v7 = vadd.f32 %v2447_v33, %v2417_v11  ;;  %v2430_v35 = vmul.f32 %v2397_v24, %v2397_v24  ;;  %v2431_v55 = vmul.f32 %v2398_v18, %v2398_v18  ;;  %v2432_v21 = vmul.f32 %v2399_v46, %v2399_v46 }
 0x236   : > { %v2433_v31 = vmul.f32 %v2400_v13, %v2400_v13  ;;  %v2434_v14 = vmul.f32 %v2401_v44, %v2401_v44  ;;  %v2435_v58 = vmul.f32 %v2402_v26, %v2402_v26  ;;  %v2436_v42 = vmul.f32 %v2403_v52, %v2403_v52 }
 0x237   : > { %v2449_v1 = vadd.f32 %v2448_v7, %v2418_v22  ;;  %v2437_v9 = vmul.f32 %v2404_v10, %v2404_v10  ;;  %v2438_v53 = vmul.f32 %v2405_v49, %v2405_v49  ;;  %v2439_v8 = vmul.f32 %v2406_v5, %v2406_v5 }
 0x238   : > { %v2440_v24 = vmul.f32 %v4845_v17, %v4845_v17  ;;  %v2441_v46 = vmul.f32 %v4847_v6, %v4847_v6  ;;  %v2442_v44 = vmul.f32 %v4849_v20, %v4849_v20  ;;  %v2443_v52 = vmul.f32 %v4851_v54, %v4851_v54 }
 0x239   : > { %v2450_v37 = vadd.f32 %v2449_v1, %v2419_v48  ;;  %v2444_v49 = vmul.f32 %v4853_v12, %v4853_v12  ;;  %v2445_v17 = vmul.f32 %v4855_v38, %v4855_v38  ;;  %v2446_v6 = vmul.f32 %v4857_v28, %v4857_v28 }
 0x23b   : > { %v2451_v40 = vadd.f32 %v2450_v37, %v2420_v45 }
 0x23d   : > { %v2452_v43 = vadd.f32 %v2451_v40, %v2421_v36 }
 0x23f   : > { %v2453_v16 = vadd.f32 %v2452_v43, %v2422_v60 }
 0x241   : > { %v2454_v34 = vadd.f32 %v2453_v16, %v2423_v59 }
 0x243   : > { %v2455_v30 = vadd.f32 %v2454_v34, %v2424_v51 }
 0x245   : > { %v2456_v39 = vadd.f32 %v2455_v30, %v2425_v56 }
 0x247   : > { %v2457_v57 = vadd.f32 %v2456_v39, %v2426_v27 }
 0x249   : > { %v2458_v3 = vadd.f32 %v2457_v57, %v2427_v63 }
 0x24b   : > { %v2459_v32 = vadd.f32 %v2458_v3, %v2428_v29 }
 0x24d   : > { %v2460_v19 = vadd.f32 %v2459_v32, %v2429_v23 }
 0x24f   : > { %v2461_v62 = vadd.f32 %v2460_v19, %v2430_v35 }
 0x251   : > { %v2462_v50 = vadd.f32 %v2461_v62, %v2431_v55 }
 0x253   : > { %v2463_v25 = vadd.f32 %v2462_v50, %v2432_v21 }
 0x255   : > { %v2464_v2 = vadd.f32 %v2463_v25, %v2433_v31 }
 0x257   : > { %v2465_v4 = vadd.f32 %v2464_v2, %v2434_v14 }
 0x259   : > { %v2466_v41 = vadd.f32 %v2465_v4, %v2435_v58 }
 0x25b   : > { %v2467_v11 = vadd.f32 %v2466_v41, %v2436_v42 }
 0x25d   : > { %v2468_v33 = vadd.f32 %v2467_v11, %v2437_v9 }
 0x25f   : > { %v2469_v47 = vadd.f32 %v2468_v33, %v2438_v53 }
 0x261   : > { %v2470_v18 = vadd.f32 %v2469_v47, %v2439_v8 }
 0x263   : > { %v2471_v13 = vadd.f32 %v2470_v18, %v2440_v24 }
 0x265   : > { %v2472_v26 = vadd.f32 %v2471_v13, %v2441_v46 }
 0x267   : > { %v2473_v10 = vadd.f32 %v2472_v26, %v2442_v44 }
 0x269   : > { %v2474_v5 = vadd.f32 %v2473_v10, %v2443_v52 }
 0x26b   : > { %v2475_v22 = vadd.f32 %v2474_v5, %v2444_v49 }
 0x26d   : > { %v2476_v7 = vadd.f32 %v2475_v22, %v2445_v17 }
 0x26f   : > { %v2477_v0 = vadd.f32 %v2476_v7, %v2446_v6 }
 0x271   : > { %v2478_v20 = vrot.slane %v2477_v0, 4 }
 0x273   : > { %v2479_v48 = vadd.f32 %v2478_v20, %v2477_v0 }
 0x275   : > { %v2480_v1 = vrot.slane %v2479_v48, 2 }
 0x277   : > { %v2481_v15 = vadd.f32 %v2480_v1, %v2479_v48 }
 0x279   : > { %v2482_v61 = vrot.slane %v2481_v15, 1 }
 0x27b   : > { %v2483_v54 = vadd.f32 %v2482_v61, %v2481_v15 }
 0x27d   : > { %2484 = vst [vmem:[%s214_s8] sm:$0x1] %v2483_v54 }
 0x27e PF: > { %s15_s15 = sadd.s32 1, %s3717_s15  }
 0x27f   : > { %p12_p4 = scmp.ge.s32.totalorder %s15_s15, 4  }
 0x281   :  { %14 = sbr.rel (!%p12_p4) target bundleno = 1 (0x1), region = 84 }

</bundles_post_ra>
